<compile_context>
chip_gen: v5e
topology: v5e:2x2
jax: 0.10.0
libtpu: 0.0.40
codegen_flags: <defaults>
</compile_context>

<pallas_src>
import functools
import math

import jax
import jax.numpy as jnp
from jax.experimental import pallas as pl
from jax.experimental.pallas import tpu as pltpu


# Row layout of the per-transformer-block packed "vec" slab (8 rows x max(D, M)):
_LN1_G, _LN1_B, _LN2_G, _LN2_B, _BO, _FC2_B, _FC1_B = 0, 1, 2, 3, 4, 5, 6


# -----------------------------------------------------------------------------
# In-kernel math helpers (f32 values already resident in vregs)
# -----------------------------------------------------------------------------

def _gelu(x):
    # TODO(synk): PyTorch nn.GELU defaults to the erf form; the tanh
    # approximation is used so the transcendental maps onto the TPU EUP.
    c = math.sqrt(2.0 / math.pi)
    return 0.5 * x * (1.0 + jnp.tanh(c * (x + 0.044715 * x * x * x)))


def _layernorm(x, g, b):
    mean = jnp.mean(x, axis=-1, keepdims=True)
    var = jnp.mean((x - mean) ** 2, axis=-1, keepdims=True)
    return (x - mean) * jax.lax.rsqrt(var + 1e-5) * g + b


def _transformer_block(x, blk, li, heads):
    """Pre-LN transformer block on a (BC, N, D) batch chunk.

    Per-head Q/K/V/Wo weights are read by indexing the leading axis of packed
    weight refs (zero-cost addressing) instead of lane-slicing an in-register
    fused QKV value at non-128-aligned offsets.  Token-parallel matmuls run on
    the flattened (BC*N, D) activation so each MXU push sees BC*N rows.
    """
    BC, N, D = x.shape
    dh = D // heads
    scale = 1.0 / math.sqrt(dh)
    M = blk["w1"].shape[-1]

    vec = blk["vec"]
    ln1_g = vec[li, _LN1_G:_LN1_G + 1, :D]
    ln1_b = vec[li, _LN1_B:_LN1_B + 1, :D]
    ln2_g = vec[li, _LN2_G:_LN2_G + 1, :D]
    ln2_b = vec[li, _LN2_B:_LN2_B + 1, :D]
    bo = vec[li, _BO:_BO + 1, :D]
    fc2_b = vec[li, _FC2_B:_FC2_B + 1, :D]
    fc1_b = vec[li, _FC1_B:_FC1_B + 1, :M]

    xf = x.reshape(BC * N, D)
    h = _layernorm(xf, ln1_g, ln1_b)

    attn = jnp.zeros((BC * N, D), jnp.float32)
    for hi in range(heads):  # heads is small & static -> unrolled
        def widx(qi):
            return (li * 3 + qi) * heads + hi

        q = (jnp.dot(h, blk["qkv_w"][widx(0)], preferred_element_type=jnp.float32)
             + blk["qkv_b"][widx(0)])
        k = (jnp.dot(h, blk["qkv_w"][widx(1)], preferred_element_type=jnp.float32)
             + blk["qkv_b"][widx(1)])
        v = (jnp.dot(h, blk["qkv_w"][widx(2)], preferred_element_type=jnp.float32)
             + blk["qkv_b"][widx(2)])
        qb = q.reshape(BC, N, dh)
        kb = k.reshape(BC, N, dh)
        vb = v.reshape(BC, N, dh)

        s = jnp.einsum("bqd,bkd->bqk", qb, kb,
                       preferred_element_type=jnp.float32) * scale
        s = s - jnp.max(s, axis=-1, keepdims=True)
        e = jnp.exp(s)
        p = e * pl.reciprocal(jnp.sum(e, axis=-1, keepdims=True), approx=True)
        o = jnp.einsum("bqk,bkd->bqd", p, vb, preferred_element_type=jnp.float32)
        # Fold the output projection per-head (== concat(heads) @ Wo): no concat,
        # no lane slicing of Wo.
        attn = attn + jnp.dot(o.reshape(BC * N, dh), blk["wo_w"][li * heads + hi],
                              preferred_element_type=jnp.float32)
    xf = xf + attn + bo

    h = _layernorm(xf, ln2_g, ln2_b)
    h = _gelu(jnp.dot(h, blk["w1"][li], preferred_element_type=jnp.float32) + fc1_b)
    h = jnp.dot(h, blk["w2"][li], preferred_element_type=jnp.float32) + fc2_b
    xf = xf + h
    # NOTE: blocks are unrolled with a Python loop; if depth grows past ~2 the
    # stacked-along-depth weight layout allows switching to lax.fori_loop.
    return xf.reshape(BC, N, D)


# -----------------------------------------------------------------------------
# The single fused forward kernel (one grid step == one batch chunk)
# -----------------------------------------------------------------------------

def _forward_kernel(*refs, treedef, n_params, enc_heads, dec_heads):
    patches_ref, action_ref = refs[0], refs[1]
    param_refs = refs[2:2 + n_params]
    o_ref = refs[2 + n_params]
    p = jax.tree_util.tree_unflatten(treedef, param_refs)

    BC, Np, Pd = patches_ref.shape
    Npo = o_ref.shape[1]

    # ---- Encoder (ViT): patch-embed -> +pos -> blocks -> LN -> mean pool -> head
    enc = p["enc"]
    ED = enc["patch_w"].shape[-1]
    L = enc["head_w"].shape[-1]
    enc_depth = enc["blk"]["w1"].shape[0]

    tok = jnp.dot(patches_ref[...].reshape(BC * Np, Pd), enc["patch_w"][...],
                  preferred_element_type=jnp.float32)
    tok = tok.reshape(BC, Np, ED) + enc["pos"][...][None, :, :]  # patch bias folded into pos
    for li in range(enc_depth):
        tok = _transformer_block(tok, enc["blk"], li, enc_heads)
    tokf = tok.reshape(BC * Np, ED)
    etail = enc["tail"]
    tokf = _layernorm(tokf, etail[0:1, :ED], etail[1:2, :ED])
    pooled = jnp.mean(tokf.reshape(BC, Np, ED), axis=1)                  # (BC, ED)
    latent = (jnp.dot(pooled, enc["head_w"][...],
                      preferred_element_type=jnp.float32) + etail[2:3, :L])

    # ---- Action embedding (continuous -> Linear)
    Ad = action_ref.shape[-1]
    act = action_ref[...].reshape(BC, Ad)
    act_emb = (jnp.dot(act, p["act_w"][...], preferred_element_type=jnp.float32)
               + p["act_b"][...])                                        # (BC, act_emb)

    # ---- Predictor MLP; first-layer weight is stored pre-split so
    # concat([latent, act_emb]) @ W == latent @ W_lat + act_emb @ W_act (no concat).
    pred = p["pred"]
    pvec = pred["vec"]
    h0 = pred["w_lat"].shape[-1]
    h = (jnp.dot(latent, pred["w_lat"][...], preferred_element_type=jnp.float32)
         + jnp.dot(act_emb, pred["w_act"][...], preferred_element_type=jnp.float32)
         + pvec[0:1, :h0])
    h = _gelu(h)
    r = 1
    for w in pred["w_hidden"]:
        h = _gelu(jnp.dot(h, w[...], preferred_element_type=jnp.float32)
                  + pvec[r:r + 1, :w.shape[-1]])
        r += 1
    P = pred["out_w"].shape[-1]
    pred_out = (jnp.dot(h, pred["out_w"][...], preferred_element_type=jnp.float32)
                + pvec[r:r + 1, :P])                                     # (BC, pred_dim)

    # ---- StateDecoder (JEPA-style): project -> broadcast onto pos tokens -> blocks -> LN -> pixels
    # TODO(synk): StateDecoder is assumed to broadcast the predicted latent onto every
    # positional token (the reference StateDecoder implementation is not shown).
    dec = p["dec"]
    DD = dec["in_w"].shape[-1]
    dec_depth = dec["blk"]["w1"].shape[0]
    d = jnp.dot(pred_out, dec["in_w"][...], preferred_element_type=jnp.float32)  # in_b folded into pos
    tok = dec["pos"][...][None, :, :] + d[:, None, :]                    # (BC, Npo, DD)
    for li in range(dec_depth):
        tok = _transformer_block(tok, dec["blk"], li, dec_heads)
    tokf = tok.reshape(BC * Npo, DD)
    dtail = dec["tail"]
    tokf = _layernorm(tokf, dtail[0:1, :DD], dtail[1:2, :DD])
    pix = dec["pix_w"].shape[-1]
    out = (jnp.dot(tokf, dec["pix_w"][...], preferred_element_type=jnp.float32)
           + dtail[2:3, :pix])
    # TODO(synk): pix_dim=64 (<128 lanes) keeps the final store lane-masked; a
    # lane-dense (Npo*pix) slab would require an in-kernel activation relayout,
    # so it is intentionally left as-is (store volume is tiny).
    o_ref[...] = out.reshape(BC, Npo, pix)


# -----------------------------------------------------------------------------
# JAX-side layout glue (pure reshapes/transposes on kernel input / output)
# -----------------------------------------------------------------------------

def patchify(img, ps):
    """(B,C,H,W) NCHW -> (B, num_patches, C*ps*ps), patch flattened as (C,ph,pw)."""
    B, C, H, W = img.shape
    nh, nw = H // ps, W // ps
    x = img.reshape(B, C, nh, ps, nw, ps)
    x = x.transpose(0, 2, 4, 1, 3, 5)  # B, nh, nw, C, ph, pw
    return x.reshape(B, nh * nw, C * ps * ps)


def unpatchify(x, ps, C, H, W):
    """(B, num_patches, C*ps*ps) -> (B,C,H,W) NCHW."""
    B = x.shape[0]
    nh, nw = H // ps, W // ps
    x = x.reshape(B, nh, nw, C, ps, ps)
    x = x.transpose(0, 3, 1, 4, 2, 5)
    return x.reshape(B, C, H, W)


# -----------------------------------------------------------------------------
# Parameter init (deterministic, synthetic, packed layout)
# -----------------------------------------------------------------------------

def _init_params(cfg, key):
    keys = iter(jax.random.split(key, 256))

    def nrm(shape, scale=0.02):
        return jax.random.normal(next(keys), shape, jnp.float32) * scale

    def packed_blocks(depth, dim, heads, mlp_dim):
        dh = dim // heads
        wv = max(dim, mlp_dim)
        vec = jnp.zeros((depth, 8, wv), jnp.float32)
        vec = vec.at[:, _LN1_G, :dim].set(1.0)   # LN gains -> 1; all biases -> 0
        vec = vec.at[:, _LN2_G, :dim].set(1.0)
        return dict(
            qkv_w=nrm((depth * 3 * heads, dim, dh)),            # [(li*3+qi)*H + hi]
            qkv_b=jnp.zeros((depth * 3 * heads, 1, dh), jnp.float32),
            wo_w=nrm((depth * heads, dh, dim)),                 # [li*H + hi]
            w1=nrm((depth, dim, mlp_dim)),
            w2=nrm((depth, mlp_dim, dim)),
            vec=vec,
        )

    ps = cfg["patch_size"]
    Hh, Ww = cfg["image_size"]
    np_enc = (Hh // ps) * (Ww // ps)
    patch_dim = cfg["input_channels"] * ps * ps
    ed, L = cfg["enc_dim"], cfg["latent_dim"]

    enc = dict(
        patch_w=nrm((patch_dim, ed)),
        pos=nrm((np_enc, ed)),                                  # patch-embed bias (0) folded in
        blk=packed_blocks(cfg["enc_depth"], ed, cfg["enc_heads"], cfg["enc_mlp_dim"]),
        tail=jnp.zeros((3, max(ed, L)), jnp.float32).at[0, :ed].set(1.0),  # ln_g, ln_b, head_b
        head_w=nrm((ed, L)),
    )

    aw = nrm((cfg["action_dim"], cfg["action_emb_dim"]))
    ab = jnp.zeros((1, cfg["action_emb_dim"]), jnp.float32)

    hidden = list(cfg["predictor_hidden_dims"])
    assert len(hidden) >= 1
    w0 = nrm((L + cfg["action_emb_dim"], hidden[0]))
    w_hidden, din = [], hidden[0]
    for hd in hidden[1:]:
        w_hidden.append(nrm((din, hd)))
        din = hd
    P = cfg["predictor_output_dim"]
    pred = dict(
        w_lat=w0[:L], w_act=w0[L:],
        w_hidden=w_hidden,
        out_w=nrm((din, P)),
        vec=jnp.zeros((len(hidden) + 1, max(hidden + [P])), jnp.float32),  # b0..b_out
    )

    dps = cfg["decoder_patch_size"]
    oH, oW = cfg["output_image_size"]
    np_dec = (oH // dps) * (oW // dps)
    dd = cfg["decoder_dim"]
    pix = cfg["output_channels"] * dps * dps
    dec = dict(
        in_w=nrm((P, dd)),
        pos=nrm((np_dec, dd)),                                  # decoder input bias (0) folded in
        blk=packed_blocks(cfg["decoder_depth"], dd, cfg["decoder_heads"], cfg["decoder_mlp_dim"]),
        tail=jnp.zeros((3, max(dd, pix)), jnp.float32).at[0, :dd].set(1.0),  # ln_g, ln_b, pix_b
        pix_w=nrm((dd, pix)),
    )

    return dict(enc=enc, act_w=aw, act_b=ab, pred=pred, dec=dec)


# -----------------------------------------------------------------------------
# Grid-chunk selection + cost estimate
# -----------------------------------------------------------------------------

def _default_num_chunks(batch):
    """2 parallel chunks on 2-TensorCore chips (v7x); 1 single-step grid otherwise."""
    try:
        kind = jax.devices()[0].device_kind.lower()
    except Exception:
        kind = ""
    n = 2 if any(tag in kind for tag in ("v7", "tpu7", "7x")) else 1
    if batch % n != 0:
        n = 1
    return max(1, min(batch, n))


def _cost_estimate(cfg, B, Np, Pd, Npo, pix_dim, param_bytes):
    def mm(m, k, n):
        return 2.0 * m * k * n

    def block_flops(N, D, M):
        return mm(N, D, 3 * D) + 2 * mm(N, N, D) + mm(N, D, D) + 2 * mm(N, D, M)

    ED, L, DD = cfg["enc_dim"], cfg["latent_dim"], cfg["decoder_dim"]
    Me, Md = cfg["enc_mlp_dim"], cfg["decoder_mlp_dim"]
    hidden, P = list(cfg["predictor_hidden_dims"]), cfg["predictor_output_dim"]
    AE, Ad = cfg["action_emb_dim"], cfg["action_dim"]

    f = mm(Np, Pd, ED) + cfg["enc_depth"] * block_flops(Np, ED, Me)
    f += mm(1, ED, L) + mm(1, Ad, AE)
    dims = [L + AE] + hidden + [P]
    for a, b in zip(dims[:-1], dims[1:]):
        f += mm(1, a, b)
    f += mm(1, P, DD) + cfg["decoder_depth"] * block_flops(Npo, DD, Md)
    f += mm(Npo, DD, pix_dim)

    t = (cfg["enc_depth"] * (cfg["enc_heads"] * Np * Np + Np * Me)
         + cfg["decoder_depth"] * (cfg["decoder_heads"] * Npo * Npo + Npo * Md)
         + sum(hidden))
    bytes_accessed = 4 * (B * Np * Pd + B * Ad + B * Npo * pix_dim) + param_bytes
    return pl.CostEstimate(flops=int(B * f), transcendentals=int(B * t),
                           bytes_accessed=int(bytes_accessed))


# -----------------------------------------------------------------------------
# Forward pass: one fused pallas_call, grid over batch chunks
# -----------------------------------------------------------------------------

def forward(params, cfg, current_state_img, action, *, num_chunks=None):
    B = current_state_img.shape[0]
    ps = cfg["patch_size"]
    dps = cfg["decoder_patch_size"]
    oC = cfg["output_channels"]
    oH, oW = cfg["output_image_size"]
    Npo = (oH // dps) * (oW // dps)
    pix_dim = oC * dps * dps

    patches = patchify(current_state_img.astype(jnp.float32), ps)   # (B, Np, Pd)
    Np, Pd = patches.shape[1], patches.shape[2]
    action3 = action.astype(jnp.float32).reshape(B, 1, -1)          # (B, 1, action_dim)
    Ad = action3.shape[2]

    if num_chunks is None:
        num_chunks = _default_num_chunks(B)
    if B % num_chunks != 0:
        num_chunks = 1
    BC = B // num_chunks

    leaves, treedef = jax.tree_util.tree_flatten(params)
    param_bytes = sum(int(x.size) * 4 for x in leaves)

    kern = functools.partial(
        _forward_kernel,
        treedef=treedef, n_params=len(leaves),
        enc_heads=cfg["enc_heads"], dec_heads=cfg["decoder_heads"])

    in_specs = [
        pl.BlockSpec((BC, Np, Pd), lambda b: (b, 0, 0)),   # this chunk's patches
        pl.BlockSpec((BC, 1, Ad), lambda b: (b, 0, 0)),    # this chunk's actions
    ] + [
        # Packed weight slabs: full array resident in VMEM; same block every grid
        # step, so the pipeline never re-DMAs them.
        pl.BlockSpec(x.shape, lambda b, nd=x.ndim: (0,) * nd)
        for x in leaves
    ]

    out = pl.pallas_call(
        kern,
        grid=(num_chunks,),
        out_shape=jax.ShapeDtypeStruct((B, Npo, pix_dim), jnp.float32),
        in_specs=in_specs,
        out_specs=pl.BlockSpec((BC, Npo, pix_dim), lambda b: (b, 0, 0)),
        compiler_params=pltpu.CompilerParams(dimension_semantics=("parallel",)),
        cost_estimate=_cost_estimate(cfg, B, Np, Pd, Npo, pix_dim, param_bytes),
    )(patches, action3, *leaves)

    return unpatchify(out, dps, oC, oH, oW)                          # (B, oC, oH, oW)


# -----------------------------------------------------------------------------
# Pure-JAX reference (same packed-param math, exact softmax divide)
# -----------------------------------------------------------------------------

def _reference_forward(params, cfg, current_state_img, action):
    def ln(y, g, b):
        mu = jnp.mean(y, -1, keepdims=True)
        var = jnp.mean((y - mu) ** 2, -1, keepdims=True)
        return (y - mu) * jax.lax.rsqrt(var + 1e-5) * g + b

    def block(x, blk, li, heads):
        _, _, D = x.shape
        dh = D // heads
        scale = 1.0 / math.sqrt(dh)
        M = blk["w1"].shape[-1]
        vec = blk["vec"][li]
        h = ln(x, vec[_LN1_G, :D], vec[_LN1_B, :D])
        attn = jnp.zeros_like(x)
        for hi in range(heads):
            def widx(qi):
                return (li * 3 + qi) * heads + hi
            q = jnp.einsum("bnd,de->bne", h, blk["qkv_w"][widx(0)]) + blk["qkv_b"][widx(0)]
            k = jnp.einsum("bnd,de->bne", h, blk["qkv_w"][widx(1)]) + blk["qkv_b"][widx(1)]
            v = jnp.einsum("bnd,de->bne", h, blk["qkv_w"][widx(2)]) + blk["qkv_b"][widx(2)]
            s = jnp.einsum("bqe,bke->bqk", q, k) * scale
            p = jax.nn.softmax(s, axis=-1)
            o = jnp.einsum("bqk,bke->bqe", p, v)
            attn = attn + jnp.einsum("bne,ed->bnd", o, blk["wo_w"][li * heads + hi])
        x = x + attn + vec[_BO, :D]
        h = ln(x, vec[_LN2_G, :D], vec[_LN2_B, :D])
        h = _gelu(jnp.einsum("bnd,dm->bnm", h, blk["w1"][li]) + vec[_FC1_B, :M])
        h = jnp.einsum("bnm,md->bnd", h, blk["w2"][li]) + vec[_FC2_B, :D]
        return x + h

    enc, pred, dec = params["enc"], params["pred"], params["dec"]
    patches = patchify(current_state_img.astype(jnp.float32), cfg["patch_size"])

    ED = enc["patch_w"].shape[-1]
    L = enc["head_w"].shape[-1]
    tok = jnp.einsum("bnp,pe->bne", patches, enc["patch_w"]) + enc["pos"][None]
    for li in range(cfg["enc_depth"]):
        tok = block(tok, enc["blk"], li, cfg["enc_heads"])
    tok = ln(tok, enc["tail"][0, :ED], enc["tail"][1, :ED])
    latent = jnp.mean(tok, axis=1) @ enc["head_w"] + enc["tail"][2, :L]

    act_emb = action.astype(jnp.float32) @ params["act_w"] + params["act_b"]

    h0 = pred["w_lat"].shape[-1]
    h = _gelu(latent @ pred["w_lat"] + act_emb @ pred["w_act"] + pred["vec"][0, :h0])
    r = 1
    for w in pred["w_hidden"]:
        h = _gelu(h @ w + pred["vec"][r, :w.shape[-1]])
        r += 1
    P = pred["out_w"].shape[-1]
    pred_out = h @ pred["out_w"] + pred["vec"][r, :P]

    DD = dec["in_w"].shape[-1]
    d = pred_out @ dec["in_w"]
    tok = dec["pos"][None] + d[:, None, :]
    for li in range(cfg["decoder_depth"]):
        tok = block(tok, dec["blk"], li, cfg["decoder_heads"])
    tok = ln(tok, dec["tail"][0, :DD], dec["tail"][1, :DD])
    pix = dec["pix_w"].shape[-1]
    out = jnp.einsum("bnd,dp->bnp", tok, dec["pix_w"]) + dec["tail"][2, :pix]

    oH, oW = cfg["output_image_size"]
    return unpatchify(out, cfg["decoder_patch_size"], cfg["output_channels"], oH, oW)


# -----------------------------------------------------------------------------
# Main
# -----------------------------------------------------------------------------

if __name__ == "__main__":
    cfg = dict(
        image_size=(16, 16),
        patch_size=4,
        input_channels=4,
        action_dim=4,
        action_emb_dim=8,
        action_type="continuous",
        latent_dim=32,
        predictor_hidden_dims=[64, 64],
        predictor_output_dim=32,
        decoder_dim=32,
        decoder_depth=2,
        decoder_heads=2,
        decoder_mlp_dim=64,
        output_channels=4,
        output_image_size=(16, 16),
        decoder_patch_size=4,
        # encoder_params (ViT encoder)
        enc_dim=32,
        enc_depth=1,
        enc_heads=2,
        enc_mlp_dim=64,
    )

    root = jax.random.PRNGKey(0)
    k_param, k_img, k_act = jax.random.split(root, 3)
    params = _init_params(cfg, k_param)

    batch = 2
    current_state_img = jax.random.normal(
        k_img, (batch, cfg["input_channels"], *cfg["image_size"]), jnp.float32)
    action = jax.random.normal(k_act, (batch, cfg["action_dim"]), jnp.float32)

    fwd = jax.jit(functools.partial(forward, params, cfg))
    out = jax.block_until_ready(fwd(current_state_img, action))

    expected = (batch, cfg["output_channels"], *cfg["output_image_size"])
    assert out.shape == expected, (out.shape, expected)
    assert bool(jnp.all(jnp.isfinite(out)))

    ref = jax.block_until_ready(
        jax.jit(functools.partial(_reference_forward, params, cfg))(current_state_img, action))
    assert jnp.allclose(out, ref, atol=2e-2, rtol=2e-2), float(jnp.max(jnp.abs(out - ref)))

    print("KERNEL_OK")
</pallas_src>

<mosaic_0001>
module attributes {stable_mosaic.version = 11 : i64} {
  func.func @_forward_kernel(%arg0: i32, %arg1: memref<2x16x64xf32, #tpu.memory_space<vmem>>, %arg2: memref<2x1x4xf32, #tpu.memory_space<vmem>>, %arg3: memref<1x8xf32, #tpu.memory_space<vmem>>, %arg4: memref<4x8xf32, #tpu.memory_space<vmem>>, %arg5: memref<12x1x16xf32, #tpu.memory_space<vmem>>, %arg6: memref<12x32x16xf32, #tpu.memory_space<vmem>>, %arg7: memref<2x8x64xf32, #tpu.memory_space<vmem>>, %arg8: memref<2x32x64xf32, #tpu.memory_space<vmem>>, %arg9: memref<2x64x32xf32, #tpu.memory_space<vmem>>, %arg10: memref<4x16x32xf32, #tpu.memory_space<vmem>>, %arg11: memref<32x32xf32, #tpu.memory_space<vmem>>, %arg12: memref<32x64xf32, #tpu.memory_space<vmem>>, %arg13: memref<16x32xf32, #tpu.memory_space<vmem>>, %arg14: memref<3x64xf32, #tpu.memory_space<vmem>>, %arg15: memref<6x1x16xf32, #tpu.memory_space<vmem>>, %arg16: memref<6x32x16xf32, #tpu.memory_space<vmem>>, %arg17: memref<1x8x64xf32, #tpu.memory_space<vmem>>, %arg18: memref<1x32x64xf32, #tpu.memory_space<vmem>>, %arg19: memref<1x64x32xf32, #tpu.memory_space<vmem>>, %arg20: memref<2x16x32xf32, #tpu.memory_space<vmem>>, %arg21: memref<32x32xf32, #tpu.memory_space<vmem>>, %arg22: memref<64x32xf32, #tpu.memory_space<vmem>>, %arg23: memref<16x32xf32, #tpu.memory_space<vmem>>, %arg24: memref<3x32xf32, #tpu.memory_space<vmem>>, %arg25: memref<64x32xf32, #tpu.memory_space<vmem>>, %arg26: memref<3x64xf32, #tpu.memory_space<vmem>>, %arg27: memref<8x64xf32, #tpu.memory_space<vmem>>, %arg28: memref<64x64xf32, #tpu.memory_space<vmem>>, %arg29: memref<32x64xf32, #tpu.memory_space<vmem>>, %arg30: memref<2x16x64xf32, #tpu.memory_space<vmem>>) attributes {dimension_semantics = [#tpu.dimension_semantics<parallel>], iteration_bounds = array<i64: 1>, scalar_prefetch = 0 : i64, scratch_operands = 0 : i64, tpu.core_type = #tpu.core_type<tc>, window_params = [{transform_indices = @transform_0, window_bounds = array<i64: 2, 16, 64>}, {transform_indices = @transform_1, window_bounds = array<i64: 2, 1, 4>}, {pipeline_mode = #tpu.pipeline_mode<synchronous>, transform_indices = @transform_2, window_bounds = array<i64: 1, 8>}, {pipeline_mode = #tpu.pipeline_mode<synchronous>, transform_indices = @transform_3, window_bounds = array<i64: 4, 8>}, {pipeline_mode = #tpu.pipeline_mode<synchronous>, transform_indices = @transform_4, window_bounds = array<i64: 12, 1, 16>}, {pipeline_mode = #tpu.pipeline_mode<synchronous>, transform_indices = @transform_5, window_bounds = array<i64: 12, 32, 16>}, {pipeline_mode = #tpu.pipeline_mode<synchronous>, transform_indices = @transform_6, window_bounds = array<i64: 2, 8, 64>}, {pipeline_mode = #tpu.pipeline_mode<synchronous>, transform_indices = @transform_7, window_bounds = array<i64: 2, 32, 64>}, {pipeline_mode = #tpu.pipeline_mode<synchronous>, transform_indices = @transform_8, window_bounds = array<i64: 2, 64, 32>}, {pipeline_mode = #tpu.pipeline_mode<synchronous>, transform_indices = @transform_9, window_bounds = array<i64: 4, 16, 32>}, {pipeline_mode = #tpu.pipeline_mode<synchronous>, transform_indices = @transform_10, window_bounds = array<i64: 32, 32>}, {pipeline_mode = #tpu.pipeline_mode<synchronous>, transform_indices = @transform_11, window_bounds = array<i64: 32, 64>}, {pipeline_mode = #tpu.pipeline_mode<synchronous>, transform_indices = @transform_12, window_bounds = array<i64: 16, 32>}, {pipeline_mode = #tpu.pipeline_mode<synchronous>, transform_indices = @transform_13, window_bounds = array<i64: 3, 64>}, {pipeline_mode = #tpu.pipeline_mode<synchronous>, transform_indices = @transform_14, window_bounds = array<i64: 6, 1, 16>}, {pipeline_mode = #tpu.pipeline_mode<synchronous>, transform_indices = @transform_15, window_bounds = array<i64: 6, 32, 16>}, {pipeline_mode = #tpu.pipeline_mode<synchronous>, transform_indices = @transform_16, window_bounds = array<i64: 1, 8, 64>}, {pipeline_mode = #tpu.pipeline_mode<synchronous>, transform_indices = @transform_17, window_bounds = array<i64: 1, 32, 64>}, {pipeline_mode = #tpu.pipeline_mode<synchronous>, transform_indices = @transform_18, window_bounds = array<i64: 1, 64, 32>}, {pipeline_mode = #tpu.pipeline_mode<synchronous>, transform_indices = @transform_19, window_bounds = array<i64: 2, 16, 32>}, {pipeline_mode = #tpu.pipeline_mode<synchronous>, transform_indices = @transform_20, window_bounds = array<i64: 32, 32>}, {pipeline_mode = #tpu.pipeline_mode<synchronous>, transform_indices = @transform_21, window_bounds = array<i64: 64, 32>}, {pipeline_mode = #tpu.pipeline_mode<synchronous>, transform_indices = @transform_22, window_bounds = array<i64: 16, 32>}, {pipeline_mode = #tpu.pipeline_mode<synchronous>, transform_indices = @transform_23, window_bounds = array<i64: 3, 32>}, {pipeline_mode = #tpu.pipeline_mode<synchronous>, transform_indices = @transform_24, window_bounds = array<i64: 64, 32>}, {pipeline_mode = #tpu.pipeline_mode<synchronous>, transform_indices = @transform_25, window_bounds = array<i64: 3, 64>}, {pipeline_mode = #tpu.pipeline_mode<synchronous>, transform_indices = @transform_26, window_bounds = array<i64: 8, 64>}, {pipeline_mode = #tpu.pipeline_mode<synchronous>, transform_indices = @transform_27, window_bounds = array<i64: 64, 64>}, {pipeline_mode = #tpu.pipeline_mode<synchronous>, transform_indices = @transform_28, window_bounds = array<i64: 32, 64>}, {transform_indices = @transform_29, window_bounds = array<i64: 2, 16, 64>}]} {
    %c0 = arith.constant 0 : index
    %c0_0 = arith.constant 0 : index
    %c0_1 = arith.constant 0 : index
    %0 = vector.load %arg1[%c0, %c0_0, %c0_1] : memref<2x16x64xf32, #tpu.memory_space<vmem>>, vector<2x16x64xf32>
    %1 = vector.shape_cast %0 : vector<2x16x64xf32> to vector<32x64xf32>
    %c0_2 = arith.constant 0 : index
    %c0_3 = arith.constant 0 : index
    %2 = vector.load %arg22[%c0_2, %c0_3] : memref<64x32xf32, #tpu.memory_space<vmem>>, vector<64x32xf32>
    %cst = arith.constant dense<0.000000e+00> : vector<32x32xf32>
    %3 = tpu.matmul %1, %2, %cst {dimension_numbers = #tpu.dot_dimension_numbers<[1], [0], [0], [1], [0, 0, 1, 1], [], []>} : vector<32x64xf32>, vector<64x32xf32>, vector<32x32xf32> -> vector<32x32xf32>
    %4 = vector.shape_cast %3 : vector<32x32xf32> to vector<2x16x32xf32>
    %c0_4 = arith.constant 0 : index
    %c0_5 = arith.constant 0 : index
    %5 = vector.load %arg23[%c0_4, %c0_5] : memref<16x32xf32, #tpu.memory_space<vmem>>, vector<16x32xf32>
    %6 = vector.shape_cast %5 : vector<16x32xf32> to vector<1x16x32xf32>
    %7 = vector.broadcast %6 : vector<1x16x32xf32> to vector<2x16x32xf32>
    %8 = arith.addf %4, %7 : vector<2x16x32xf32>
    %c0_6 = arith.constant 0 : index
    %c0_7 = arith.constant 0 : index
    %c0_8 = arith.constant 0 : index
    %9 = vector.load %arg17[%c0_6, %c0_7, %c0_8] : memref<1x8x64xf32, #tpu.memory_space<vmem>>, vector<1x1x32xf32>
    %10 = vector.shape_cast %9 : vector<1x1x32xf32> to vector<1x32xf32>
    %c0_9 = arith.constant 0 : index
    %c1 = arith.constant 1 : index
    %c0_10 = arith.constant 0 : index
    %11 = vector.load %arg17[%c0_9, %c1, %c0_10] : memref<1x8x64xf32, #tpu.memory_space<vmem>>, vector<1x1x32xf32>
    %12 = vector.shape_cast %11 : vector<1x1x32xf32> to vector<1x32xf32>
    %c0_11 = arith.constant 0 : index
    %c2 = arith.constant 2 : index
    %c0_12 = arith.constant 0 : index
    %13 = vector.load %arg17[%c0_11, %c2, %c0_12] : memref<1x8x64xf32, #tpu.memory_space<vmem>>, vector<1x1x32xf32>
    %14 = vector.shape_cast %13 : vector<1x1x32xf32> to vector<1x32xf32>
    %c0_13 = arith.constant 0 : index
    %c3 = arith.constant 3 : index
    %c0_14 = arith.constant 0 : index
    %15 = vector.load %arg17[%c0_13, %c3, %c0_14] : memref<1x8x64xf32, #tpu.memory_space<vmem>>, vector<1x1x32xf32>
    %16 = vector.shape_cast %15 : vector<1x1x32xf32> to vector<1x32xf32>
    %c0_15 = arith.constant 0 : index
    %c4 = arith.constant 4 : index
    %c0_16 = arith.constant 0 : index
    %17 = vector.load %arg17[%c0_15, %c4, %c0_16] : memref<1x8x64xf32, #tpu.memory_space<vmem>>, vector<1x1x32xf32>
    %18 = vector.shape_cast %17 : vector<1x1x32xf32> to vector<1x32xf32>
    %c0_17 = arith.constant 0 : index
    %c5 = arith.constant 5 : index
    %c0_18 = arith.constant 0 : index
    %19 = vector.load %arg17[%c0_17, %c5, %c0_18] : memref<1x8x64xf32, #tpu.memory_space<vmem>>, vector<1x1x32xf32>
    %20 = vector.shape_cast %19 : vector<1x1x32xf32> to vector<1x32xf32>
    %c0_19 = arith.constant 0 : index
    %c6 = arith.constant 6 : index
    %c0_20 = arith.constant 0 : index
    %21 = vector.load %arg17[%c0_19, %c6, %c0_20] : memref<1x8x64xf32, #tpu.memory_space<vmem>>, vector<1x1x64xf32>
    %22 = vector.shape_cast %21 : vector<1x1x64xf32> to vector<1x64xf32>
    %23 = vector.shape_cast %8 : vector<2x16x32xf32> to vector<32x32xf32>
    %cst_21 = arith.constant dense<0.000000e+00> : vector<32xf32>
    %24 = vector.multi_reduction <add>, %23, %cst_21 [1] : vector<32x32xf32> to vector<32xf32>
    %25 = vector.shape_cast %24 : vector<32xf32> to vector<32x1xf32>
    %cst_22 = arith.constant 3.200000e+01 : f32
    %26 = vector.broadcast %cst_22 : f32 to vector<32x1xf32>
    %27 = arith.divf %25, %26 : vector<32x1xf32>
    %28 = vector.broadcast %27 : vector<32x1xf32> to vector<32x32xf32>
    %29 = arith.subf %23, %28 : vector<32x32xf32>
    %30 = arith.mulf %29, %29 : vector<32x32xf32>
    %cst_23 = arith.constant dense<0.000000e+00> : vector<32xf32>
    %31 = vector.multi_reduction <add>, %30, %cst_23 [1] : vector<32x32xf32> to vector<32xf32>
    %32 = vector.shape_cast %31 : vector<32xf32> to vector<32x1xf32>
    %cst_24 = arith.constant 3.200000e+01 : f32
    %33 = vector.broadcast %cst_24 : f32 to vector<32x1xf32>
    %34 = arith.divf %32, %33 : vector<32x1xf32>
    %35 = vector.broadcast %27 : vector<32x1xf32> to vector<32x32xf32>
    %36 = arith.subf %23, %35 : vector<32x32xf32>
    %cst_25 = arith.constant 9.99999974E-6 : f32
    %37 = vector.broadcast %cst_25 : f32 to vector<32x1xf32>
    %38 = arith.addf %34, %37 : vector<32x1xf32>
    %39 = math.rsqrt %38 : vector<32x1xf32>
    %40 = vector.broadcast %39 : vector<32x1xf32> to vector<32x32xf32>
    %41 = arith.mulf %36, %40 : vector<32x32xf32>
    %42 = vector.broadcast %10 : vector<1x32xf32> to vector<32x32xf32>
    %43 = arith.mulf %41, %42 : vector<32x32xf32>
    %44 = vector.broadcast %12 : vector<1x32xf32> to vector<32x32xf32>
    %45 = arith.addf %43, %44 : vector<32x32xf32>
    %cst_26 = arith.constant 0.000000e+00 : f32
    %46 = vector.broadcast %cst_26 : f32 to vector<32x32xf32>
    %c0_27 = arith.constant 0 : index
    %c0_28 = arith.constant 0 : index
    %c0_29 = arith.constant 0 : index
    %47 = vector.load %arg16[%c0_27, %c0_28, %c0_29] : memref<6x32x16xf32, #tpu.memory_space<vmem>>, vector<1x32x16xf32>
    %48 = vector.shape_cast %47 : vector<1x32x16xf32> to vector<32x16xf32>
    %cst_30 = arith.constant dense<0.000000e+00> : vector<32x16xf32>
    %49 = tpu.matmul %45, %48, %cst_30 {dimension_numbers = #tpu.dot_dimension_numbers<[1], [0], [0], [1], [0, 0, 1, 1], [], []>} : vector<32x32xf32>, vector<32x16xf32>, vector<32x16xf32> -> vector<32x16xf32>
    %c0_31 = arith.constant 0 : index
    %c0_32 = arith.constant 0 : index
    %c0_33 = arith.constant 0 : index
    %50 = vector.load %arg15[%c0_31, %c0_32, %c0_33] : memref<6x1x16xf32, #tpu.memory_space<vmem>>, vector<1x1x16xf32>
    %51 = vector.shape_cast %50 : vector<1x1x16xf32> to vector<1x16xf32>
    %52 = vector.broadcast %51 : vector<1x16xf32> to vector<32x16xf32>
    %53 = arith.addf %49, %52 : vector<32x16xf32>
    %c2_34 = arith.constant 2 : index
    %c0_35 = arith.constant 0 : index
    %c0_36 = arith.constant 0 : index
    %54 = vector.load %arg16[%c2_34, %c0_35, %c0_36] : memref<6x32x16xf32, #tpu.memory_space<vmem>>, vector<1x32x16xf32>
    %55 = vector.shape_cast %54 : vector<1x32x16xf32> to vector<32x16xf32>
    %cst_37 = arith.constant dense<0.000000e+00> : vector<32x16xf32>
    %56 = tpu.matmul %45, %55, %cst_37 {dimension_numbers = #tpu.dot_dimension_numbers<[1], [0], [0], [1], [0, 0, 1, 1], [], []>} : vector<32x32xf32>, vector<32x16xf32>, vector<32x16xf32> -> vector<32x16xf32>
    %c2_38 = arith.constant 2 : index
    %c0_39 = arith.constant 0 : index
    %c0_40 = arith.constant 0 : index
    %57 = vector.load %arg15[%c2_38, %c0_39, %c0_40] : memref<6x1x16xf32, #tpu.memory_space<vmem>>, vector<1x1x16xf32>
    %58 = vector.shape_cast %57 : vector<1x1x16xf32> to vector<1x16xf32>
    %59 = vector.broadcast %58 : vector<1x16xf32> to vector<32x16xf32>
    %60 = arith.addf %56, %59 : vector<32x16xf32>
    %c4_41 = arith.constant 4 : index
    %c0_42 = arith.constant 0 : index
    %c0_43 = arith.constant 0 : index
    %61 = vector.load %arg16[%c4_41, %c0_42, %c0_43] : memref<6x32x16xf32, #tpu.memory_space<vmem>>, vector<1x32x16xf32>
    %62 = vector.shape_cast %61 : vector<1x32x16xf32> to vector<32x16xf32>
    %cst_44 = arith.constant dense<0.000000e+00> : vector<32x16xf32>
    %63 = tpu.matmul %45, %62, %cst_44 {dimension_numbers = #tpu.dot_dimension_numbers<[1], [0], [0], [1], [0, 0, 1, 1], [], []>} : vector<32x32xf32>, vector<32x16xf32>, vector<32x16xf32> -> vector<32x16xf32>
    %c4_45 = arith.constant 4 : index
    %c0_46 = arith.constant 0 : index
    %c0_47 = arith.constant 0 : index
    %64 = vector.load %arg15[%c4_45, %c0_46, %c0_47] : memref<6x1x16xf32, #tpu.memory_space<vmem>>, vector<1x1x16xf32>
    %65 = vector.shape_cast %64 : vector<1x1x16xf32> to vector<1x16xf32>
    %66 = vector.broadcast %65 : vector<1x16xf32> to vector<32x16xf32>
    %67 = arith.addf %63, %66 : vector<32x16xf32>
    %68 = vector.shape_cast %53 : vector<32x16xf32> to vector<2x16x16xf32>
    %69 = vector.shape_cast %60 : vector<32x16xf32> to vector<2x16x16xf32>
    %70 = vector.shape_cast %67 : vector<32x16xf32> to vector<2x16x16xf32>
    "tpu.trace_start"() <{level = 10 : i32, message = "bqd,bkd->bqk"}> : () -> ()
    %cst_48 = arith.constant dense<0.000000e+00> : vector<2x16x16xf32>
    %71 = tpu.matmul %68, %69, %cst_48 {dimension_numbers = #tpu.dot_dimension_numbers<[2], [2], [1], [1], [0, 0, 0, 1, 1, 1], [0], [0]>} : vector<2x16x16xf32>, vector<2x16x16xf32>, vector<2x16x16xf32> -> vector<2x16x16xf32>
    "tpu.trace_stop"() : () -> ()
    %cst_49 = arith.constant 2.500000e-01 : f32
    %72 = vector.broadcast %cst_49 : f32 to vector<2x16x16xf32>
    %73 = arith.mulf %71, %72 : vector<2x16x16xf32>
    %cst_50 = arith.constant dense<0xFF800000> : vector<2x16xf32>
    %74 = vector.multi_reduction <maximumf>, %73, %cst_50 [2] : vector<2x16x16xf32> to vector<2x16xf32>
    %75 = vector.shape_cast %74 : vector<2x16xf32> to vector<2x16x1xf32>
    %76 = vector.broadcast %75 : vector<2x16x1xf32> to vector<2x16x16xf32>
    %77 = arith.subf %73, %76 : vector<2x16x16xf32>
    %78 = math.exp %77 : vector<2x16x16xf32>
    %cst_51 = arith.constant dense<0.000000e+00> : vector<2x16xf32>
    %79 = vector.multi_reduction <add>, %78, %cst_51 [2] : vector<2x16x16xf32> to vector<2x16xf32>
    %80 = vector.shape_cast %79 : vector<2x16xf32> to vector<2x16x1xf32>
    %81 = tpu.reciprocal %80 {approx = true} : vector<2x16x1xf32> -> vector<2x16x1xf32>
    %82 = vector.broadcast %81 : vector<2x16x1xf32> to vector<2x16x16xf32>
    %83 = arith.mulf %78, %82 : vector<2x16x16xf32>
    "tpu.trace_start"() <{level = 10 : i32, message = "bqk,bkd->bqd"}> : () -> ()
    %cst_52 = arith.constant dense<0.000000e+00> : vector<2x16x16xf32>
    %84 = tpu.matmul %83, %70, %cst_52 {dimension_numbers = #tpu.dot_dimension_numbers<[2], [1], [1], [2], [0, 0, 0, 1, 1, 2], [0], [0]>} : vector<2x16x16xf32>, vector<2x16x16xf32>, vector<2x16x16xf32> -> vector<2x16x16xf32>
    "tpu.trace_stop"() : () -> ()
    %85 = vector.shape_cast %84 : vector<2x16x16xf32> to vector<32x16xf32>
    %c0_53 = arith.constant 0 : index
    %c0_54 = arith.constant 0 : index
    %c0_55 = arith.constant 0 : index
    %86 = vector.load %arg20[%c0_53, %c0_54, %c0_55] : memref<2x16x32xf32, #tpu.memory_space<vmem>>, vector<1x16x32xf32>
    %87 = vector.shape_cast %86 : vector<1x16x32xf32> to vector<16x32xf32>
    %cst_56 = arith.constant dense<0.000000e+00> : vector<32x32xf32>
    %88 = tpu.matmul %85, %87, %cst_56 {dimension_numbers = #tpu.dot_dimension_numbers<[1], [0], [0], [1], [0, 0, 1, 1], [], []>} : vector<32x16xf32>, vector<16x32xf32>, vector<32x32xf32> -> vector<32x32xf32>
    %89 = arith.addf %46, %88 : vector<32x32xf32>
    %c1_57 = arith.constant 1 : index
    %c0_58 = arith.constant 0 : index
    %c0_59 = arith.constant 0 : index
    %90 = vector.load %arg16[%c1_57, %c0_58, %c0_59] : memref<6x32x16xf32, #tpu.memory_space<vmem>>, vector<1x32x16xf32>
    %91 = vector.shape_cast %90 : vector<1x32x16xf32> to vector<32x16xf32>
    %cst_60 = arith.constant dense<0.000000e+00> : vector<32x16xf32>
    %92 = tpu.matmul %45, %91, %cst_60 {dimension_numbers = #tpu.dot_dimension_numbers<[1], [0], [0], [1], [0, 0, 1, 1], [], []>} : vector<32x32xf32>, vector<32x16xf32>, vector<32x16xf32> -> vector<32x16xf32>
    %c1_61 = arith.constant 1 : index
    %c0_62 = arith.constant 0 : index
    %c0_63 = arith.constant 0 : index
    %93 = vector.load %arg15[%c1_61, %c0_62, %c0_63] : memref<6x1x16xf32, #tpu.memory_space<vmem>>, vector<1x1x16xf32>
    %94 = vector.shape_cast %93 : vector<1x1x16xf32> to vector<1x16xf32>
    %95 = vector.broadcast %94 : vector<1x16xf32> to vector<32x16xf32>
    %96 = arith.addf %92, %95 : vector<32x16xf32>
    %c3_64 = arith.constant 3 : index
    %c0_65 = arith.constant 0 : index
    %c0_66 = arith.constant 0 : index
    %97 = vector.load %arg16[%c3_64, %c0_65, %c0_66] : memref<6x32x16xf32, #tpu.memory_space<vmem>>, vector<1x32x16xf32>
    %98 = vector.shape_cast %97 : vector<1x32x16xf32> to vector<32x16xf32>
    %cst_67 = arith.constant dense<0.000000e+00> : vector<32x16xf32>
    %99 = tpu.matmul %45, %98, %cst_67 {dimension_numbers = #tpu.dot_dimension_numbers<[1], [0], [0], [1], [0, 0, 1, 1], [], []>} : vector<32x32xf32>, vector<32x16xf32>, vector<32x16xf32> -> vector<32x16xf32>
    %c3_68 = arith.constant 3 : index
    %c0_69 = arith.constant 0 : index
    %c0_70 = arith.constant 0 : index
    %100 = vector.load %arg15[%c3_68, %c0_69, %c0_70] : memref<6x1x16xf32, #tpu.memory_space<vmem>>, vector<1x1x16xf32>
    %101 = vector.shape_cast %100 : vector<1x1x16xf32> to vector<1x16xf32>
    %102 = vector.broadcast %101 : vector<1x16xf32> to vector<32x16xf32>
    %103 = arith.addf %99, %102 : vector<32x16xf32>
    %c5_71 = arith.constant 5 : index
    %c0_72 = arith.constant 0 : index
    %c0_73 = arith.constant 0 : index
    %104 = vector.load %arg16[%c5_71, %c0_72, %c0_73] : memref<6x32x16xf32, #tpu.memory_space<vmem>>, vector<1x32x16xf32>
    %105 = vector.shape_cast %104 : vector<1x32x16xf32> to vector<32x16xf32>
    %cst_74 = arith.constant dense<0.000000e+00> : vector<32x16xf32>
    %106 = tpu.matmul %45, %105, %cst_74 {dimension_numbers = #tpu.dot_dimension_numbers<[1], [0], [0], [1], [0, 0, 1, 1], [], []>} : vector<32x32xf32>, vector<32x16xf32>, vector<32x16xf32> -> vector<32x16xf32>
    %c5_75 = arith.constant 5 : index
    %c0_76 = arith.constant 0 : index
    %c0_77 = arith.constant 0 : index
    %107 = vector.load %arg15[%c5_75, %c0_76, %c0_77] : memref<6x1x16xf32, #tpu.memory_space<vmem>>, vector<1x1x16xf32>
    %108 = vector.shape_cast %107 : vector<1x1x16xf32> to vector<1x16xf32>
    %109 = vector.broadcast %108 : vector<1x16xf32> to vector<32x16xf32>
    %110 = arith.addf %106, %109 : vector<32x16xf32>
    %111 = vector.shape_cast %96 : vector<32x16xf32> to vector<2x16x16xf32>
    %112 = vector.shape_cast %103 : vector<32x16xf32> to vector<2x16x16xf32>
    %113 = vector.shape_cast %110 : vector<32x16xf32> to vector<2x16x16xf32>
    "tpu.trace_start"() <{level = 10 : i32, message = "bqd,bkd->bqk"}> : () -> ()
    %cst_78 = arith.constant dense<0.000000e+00> : vector<2x16x16xf32>
    %114 = tpu.matmul %111, %112, %cst_78 {dimension_numbers = #tpu.dot_dimension_numbers<[2], [2], [1], [1], [0, 0, 0, 1, 1, 1], [0], [0]>} : vector<2x16x16xf32>, vector<2x16x16xf32>, vector<2x16x16xf32> -> vector<2x16x16xf32>
    "tpu.trace_stop"() : () -> ()
    %cst_79 = arith.constant 2.500000e-01 : f32
    %115 = vector.broadcast %cst_79 : f32 to vector<2x16x16xf32>
    %116 = arith.mulf %114, %115 : vector<2x16x16xf32>
    %cst_80 = arith.constant dense<0xFF800000> : vector<2x16xf32>
    %117 = vector.multi_reduction <maximumf>, %116, %cst_80 [2] : vector<2x16x16xf32> to vector<2x16xf32>
    %118 = vector.shape_cast %117 : vector<2x16xf32> to vector<2x16x1xf32>
    %119 = vector.broadcast %118 : vector<2x16x1xf32> to vector<2x16x16xf32>
    %120 = arith.subf %116, %119 : vector<2x16x16xf32>
    %121 = math.exp %120 : vector<2x16x16xf32>
    %cst_81 = arith.constant dense<0.000000e+00> : vector<2x16xf32>
    %122 = vector.multi_reduction <add>, %121, %cst_81 [2] : vector<2x16x16xf32> to vector<2x16xf32>
    %123 = vector.shape_cast %122 : vector<2x16xf32> to vector<2x16x1xf32>
    %124 = tpu.reciprocal %123 {approx = true} : vector<2x16x1xf32> -> vector<2x16x1xf32>
    %125 = vector.broadcast %124 : vector<2x16x1xf32> to vector<2x16x16xf32>
    %126 = arith.mulf %121, %125 : vector<2x16x16xf32>
    "tpu.trace_start"() <{level = 10 : i32, message = "bqk,bkd->bqd"}> : () -> ()
    %cst_82 = arith.constant dense<0.000000e+00> : vector<2x16x16xf32>
    %127 = tpu.matmul %126, %113, %cst_82 {dimension_numbers = #tpu.dot_dimension_numbers<[2], [1], [1], [2], [0, 0, 0, 1, 1, 2], [0], [0]>} : vector<2x16x16xf32>, vector<2x16x16xf32>, vector<2x16x16xf32> -> vector<2x16x16xf32>
    "tpu.trace_stop"() : () -> ()
    %128 = vector.shape_cast %127 : vector<2x16x16xf32> to vector<32x16xf32>
    %c1_83 = arith.constant 1 : index
    %c0_84 = arith.constant 0 : index
    %c0_85 = arith.constant 0 : index
    %129 = vector.load %arg20[%c1_83, %c0_84, %c0_85] : memref<2x16x32xf32, #tpu.memory_space<vmem>>, vector<1x16x32xf32>
    %130 = vector.shape_cast %129 : vector<1x16x32xf32> to vector<16x32xf32>
    %cst_86 = arith.constant dense<0.000000e+00> : vector<32x32xf32>
    %131 = tpu.matmul %128, %130, %cst_86 {dimension_numbers = #tpu.dot_dimension_numbers<[1], [0], [0], [1], [0, 0, 1, 1], [], []>} : vector<32x16xf32>, vector<16x32xf32>, vector<32x32xf32> -> vector<32x32xf32>
    %132 = arith.addf %89, %131 : vector<32x32xf32>
    %133 = arith.addf %23, %132 : vector<32x32xf32>
    %134 = vector.broadcast %18 : vector<1x32xf32> to vector<32x32xf32>
    %135 = arith.addf %133, %134 : vector<32x32xf32>
    %cst_87 = arith.constant dense<0.000000e+00> : vector<32xf32>
    %136 = vector.multi_reduction <add>, %135, %cst_87 [1] : vector<32x32xf32> to vector<32xf32>
    %137 = vector.shape_cast %136 : vector<32xf32> to vector<32x1xf32>
    %cst_88 = arith.constant 3.200000e+01 : f32
    %138 = vector.broadcast %cst_88 : f32 to vector<32x1xf32>
    %139 = arith.divf %137, %138 : vector<32x1xf32>
    %140 = vector.broadcast %139 : vector<32x1xf32> to vector<32x32xf32>
    %141 = arith.subf %135, %140 : vector<32x32xf32>
    %142 = arith.mulf %141, %141 : vector<32x32xf32>
    %cst_89 = arith.constant dense<0.000000e+00> : vector<32xf32>
    %143 = vector.multi_reduction <add>, %142, %cst_89 [1] : vector<32x32xf32> to vector<32xf32>
    %144 = vector.shape_cast %143 : vector<32xf32> to vector<32x1xf32>
    %cst_90 = arith.constant 3.200000e+01 : f32
    %145 = vector.broadcast %cst_90 : f32 to vector<32x1xf32>
    %146 = arith.divf %144, %145 : vector<32x1xf32>
    %147 = vector.broadcast %139 : vector<32x1xf32> to vector<32x32xf32>
    %148 = arith.subf %135, %147 : vector<32x32xf32>
    %cst_91 = arith.constant 9.99999974E-6 : f32
    %149 = vector.broadcast %cst_91 : f32 to vector<32x1xf32>
    %150 = arith.addf %146, %149 : vector<32x1xf32>
    %151 = math.rsqrt %150 : vector<32x1xf32>
    %152 = vector.broadcast %151 : vector<32x1xf32> to vector<32x32xf32>
    %153 = arith.mulf %148, %152 : vector<32x32xf32>
    %154 = vector.broadcast %14 : vector<1x32xf32> to vector<32x32xf32>
    %155 = arith.mulf %153, %154 : vector<32x32xf32>
    %156 = vector.broadcast %16 : vector<1x32xf32> to vector<32x32xf32>
    %157 = arith.addf %155, %156 : vector<32x32xf32>
    %c0_92 = arith.constant 0 : index
    %c0_93 = arith.constant 0 : index
    %c0_94 = arith.constant 0 : index
    %158 = vector.load %arg18[%c0_92, %c0_93, %c0_94] : memref<1x32x64xf32, #tpu.memory_space<vmem>>, vector<1x32x64xf32>
    %159 = vector.shape_cast %158 : vector<1x32x64xf32> to vector<32x64xf32>
    %cst_95 = arith.constant dense<0.000000e+00> : vector<32x64xf32>
    %160 = tpu.matmul %157, %159, %cst_95 {dimension_numbers = #tpu.dot_dimension_numbers<[1], [0], [0], [1], [0, 0, 1, 1], [], []>} : vector<32x32xf32>, vector<32x64xf32>, vector<32x64xf32> -> vector<32x64xf32>
    %161 = vector.broadcast %22 : vector<1x64xf32> to vector<32x64xf32>
    %162 = arith.addf %160, %161 : vector<32x64xf32>
    %cst_96 = arith.constant 5.000000e-01 : f32
    %163 = vector.broadcast %cst_96 : f32 to vector<32x64xf32>
    %164 = arith.mulf %163, %162 : vector<32x64xf32>
    %cst_97 = arith.constant 4.471500e-02 : f32
    %165 = vector.broadcast %cst_97 : f32 to vector<32x64xf32>
    %166 = arith.mulf %165, %162 : vector<32x64xf32>
    %167 = arith.mulf %166, %162 : vector<32x64xf32>
    %168 = arith.mulf %167, %162 : vector<32x64xf32>
    %169 = arith.addf %162, %168 : vector<32x64xf32>
    %cst_98 = arith.constant 0.797884583 : f32
    %170 = vector.broadcast %cst_98 : f32 to vector<32x64xf32>
    %171 = arith.mulf %170, %169 : vector<32x64xf32>
    %172 = math.tanh %171 : vector<32x64xf32>
    %cst_99 = arith.constant 1.000000e+00 : f32
    %173 = vector.broadcast %cst_99 : f32 to vector<32x64xf32>
    %174 = arith.addf %173, %172 : vector<32x64xf32>
    %175 = arith.mulf %164, %174 : vector<32x64xf32>
    %c0_100 = arith.constant 0 : index
    %c0_101 = arith.constant 0 : index
    %c0_102 = arith.constant 0 : index
    %176 = vector.load %arg19[%c0_100, %c0_101, %c0_102] : memref<1x64x32xf32, #tpu.memory_space<vmem>>, vector<1x64x32xf32>
    %177 = vector.shape_cast %176 : vector<1x64x32xf32> to vector<64x32xf32>
    %cst_103 = arith.constant dense<0.000000e+00> : vector<32x32xf32>
    %178 = tpu.matmul %175, %177, %cst_103 {dimension_numbers = #tpu.dot_dimension_numbers<[1], [0], [0], [1], [0, 0, 1, 1], [], []>} : vector<32x64xf32>, vector<64x32xf32>, vector<32x32xf32> -> vector<32x32xf32>
    %179 = vector.broadcast %20 : vector<1x32xf32> to vector<32x32xf32>
    %180 = arith.addf %178, %179 : vector<32x32xf32>
    %181 = arith.addf %135, %180 : vector<32x32xf32>
    %182 = vector.shape_cast %181 : vector<32x32xf32> to vector<2x16x32xf32>
    %183 = vector.shape_cast %182 : vector<2x16x32xf32> to vector<32x32xf32>
    %c0_104 = arith.constant 0 : index
    %c0_105 = arith.constant 0 : index
    %184 = vector.load %arg24[%c0_104, %c0_105] : memref<3x32xf32, #tpu.memory_space<vmem>>, vector<1x32xf32>
    %c1_106 = arith.constant 1 : index
    %c0_107 = arith.constant 0 : index
    %185 = vector.load %arg24[%c1_106, %c0_107] : memref<3x32xf32, #tpu.memory_space<vmem>>, vector<1x32xf32>
    %cst_108 = arith.constant dense<0.000000e+00> : vector<32xf32>
    %186 = vector.multi_reduction <add>, %183, %cst_108 [1] : vector<32x32xf32> to vector<32xf32>
    %187 = vector.shape_cast %186 : vector<32xf32> to vector<32x1xf32>
    %cst_109 = arith.constant 3.200000e+01 : f32
    %188 = vector.broadcast %cst_109 : f32 to vector<32x1xf32>
    %189 = arith.divf %187, %188 : vector<32x1xf32>
    %190 = vector.broadcast %189 : vector<32x1xf32> to vector<32x32xf32>
    %191 = arith.subf %183, %190 : vector<32x32xf32>
    %192 = arith.mulf %191, %191 : vector<32x32xf32>
    %cst_110 = arith.constant dense<0.000000e+00> : vector<32xf32>
    %193 = vector.multi_reduction <add>, %192, %cst_110 [1] : vector<32x32xf32> to vector<32xf32>
    %194 = vector.shape_cast %193 : vector<32xf32> to vector<32x1xf32>
    %cst_111 = arith.constant 3.200000e+01 : f32
    %195 = vector.broadcast %cst_111 : f32 to vector<32x1xf32>
    %196 = arith.divf %194, %195 : vector<32x1xf32>
    %197 = vector.broadcast %189 : vector<32x1xf32> to vector<32x32xf32>
    %198 = arith.subf %183, %197 : vector<32x32xf32>
    %cst_112 = arith.constant 9.99999974E-6 : f32
    %199 = vector.broadcast %cst_112 : f32 to vector<32x1xf32>
    %200 = arith.addf %196, %199 : vector<32x1xf32>
    %201 = math.rsqrt %200 : vector<32x1xf32>
    %202 = vector.broadcast %201 : vector<32x1xf32> to vector<32x32xf32>
    %203 = arith.mulf %198, %202 : vector<32x32xf32>
    %204 = vector.broadcast %184 : vector<1x32xf32> to vector<32x32xf32>
    %205 = arith.mulf %203, %204 : vector<32x32xf32>
    %206 = vector.broadcast %185 : vector<1x32xf32> to vector<32x32xf32>
    %207 = arith.addf %205, %206 : vector<32x32xf32>
    %208 = vector.shape_cast %207 : vector<32x32xf32> to vector<2x16x32xf32>
    %cst_113 = arith.constant dense<0.000000e+00> : vector<2x32xf32>
    %209 = vector.multi_reduction <add>, %208, %cst_113 [1] : vector<2x16x32xf32> to vector<2x32xf32>
    %cst_114 = arith.constant 1.600000e+01 : f32
    %210 = vector.broadcast %cst_114 : f32 to vector<2x32xf32>
    %211 = arith.divf %209, %210 : vector<2x32xf32>
    %c0_115 = arith.constant 0 : index
    %c0_116 = arith.constant 0 : index
    %212 = vector.load %arg21[%c0_115, %c0_116] : memref<32x32xf32, #tpu.memory_space<vmem>>, vector<32x32xf32>
    %cst_117 = arith.constant dense<0.000000e+00> : vector<2x32xf32>
    %213 = tpu.matmul %211, %212, %cst_117 {dimension_numbers = #tpu.dot_dimension_numbers<[1], [0], [0], [1], [0, 0, 1, 1], [], []>} : vector<2x32xf32>, vector<32x32xf32>, vector<2x32xf32> -> vector<2x32xf32>
    %c2_118 = arith.constant 2 : index
    %c0_119 = arith.constant 0 : index
    %214 = vector.load %arg24[%c2_118, %c0_119] : memref<3x32xf32, #tpu.memory_space<vmem>>, vector<1x32xf32>
    %215 = vector.broadcast %214 : vector<1x32xf32> to vector<2x32xf32>
    %216 = arith.addf %213, %215 : vector<2x32xf32>
    %c0_120 = arith.constant 0 : index
    %c0_121 = arith.constant 0 : index
    %c0_122 = arith.constant 0 : index
    %217 = vector.load %arg2[%c0_120, %c0_121, %c0_122] : memref<2x1x4xf32, #tpu.memory_space<vmem>>, vector<2x1x4xf32>
    %218 = vector.shape_cast %217 : vector<2x1x4xf32> to vector<2x4xf32>
    %c0_123 = arith.constant 0 : index
    %c0_124 = arith.constant 0 : index
    %219 = vector.load %arg4[%c0_123, %c0_124] : memref<4x8xf32, #tpu.memory_space<vmem>>, vector<4x8xf32>
    %cst_125 = arith.constant dense<0.000000e+00> : vector<2x8xf32>
    %220 = tpu.matmul %218, %219, %cst_125 {dimension_numbers = #tpu.dot_dimension_numbers<[1], [0], [0], [1], [0, 0, 1, 1], [], []>} : vector<2x4xf32>, vector<4x8xf32>, vector<2x8xf32> -> vector<2x8xf32>
    %c0_126 = arith.constant 0 : index
    %c0_127 = arith.constant 0 : index
    %221 = vector.load %arg3[%c0_126, %c0_127] : memref<1x8xf32, #tpu.memory_space<vmem>>, vector<1x8xf32>
    %222 = vector.broadcast %221 : vector<1x8xf32> to vector<2x8xf32>
    %223 = arith.addf %220, %222 : vector<2x8xf32>
    %c0_128 = arith.constant 0 : index
    %c0_129 = arith.constant 0 : index
    %224 = vector.load %arg29[%c0_128, %c0_129] : memref<32x64xf32, #tpu.memory_space<vmem>>, vector<32x64xf32>
    %cst_130 = arith.constant dense<0.000000e+00> : vector<2x64xf32>
    %225 = tpu.matmul %216, %224, %cst_130 {dimension_numbers = #tpu.dot_dimension_numbers<[1], [0], [0], [1], [0, 0, 1, 1], [], []>} : vector<2x32xf32>, vector<32x64xf32>, vector<2x64xf32> -> vector<2x64xf32>
    %c0_131 = arith.constant 0 : index
    %c0_132 = arith.constant 0 : index
    %226 = vector.load %arg27[%c0_131, %c0_132] : memref<8x64xf32, #tpu.memory_space<vmem>>, vector<8x64xf32>
    %cst_133 = arith.constant dense<0.000000e+00> : vector<2x64xf32>
    %227 = tpu.matmul %223, %226, %cst_133 {dimension_numbers = #tpu.dot_dimension_numbers<[1], [0], [0], [1], [0, 0, 1, 1], [], []>} : vector<2x8xf32>, vector<8x64xf32>, vector<2x64xf32> -> vector<2x64xf32>
    %228 = arith.addf %225, %227 : vector<2x64xf32>
    %c0_134 = arith.constant 0 : index
    %c0_135 = arith.constant 0 : index
    %229 = vector.load %arg26[%c0_134, %c0_135] : memref<3x64xf32, #tpu.memory_space<vmem>>, vector<1x64xf32>
    %230 = vector.broadcast %229 : vector<1x64xf32> to vector<2x64xf32>
    %231 = arith.addf %228, %230 : vector<2x64xf32>
    %cst_136 = arith.constant 5.000000e-01 : f32
    %232 = vector.broadcast %cst_136 : f32 to vector<2x64xf32>
    %233 = arith.mulf %232, %231 : vector<2x64xf32>
    %cst_137 = arith.constant 4.471500e-02 : f32
    %234 = vector.broadcast %cst_137 : f32 to vector<2x64xf32>
    %235 = arith.mulf %234, %231 : vector<2x64xf32>
    %236 = arith.mulf %235, %231 : vector<2x64xf32>
    %237 = arith.mulf %236, %231 : vector<2x64xf32>
    %238 = arith.addf %231, %237 : vector<2x64xf32>
    %cst_138 = arith.constant 0.797884583 : f32
    %239 = vector.broadcast %cst_138 : f32 to vector<2x64xf32>
    %240 = arith.mulf %239, %238 : vector<2x64xf32>
    %241 = math.tanh %240 : vector<2x64xf32>
    %cst_139 = arith.constant 1.000000e+00 : f32
    %242 = vector.broadcast %cst_139 : f32 to vector<2x64xf32>
    %243 = arith.addf %242, %241 : vector<2x64xf32>
    %244 = arith.mulf %233, %243 : vector<2x64xf32>
    %c0_140 = arith.constant 0 : index
    %c0_141 = arith.constant 0 : index
    %245 = vector.load %arg28[%c0_140, %c0_141] : memref<64x64xf32, #tpu.memory_space<vmem>>, vector<64x64xf32>
    %cst_142 = arith.constant dense<0.000000e+00> : vector<2x64xf32>
    %246 = tpu.matmul %244, %245, %cst_142 {dimension_numbers = #tpu.dot_dimension_numbers<[1], [0], [0], [1], [0, 0, 1, 1], [], []>} : vector<2x64xf32>, vector<64x64xf32>, vector<2x64xf32> -> vector<2x64xf32>
    %c1_143 = arith.constant 1 : index
    %c0_144 = arith.constant 0 : index
    %247 = vector.load %arg26[%c1_143, %c0_144] : memref<3x64xf32, #tpu.memory_space<vmem>>, vector<1x64xf32>
    %248 = vector.broadcast %247 : vector<1x64xf32> to vector<2x64xf32>
    %249 = arith.addf %246, %248 : vector<2x64xf32>
    %cst_145 = arith.constant 5.000000e-01 : f32
    %250 = vector.broadcast %cst_145 : f32 to vector<2x64xf32>
    %251 = arith.mulf %250, %249 : vector<2x64xf32>
    %cst_146 = arith.constant 4.471500e-02 : f32
    %252 = vector.broadcast %cst_146 : f32 to vector<2x64xf32>
    %253 = arith.mulf %252, %249 : vector<2x64xf32>
    %254 = arith.mulf %253, %249 : vector<2x64xf32>
    %255 = arith.mulf %254, %249 : vector<2x64xf32>
    %256 = arith.addf %249, %255 : vector<2x64xf32>
    %cst_147 = arith.constant 0.797884583 : f32
    %257 = vector.broadcast %cst_147 : f32 to vector<2x64xf32>
    %258 = arith.mulf %257, %256 : vector<2x64xf32>
    %259 = math.tanh %258 : vector<2x64xf32>
    %cst_148 = arith.constant 1.000000e+00 : f32
    %260 = vector.broadcast %cst_148 : f32 to vector<2x64xf32>
    %261 = arith.addf %260, %259 : vector<2x64xf32>
    %262 = arith.mulf %251, %261 : vector<2x64xf32>
    %c0_149 = arith.constant 0 : index
    %c0_150 = arith.constant 0 : index
    %263 = vector.load %arg25[%c0_149, %c0_150] : memref<64x32xf32, #tpu.memory_space<vmem>>, vector<64x32xf32>
    %cst_151 = arith.constant dense<0.000000e+00> : vector<2x32xf32>
    %264 = tpu.matmul %262, %263, %cst_151 {dimension_numbers = #tpu.dot_dimension_numbers<[1], [0], [0], [1], [0, 0, 1, 1], [], []>} : vector<2x64xf32>, vector<64x32xf32>, vector<2x32xf32> -> vector<2x32xf32>
    %c2_152 = arith.constant 2 : index
    %c0_153 = arith.constant 0 : index
    %265 = vector.load %arg26[%c2_152, %c0_153] : memref<3x64xf32, #tpu.memory_space<vmem>>, vector<1x32xf32>
    %266 = vector.broadcast %265 : vector<1x32xf32> to vector<2x32xf32>
    %267 = arith.addf %264, %266 : vector<2x32xf32>
    %c0_154 = arith.constant 0 : index
    %c0_155 = arith.constant 0 : index
    %268 = vector.load %arg11[%c0_154, %c0_155] : memref<32x32xf32, #tpu.memory_space<vmem>>, vector<32x32xf32>
    %cst_156 = arith.constant dense<0.000000e+00> : vector<2x32xf32>
    %269 = tpu.matmul %267, %268, %cst_156 {dimension_numbers = #tpu.dot_dimension_numbers<[1], [0], [0], [1], [0, 0, 1, 1], [], []>} : vector<2x32xf32>, vector<32x32xf32>, vector<2x32xf32> -> vector<2x32xf32>
    %c0_157 = arith.constant 0 : index
    %c0_158 = arith.constant 0 : index
    %270 = vector.load %arg13[%c0_157, %c0_158] : memref<16x32xf32, #tpu.memory_space<vmem>>, vector<16x32xf32>
    %271 = vector.shape_cast %270 : vector<16x32xf32> to vector<1x16x32xf32>
    %272 = vector.shape_cast %269 : vector<2x32xf32> to vector<2x1x32xf32>
    %273 = vector.broadcast %271 : vector<1x16x32xf32> to vector<2x16x32xf32>
    %274 = vector.broadcast %272 : vector<2x1x32xf32> to vector<2x16x32xf32>
    %275 = arith.addf %273, %274 : vector<2x16x32xf32>
    %c0_159 = arith.constant 0 : index
    %c0_160 = arith.constant 0 : index
    %c0_161 = arith.constant 0 : index
    %276 = vector.load %arg7[%c0_159, %c0_160, %c0_161] : memref<2x8x64xf32, #tpu.memory_space<vmem>>, vector<1x1x32xf32>
    %277 = vector.shape_cast %276 : vector<1x1x32xf32> to vector<1x32xf32>
    %c0_162 = arith.constant 0 : index
    %c1_163 = arith.constant 1 : index
    %c0_164 = arith.constant 0 : index
    %278 = vector.load %arg7[%c0_162, %c1_163, %c0_164] : memref<2x8x64xf32, #tpu.memory_space<vmem>>, vector<1x1x32xf32>
    %279 = vector.shape_cast %278 : vector<1x1x32xf32> to vector<1x32xf32>
    %c0_165 = arith.constant 0 : index
    %c2_166 = arith.constant 2 : index
    %c0_167 = arith.constant 0 : index
    %280 = vector.load %arg7[%c0_165, %c2_166, %c0_167] : memref<2x8x64xf32, #tpu.memory_space<vmem>>, vector<1x1x32xf32>
    %281 = vector.shape_cast %280 : vector<1x1x32xf32> to vector<1x32xf32>
    %c0_168 = arith.constant 0 : index
    %c3_169 = arith.constant 3 : index
    %c0_170 = arith.constant 0 : index
    %282 = vector.load %arg7[%c0_168, %c3_169, %c0_170] : memref<2x8x64xf32, #tpu.memory_space<vmem>>, vector<1x1x32xf32>
    %283 = vector.shape_cast %282 : vector<1x1x32xf32> to vector<1x32xf32>
    %c0_171 = arith.constant 0 : index
    %c4_172 = arith.constant 4 : index
    %c0_173 = arith.constant 0 : index
    %284 = vector.load %arg7[%c0_171, %c4_172, %c0_173] : memref<2x8x64xf32, #tpu.memory_space<vmem>>, vector<1x1x32xf32>
    %285 = vector.shape_cast %284 : vector<1x1x32xf32> to vector<1x32xf32>
    %c0_174 = arith.constant 0 : index
    %c5_175 = arith.constant 5 : index
    %c0_176 = arith.constant 0 : index
    %286 = vector.load %arg7[%c0_174, %c5_175, %c0_176] : memref<2x8x64xf32, #tpu.memory_space<vmem>>, vector<1x1x32xf32>
    %287 = vector.shape_cast %286 : vector<1x1x32xf32> to vector<1x32xf32>
    %c0_177 = arith.constant 0 : index
    %c6_178 = arith.constant 6 : index
    %c0_179 = arith.constant 0 : index
    %288 = vector.load %arg7[%c0_177, %c6_178, %c0_179] : memref<2x8x64xf32, #tpu.memory_space<vmem>>, vector<1x1x64xf32>
    %289 = vector.shape_cast %288 : vector<1x1x64xf32> to vector<1x64xf32>
    %290 = vector.shape_cast %275 : vector<2x16x32xf32> to vector<32x32xf32>
    %cst_180 = arith.constant dense<0.000000e+00> : vector<32xf32>
    %291 = vector.multi_reduction <add>, %290, %cst_180 [1] : vector<32x32xf32> to vector<32xf32>
    %292 = vector.shape_cast %291 : vector<32xf32> to vector<32x1xf32>
    %cst_181 = arith.constant 3.200000e+01 : f32
    %293 = vector.broadcast %cst_181 : f32 to vector<32x1xf32>
    %294 = arith.divf %292, %293 : vector<32x1xf32>
    %295 = vector.broadcast %294 : vector<32x1xf32> to vector<32x32xf32>
    %296 = arith.subf %290, %295 : vector<32x32xf32>
    %297 = arith.mulf %296, %296 : vector<32x32xf32>
    %cst_182 = arith.constant dense<0.000000e+00> : vector<32xf32>
    %298 = vector.multi_reduction <add>, %297, %cst_182 [1] : vector<32x32xf32> to vector<32xf32>
    %299 = vector.shape_cast %298 : vector<32xf32> to vector<32x1xf32>
    %cst_183 = arith.constant 3.200000e+01 : f32
    %300 = vector.broadcast %cst_183 : f32 to vector<32x1xf32>
    %301 = arith.divf %299, %300 : vector<32x1xf32>
    %302 = vector.broadcast %294 : vector<32x1xf32> to vector<32x32xf32>
    %303 = arith.subf %290, %302 : vector<32x32xf32>
    %cst_184 = arith.constant 9.99999974E-6 : f32
    %304 = vector.broadcast %cst_184 : f32 to vector<32x1xf32>
    %305 = arith.addf %301, %304 : vector<32x1xf32>
    %306 = math.rsqrt %305 : vector<32x1xf32>
    %307 = vector.broadcast %306 : vector<32x1xf32> to vector<32x32xf32>
    %308 = arith.mulf %303, %307 : vector<32x32xf32>
    %309 = vector.broadcast %277 : vector<1x32xf32> to vector<32x32xf32>
    %310 = arith.mulf %308, %309 : vector<32x32xf32>
    %311 = vector.broadcast %279 : vector<1x32xf32> to vector<32x32xf32>
    %312 = arith.addf %310, %311 : vector<32x32xf32>
    %cst_185 = arith.constant 0.000000e+00 : f32
    %313 = vector.broadcast %cst_185 : f32 to vector<32x32xf32>
    %c0_186 = arith.constant 0 : index
    %c0_187 = arith.constant 0 : index
    %c0_188 = arith.constant 0 : index
    %314 = vector.load %arg6[%c0_186, %c0_187, %c0_188] : memref<12x32x16xf32, #tpu.memory_space<vmem>>, vector<1x32x16xf32>
    %315 = vector.shape_cast %314 : vector<1x32x16xf32> to vector<32x16xf32>
    %cst_189 = arith.constant dense<0.000000e+00> : vector<32x16xf32>
    %316 = tpu.matmul %312, %315, %cst_189 {dimension_numbers = #tpu.dot_dimension_numbers<[1], [0], [0], [1], [0, 0, 1, 1], [], []>} : vector<32x32xf32>, vector<32x16xf32>, vector<32x16xf32> -> vector<32x16xf32>
    %c0_190 = arith.constant 0 : index
    %c0_191 = arith.constant 0 : index
    %c0_192 = arith.constant 0 : index
    %317 = vector.load %arg5[%c0_190, %c0_191, %c0_192] : memref<12x1x16xf32, #tpu.memory_space<vmem>>, vector<1x1x16xf32>
    %318 = vector.shape_cast %317 : vector<1x1x16xf32> to vector<1x16xf32>
    %319 = vector.broadcast %318 : vector<1x16xf32> to vector<32x16xf32>
    %320 = arith.addf %316, %319 : vector<32x16xf32>
    %c2_193 = arith.constant 2 : index
    %c0_194 = arith.constant 0 : index
    %c0_195 = arith.constant 0 : index
    %321 = vector.load %arg6[%c2_193, %c0_194, %c0_195] : memref<12x32x16xf32, #tpu.memory_space<vmem>>, vector<1x32x16xf32>
    %322 = vector.shape_cast %321 : vector<1x32x16xf32> to vector<32x16xf32>
    %cst_196 = arith.constant dense<0.000000e+00> : vector<32x16xf32>
    %323 = tpu.matmul %312, %322, %cst_196 {dimension_numbers = #tpu.dot_dimension_numbers<[1], [0], [0], [1], [0, 0, 1, 1], [], []>} : vector<32x32xf32>, vector<32x16xf32>, vector<32x16xf32> -> vector<32x16xf32>
    %c2_197 = arith.constant 2 : index
    %c0_198 = arith.constant 0 : index
    %c0_199 = arith.constant 0 : index
    %324 = vector.load %arg5[%c2_197, %c0_198, %c0_199] : memref<12x1x16xf32, #tpu.memory_space<vmem>>, vector<1x1x16xf32>
    %325 = vector.shape_cast %324 : vector<1x1x16xf32> to vector<1x16xf32>
    %326 = vector.broadcast %325 : vector<1x16xf32> to vector<32x16xf32>
    %327 = arith.addf %323, %326 : vector<32x16xf32>
    %c4_200 = arith.constant 4 : index
    %c0_201 = arith.constant 0 : index
    %c0_202 = arith.constant 0 : index
    %328 = vector.load %arg6[%c4_200, %c0_201, %c0_202] : memref<12x32x16xf32, #tpu.memory_space<vmem>>, vector<1x32x16xf32>
    %329 = vector.shape_cast %328 : vector<1x32x16xf32> to vector<32x16xf32>
    %cst_203 = arith.constant dense<0.000000e+00> : vector<32x16xf32>
    %330 = tpu.matmul %312, %329, %cst_203 {dimension_numbers = #tpu.dot_dimension_numbers<[1], [0], [0], [1], [0, 0, 1, 1], [], []>} : vector<32x32xf32>, vector<32x16xf32>, vector<32x16xf32> -> vector<32x16xf32>
    %c4_204 = arith.constant 4 : index
    %c0_205 = arith.constant 0 : index
    %c0_206 = arith.constant 0 : index
    %331 = vector.load %arg5[%c4_204, %c0_205, %c0_206] : memref<12x1x16xf32, #tpu.memory_space<vmem>>, vector<1x1x16xf32>
    %332 = vector.shape_cast %331 : vector<1x1x16xf32> to vector<1x16xf32>
    %333 = vector.broadcast %332 : vector<1x16xf32> to vector<32x16xf32>
    %334 = arith.addf %330, %333 : vector<32x16xf32>
    %335 = vector.shape_cast %320 : vector<32x16xf32> to vector<2x16x16xf32>
    %336 = vector.shape_cast %327 : vector<32x16xf32> to vector<2x16x16xf32>
    %337 = vector.shape_cast %334 : vector<32x16xf32> to vector<2x16x16xf32>
    "tpu.trace_start"() <{level = 10 : i32, message = "bqd,bkd->bqk"}> : () -> ()
    %cst_207 = arith.constant dense<0.000000e+00> : vector<2x16x16xf32>
    %338 = tpu.matmul %335, %336, %cst_207 {dimension_numbers = #tpu.dot_dimension_numbers<[2], [2], [1], [1], [0, 0, 0, 1, 1, 1], [0], [0]>} : vector<2x16x16xf32>, vector<2x16x16xf32>, vector<2x16x16xf32> -> vector<2x16x16xf32>
    "tpu.trace_stop"() : () -> ()
    %cst_208 = arith.constant 2.500000e-01 : f32
    %339 = vector.broadcast %cst_208 : f32 to vector<2x16x16xf32>
    %340 = arith.mulf %338, %339 : vector<2x16x16xf32>
    %cst_209 = arith.constant dense<0xFF800000> : vector<2x16xf32>
    %341 = vector.multi_reduction <maximumf>, %340, %cst_209 [2] : vector<2x16x16xf32> to vector<2x16xf32>
    %342 = vector.shape_cast %341 : vector<2x16xf32> to vector<2x16x1xf32>
    %343 = vector.broadcast %342 : vector<2x16x1xf32> to vector<2x16x16xf32>
    %344 = arith.subf %340, %343 : vector<2x16x16xf32>
    %345 = math.exp %344 : vector<2x16x16xf32>
    %cst_210 = arith.constant dense<0.000000e+00> : vector<2x16xf32>
    %346 = vector.multi_reduction <add>, %345, %cst_210 [2] : vector<2x16x16xf32> to vector<2x16xf32>
    %347 = vector.shape_cast %346 : vector<2x16xf32> to vector<2x16x1xf32>
    %348 = tpu.reciprocal %347 {approx = true} : vector<2x16x1xf32> -> vector<2x16x1xf32>
    %349 = vector.broadcast %348 : vector<2x16x1xf32> to vector<2x16x16xf32>
    %350 = arith.mulf %345, %349 : vector<2x16x16xf32>
    "tpu.trace_start"() <{level = 10 : i32, message = "bqk,bkd->bqd"}> : () -> ()
    %cst_211 = arith.constant dense<0.000000e+00> : vector<2x16x16xf32>
    %351 = tpu.matmul %350, %337, %cst_211 {dimension_numbers = #tpu.dot_dimension_numbers<[2], [1], [1], [2], [0, 0, 0, 1, 1, 2], [0], [0]>} : vector<2x16x16xf32>, vector<2x16x16xf32>, vector<2x16x16xf32> -> vector<2x16x16xf32>
    "tpu.trace_stop"() : () -> ()
    %352 = vector.shape_cast %351 : vector<2x16x16xf32> to vector<32x16xf32>
    %c0_212 = arith.constant 0 : index
    %c0_213 = arith.constant 0 : index
    %c0_214 = arith.constant 0 : index
    %353 = vector.load %arg10[%c0_212, %c0_213, %c0_214] : memref<4x16x32xf32, #tpu.memory_space<vmem>>, vector<1x16x32xf32>
    %354 = vector.shape_cast %353 : vector<1x16x32xf32> to vector<16x32xf32>
    %cst_215 = arith.constant dense<0.000000e+00> : vector<32x32xf32>
    %355 = tpu.matmul %352, %354, %cst_215 {dimension_numbers = #tpu.dot_dimension_numbers<[1], [0], [0], [1], [0, 0, 1, 1], [], []>} : vector<32x16xf32>, vector<16x32xf32>, vector<32x32xf32> -> vector<32x32xf32>
    %356 = arith.addf %313, %355 : vector<32x32xf32>
    %c1_216 = arith.constant 1 : index
    %c0_217 = arith.constant 0 : index
    %c0_218 = arith.constant 0 : index
    %357 = vector.load %arg6[%c1_216, %c0_217, %c0_218] : memref<12x32x16xf32, #tpu.memory_space<vmem>>, vector<1x32x16xf32>
    %358 = vector.shape_cast %357 : vector<1x32x16xf32> to vector<32x16xf32>
    %cst_219 = arith.constant dense<0.000000e+00> : vector<32x16xf32>
    %359 = tpu.matmul %312, %358, %cst_219 {dimension_numbers = #tpu.dot_dimension_numbers<[1], [0], [0], [1], [0, 0, 1, 1], [], []>} : vector<32x32xf32>, vector<32x16xf32>, vector<32x16xf32> -> vector<32x16xf32>
    %c1_220 = arith.constant 1 : index
    %c0_221 = arith.constant 0 : index
    %c0_222 = arith.constant 0 : index
    %360 = vector.load %arg5[%c1_220, %c0_221, %c0_222] : memref<12x1x16xf32, #tpu.memory_space<vmem>>, vector<1x1x16xf32>
    %361 = vector.shape_cast %360 : vector<1x1x16xf32> to vector<1x16xf32>
    %362 = vector.broadcast %361 : vector<1x16xf32> to vector<32x16xf32>
    %363 = arith.addf %359, %362 : vector<32x16xf32>
    %c3_223 = arith.constant 3 : index
    %c0_224 = arith.constant 0 : index
    %c0_225 = arith.constant 0 : index
    %364 = vector.load %arg6[%c3_223, %c0_224, %c0_225] : memref<12x32x16xf32, #tpu.memory_space<vmem>>, vector<1x32x16xf32>
    %365 = vector.shape_cast %364 : vector<1x32x16xf32> to vector<32x16xf32>
    %cst_226 = arith.constant dense<0.000000e+00> : vector<32x16xf32>
    %366 = tpu.matmul %312, %365, %cst_226 {dimension_numbers = #tpu.dot_dimension_numbers<[1], [0], [0], [1], [0, 0, 1, 1], [], []>} : vector<32x32xf32>, vector<32x16xf32>, vector<32x16xf32> -> vector<32x16xf32>
    %c3_227 = arith.constant 3 : index
    %c0_228 = arith.constant 0 : index
    %c0_229 = arith.constant 0 : index
    %367 = vector.load %arg5[%c3_227, %c0_228, %c0_229] : memref<12x1x16xf32, #tpu.memory_space<vmem>>, vector<1x1x16xf32>
    %368 = vector.shape_cast %367 : vector<1x1x16xf32> to vector<1x16xf32>
    %369 = vector.broadcast %368 : vector<1x16xf32> to vector<32x16xf32>
    %370 = arith.addf %366, %369 : vector<32x16xf32>
    %c5_230 = arith.constant 5 : index
    %c0_231 = arith.constant 0 : index
    %c0_232 = arith.constant 0 : index
    %371 = vector.load %arg6[%c5_230, %c0_231, %c0_232] : memref<12x32x16xf32, #tpu.memory_space<vmem>>, vector<1x32x16xf32>
    %372 = vector.shape_cast %371 : vector<1x32x16xf32> to vector<32x16xf32>
    %cst_233 = arith.constant dense<0.000000e+00> : vector<32x16xf32>
    %373 = tpu.matmul %312, %372, %cst_233 {dimension_numbers = #tpu.dot_dimension_numbers<[1], [0], [0], [1], [0, 0, 1, 1], [], []>} : vector<32x32xf32>, vector<32x16xf32>, vector<32x16xf32> -> vector<32x16xf32>
    %c5_234 = arith.constant 5 : index
    %c0_235 = arith.constant 0 : index
    %c0_236 = arith.constant 0 : index
    %374 = vector.load %arg5[%c5_234, %c0_235, %c0_236] : memref<12x1x16xf32, #tpu.memory_space<vmem>>, vector<1x1x16xf32>
    %375 = vector.shape_cast %374 : vector<1x1x16xf32> to vector<1x16xf32>
    %376 = vector.broadcast %375 : vector<1x16xf32> to vector<32x16xf32>
    %377 = arith.addf %373, %376 : vector<32x16xf32>
    %378 = vector.shape_cast %363 : vector<32x16xf32> to vector<2x16x16xf32>
    %379 = vector.shape_cast %370 : vector<32x16xf32> to vector<2x16x16xf32>
    %380 = vector.shape_cast %377 : vector<32x16xf32> to vector<2x16x16xf32>
    "tpu.trace_start"() <{level = 10 : i32, message = "bqd,bkd->bqk"}> : () -> ()
    %cst_237 = arith.constant dense<0.000000e+00> : vector<2x16x16xf32>
    %381 = tpu.matmul %378, %379, %cst_237 {dimension_numbers = #tpu.dot_dimension_numbers<[2], [2], [1], [1], [0, 0, 0, 1, 1, 1], [0], [0]>} : vector<2x16x16xf32>, vector<2x16x16xf32>, vector<2x16x16xf32> -> vector<2x16x16xf32>
    "tpu.trace_stop"() : () -> ()
    %cst_238 = arith.constant 2.500000e-01 : f32
    %382 = vector.broadcast %cst_238 : f32 to vector<2x16x16xf32>
    %383 = arith.mulf %381, %382 : vector<2x16x16xf32>
    %cst_239 = arith.constant dense<0xFF800000> : vector<2x16xf32>
    %384 = vector.multi_reduction <maximumf>, %383, %cst_239 [2] : vector<2x16x16xf32> to vector<2x16xf32>
    %385 = vector.shape_cast %384 : vector<2x16xf32> to vector<2x16x1xf32>
    %386 = vector.broadcast %385 : vector<2x16x1xf32> to vector<2x16x16xf32>
    %387 = arith.subf %383, %386 : vector<2x16x16xf32>
    %388 = math.exp %387 : vector<2x16x16xf32>
    %cst_240 = arith.constant dense<0.000000e+00> : vector<2x16xf32>
    %389 = vector.multi_reduction <add>, %388, %cst_240 [2] : vector<2x16x16xf32> to vector<2x16xf32>
    %390 = vector.shape_cast %389 : vector<2x16xf32> to vector<2x16x1xf32>
    %391 = tpu.reciprocal %390 {approx = true} : vector<2x16x1xf32> -> vector<2x16x1xf32>
    %392 = vector.broadcast %391 : vector<2x16x1xf32> to vector<2x16x16xf32>
    %393 = arith.mulf %388, %392 : vector<2x16x16xf32>
    "tpu.trace_start"() <{level = 10 : i32, message = "bqk,bkd->bqd"}> : () -> ()
    %cst_241 = arith.constant dense<0.000000e+00> : vector<2x16x16xf32>
    %394 = tpu.matmul %393, %380, %cst_241 {dimension_numbers = #tpu.dot_dimension_numbers<[2], [1], [1], [2], [0, 0, 0, 1, 1, 2], [0], [0]>} : vector<2x16x16xf32>, vector<2x16x16xf32>, vector<2x16x16xf32> -> vector<2x16x16xf32>
    "tpu.trace_stop"() : () -> ()
    %395 = vector.shape_cast %394 : vector<2x16x16xf32> to vector<32x16xf32>
    %c1_242 = arith.constant 1 : index
    %c0_243 = arith.constant 0 : index
    %c0_244 = arith.constant 0 : index
    %396 = vector.load %arg10[%c1_242, %c0_243, %c0_244] : memref<4x16x32xf32, #tpu.memory_space<vmem>>, vector<1x16x32xf32>
    %397 = vector.shape_cast %396 : vector<1x16x32xf32> to vector<16x32xf32>
    %cst_245 = arith.constant dense<0.000000e+00> : vector<32x32xf32>
    %398 = tpu.matmul %395, %397, %cst_245 {dimension_numbers = #tpu.dot_dimension_numbers<[1], [0], [0], [1], [0, 0, 1, 1], [], []>} : vector<32x16xf32>, vector<16x32xf32>, vector<32x32xf32> -> vector<32x32xf32>
    %399 = arith.addf %356, %398 : vector<32x32xf32>
    %400 = arith.addf %290, %399 : vector<32x32xf32>
    %401 = vector.broadcast %285 : vector<1x32xf32> to vector<32x32xf32>
    %402 = arith.addf %400, %401 : vector<32x32xf32>
    %cst_246 = arith.constant dense<0.000000e+00> : vector<32xf32>
    %403 = vector.multi_reduction <add>, %402, %cst_246 [1] : vector<32x32xf32> to vector<32xf32>
    %404 = vector.shape_cast %403 : vector<32xf32> to vector<32x1xf32>
    %cst_247 = arith.constant 3.200000e+01 : f32
    %405 = vector.broadcast %cst_247 : f32 to vector<32x1xf32>
    %406 = arith.divf %404, %405 : vector<32x1xf32>
    %407 = vector.broadcast %406 : vector<32x1xf32> to vector<32x32xf32>
    %408 = arith.subf %402, %407 : vector<32x32xf32>
    %409 = arith.mulf %408, %408 : vector<32x32xf32>
    %cst_248 = arith.constant dense<0.000000e+00> : vector<32xf32>
    %410 = vector.multi_reduction <add>, %409, %cst_248 [1] : vector<32x32xf32> to vector<32xf32>
    %411 = vector.shape_cast %410 : vector<32xf32> to vector<32x1xf32>
    %cst_249 = arith.constant 3.200000e+01 : f32
    %412 = vector.broadcast %cst_249 : f32 to vector<32x1xf32>
    %413 = arith.divf %411, %412 : vector<32x1xf32>
    %414 = vector.broadcast %406 : vector<32x1xf32> to vector<32x32xf32>
    %415 = arith.subf %402, %414 : vector<32x32xf32>
    %cst_250 = arith.constant 9.99999974E-6 : f32
    %416 = vector.broadcast %cst_250 : f32 to vector<32x1xf32>
    %417 = arith.addf %413, %416 : vector<32x1xf32>
    %418 = math.rsqrt %417 : vector<32x1xf32>
    %419 = vector.broadcast %418 : vector<32x1xf32> to vector<32x32xf32>
    %420 = arith.mulf %415, %419 : vector<32x32xf32>
    %421 = vector.broadcast %281 : vector<1x32xf32> to vector<32x32xf32>
    %422 = arith.mulf %420, %421 : vector<32x32xf32>
    %423 = vector.broadcast %283 : vector<1x32xf32> to vector<32x32xf32>
    %424 = arith.addf %422, %423 : vector<32x32xf32>
    %c0_251 = arith.constant 0 : index
    %c0_252 = arith.constant 0 : index
    %c0_253 = arith.constant 0 : index
    %425 = vector.load %arg8[%c0_251, %c0_252, %c0_253] : memref<2x32x64xf32, #tpu.memory_space<vmem>>, vector<1x32x64xf32>
    %426 = vector.shape_cast %425 : vector<1x32x64xf32> to vector<32x64xf32>
    %cst_254 = arith.constant dense<0.000000e+00> : vector<32x64xf32>
    %427 = tpu.matmul %424, %426, %cst_254 {dimension_numbers = #tpu.dot_dimension_numbers<[1], [0], [0], [1], [0, 0, 1, 1], [], []>} : vector<32x32xf32>, vector<32x64xf32>, vector<32x64xf32> -> vector<32x64xf32>
    %428 = vector.broadcast %289 : vector<1x64xf32> to vector<32x64xf32>
    %429 = arith.addf %427, %428 : vector<32x64xf32>
    %cst_255 = arith.constant 5.000000e-01 : f32
    %430 = vector.broadcast %cst_255 : f32 to vector<32x64xf32>
    %431 = arith.mulf %430, %429 : vector<32x64xf32>
    %cst_256 = arith.constant 4.471500e-02 : f32
    %432 = vector.broadcast %cst_256 : f32 to vector<32x64xf32>
    %433 = arith.mulf %432, %429 : vector<32x64xf32>
    %434 = arith.mulf %433, %429 : vector<32x64xf32>
    %435 = arith.mulf %434, %429 : vector<32x64xf32>
    %436 = arith.addf %429, %435 : vector<32x64xf32>
    %cst_257 = arith.constant 0.797884583 : f32
    %437 = vector.broadcast %cst_257 : f32 to vector<32x64xf32>
    %438 = arith.mulf %437, %436 : vector<32x64xf32>
    %439 = math.tanh %438 : vector<32x64xf32>
    %cst_258 = arith.constant 1.000000e+00 : f32
    %440 = vector.broadcast %cst_258 : f32 to vector<32x64xf32>
    %441 = arith.addf %440, %439 : vector<32x64xf32>
    %442 = arith.mulf %431, %441 : vector<32x64xf32>
    %c0_259 = arith.constant 0 : index
    %c0_260 = arith.constant 0 : index
    %c0_261 = arith.constant 0 : index
    %443 = vector.load %arg9[%c0_259, %c0_260, %c0_261] : memref<2x64x32xf32, #tpu.memory_space<vmem>>, vector<1x64x32xf32>
    %444 = vector.shape_cast %443 : vector<1x64x32xf32> to vector<64x32xf32>
    %cst_262 = arith.constant dense<0.000000e+00> : vector<32x32xf32>
    %445 = tpu.matmul %442, %444, %cst_262 {dimension_numbers = #tpu.dot_dimension_numbers<[1], [0], [0], [1], [0, 0, 1, 1], [], []>} : vector<32x64xf32>, vector<64x32xf32>, vector<32x32xf32> -> vector<32x32xf32>
    %446 = vector.broadcast %287 : vector<1x32xf32> to vector<32x32xf32>
    %447 = arith.addf %445, %446 : vector<32x32xf32>
    %448 = arith.addf %402, %447 : vector<32x32xf32>
    %449 = vector.shape_cast %448 : vector<32x32xf32> to vector<2x16x32xf32>
    %c1_263 = arith.constant 1 : index
    %c0_264 = arith.constant 0 : index
    %c0_265 = arith.constant 0 : index
    %450 = vector.load %arg7[%c1_263, %c0_264, %c0_265] : memref<2x8x64xf32, #tpu.memory_space<vmem>>, vector<1x1x32xf32>
    %451 = vector.shape_cast %450 : vector<1x1x32xf32> to vector<1x32xf32>
    %c1_266 = arith.constant 1 : index
    %c1_267 = arith.constant 1 : index
    %c0_268 = arith.constant 0 : index
    %452 = vector.load %arg7[%c1_266, %c1_267, %c0_268] : memref<2x8x64xf32, #tpu.memory_space<vmem>>, vector<1x1x32xf32>
    %453 = vector.shape_cast %452 : vector<1x1x32xf32> to vector<1x32xf32>
    %c1_269 = arith.constant 1 : index
    %c2_270 = arith.constant 2 : index
    %c0_271 = arith.constant 0 : index
    %454 = vector.load %arg7[%c1_269, %c2_270, %c0_271] : memref<2x8x64xf32, #tpu.memory_space<vmem>>, vector<1x1x32xf32>
    %455 = vector.shape_cast %454 : vector<1x1x32xf32> to vector<1x32xf32>
    %c1_272 = arith.constant 1 : index
    %c3_273 = arith.constant 3 : index
    %c0_274 = arith.constant 0 : index
    %456 = vector.load %arg7[%c1_272, %c3_273, %c0_274] : memref<2x8x64xf32, #tpu.memory_space<vmem>>, vector<1x1x32xf32>
    %457 = vector.shape_cast %456 : vector<1x1x32xf32> to vector<1x32xf32>
    %c1_275 = arith.constant 1 : index
    %c4_276 = arith.constant 4 : index
    %c0_277 = arith.constant 0 : index
    %458 = vector.load %arg7[%c1_275, %c4_276, %c0_277] : memref<2x8x64xf32, #tpu.memory_space<vmem>>, vector<1x1x32xf32>
    %459 = vector.shape_cast %458 : vector<1x1x32xf32> to vector<1x32xf32>
    %c1_278 = arith.constant 1 : index
    %c5_279 = arith.constant 5 : index
    %c0_280 = arith.constant 0 : index
    %460 = vector.load %arg7[%c1_278, %c5_279, %c0_280] : memref<2x8x64xf32, #tpu.memory_space<vmem>>, vector<1x1x32xf32>
    %461 = vector.shape_cast %460 : vector<1x1x32xf32> to vector<1x32xf32>
    %c1_281 = arith.constant 1 : index
    %c6_282 = arith.constant 6 : index
    %c0_283 = arith.constant 0 : index
    %462 = vector.load %arg7[%c1_281, %c6_282, %c0_283] : memref<2x8x64xf32, #tpu.memory_space<vmem>>, vector<1x1x64xf32>
    %463 = vector.shape_cast %462 : vector<1x1x64xf32> to vector<1x64xf32>
    %464 = vector.shape_cast %449 : vector<2x16x32xf32> to vector<32x32xf32>
    %cst_284 = arith.constant dense<0.000000e+00> : vector<32xf32>
    %465 = vector.multi_reduction <add>, %464, %cst_284 [1] : vector<32x32xf32> to vector<32xf32>
    %466 = vector.shape_cast %465 : vector<32xf32> to vector<32x1xf32>
    %cst_285 = arith.constant 3.200000e+01 : f32
    %467 = vector.broadcast %cst_285 : f32 to vector<32x1xf32>
    %468 = arith.divf %466, %467 : vector<32x1xf32>
    %469 = vector.broadcast %468 : vector<32x1xf32> to vector<32x32xf32>
    %470 = arith.subf %464, %469 : vector<32x32xf32>
    %471 = arith.mulf %470, %470 : vector<32x32xf32>
    %cst_286 = arith.constant dense<0.000000e+00> : vector<32xf32>
    %472 = vector.multi_reduction <add>, %471, %cst_286 [1] : vector<32x32xf32> to vector<32xf32>
    %473 = vector.shape_cast %472 : vector<32xf32> to vector<32x1xf32>
    %cst_287 = arith.constant 3.200000e+01 : f32
    %474 = vector.broadcast %cst_287 : f32 to vector<32x1xf32>
    %475 = arith.divf %473, %474 : vector<32x1xf32>
    %476 = vector.broadcast %468 : vector<32x1xf32> to vector<32x32xf32>
    %477 = arith.subf %464, %476 : vector<32x32xf32>
    %cst_288 = arith.constant 9.99999974E-6 : f32
    %478 = vector.broadcast %cst_288 : f32 to vector<32x1xf32>
    %479 = arith.addf %475, %478 : vector<32x1xf32>
    %480 = math.rsqrt %479 : vector<32x1xf32>
    %481 = vector.broadcast %480 : vector<32x1xf32> to vector<32x32xf32>
    %482 = arith.mulf %477, %481 : vector<32x32xf32>
    %483 = vector.broadcast %451 : vector<1x32xf32> to vector<32x32xf32>
    %484 = arith.mulf %482, %483 : vector<32x32xf32>
    %485 = vector.broadcast %453 : vector<1x32xf32> to vector<32x32xf32>
    %486 = arith.addf %484, %485 : vector<32x32xf32>
    %cst_289 = arith.constant 0.000000e+00 : f32
    %487 = vector.broadcast %cst_289 : f32 to vector<32x32xf32>
    %c6_290 = arith.constant 6 : index
    %c0_291 = arith.constant 0 : index
    %c0_292 = arith.constant 0 : index
    %488 = vector.load %arg6[%c6_290, %c0_291, %c0_292] : memref<12x32x16xf32, #tpu.memory_space<vmem>>, vector<1x32x16xf32>
    %489 = vector.shape_cast %488 : vector<1x32x16xf32> to vector<32x16xf32>
    %cst_293 = arith.constant dense<0.000000e+00> : vector<32x16xf32>
    %490 = tpu.matmul %486, %489, %cst_293 {dimension_numbers = #tpu.dot_dimension_numbers<[1], [0], [0], [1], [0, 0, 1, 1], [], []>} : vector<32x32xf32>, vector<32x16xf32>, vector<32x16xf32> -> vector<32x16xf32>
    %c6_294 = arith.constant 6 : index
    %c0_295 = arith.constant 0 : index
    %c0_296 = arith.constant 0 : index
    %491 = vector.load %arg5[%c6_294, %c0_295, %c0_296] : memref<12x1x16xf32, #tpu.memory_space<vmem>>, vector<1x1x16xf32>
    %492 = vector.shape_cast %491 : vector<1x1x16xf32> to vector<1x16xf32>
    %493 = vector.broadcast %492 : vector<1x16xf32> to vector<32x16xf32>
    %494 = arith.addf %490, %493 : vector<32x16xf32>
    %c8 = arith.constant 8 : index
    %c0_297 = arith.constant 0 : index
    %c0_298 = arith.constant 0 : index
    %495 = vector.load %arg6[%c8, %c0_297, %c0_298] : memref<12x32x16xf32, #tpu.memory_space<vmem>>, vector<1x32x16xf32>
    %496 = vector.shape_cast %495 : vector<1x32x16xf32> to vector<32x16xf32>
    %cst_299 = arith.constant dense<0.000000e+00> : vector<32x16xf32>
    %497 = tpu.matmul %486, %496, %cst_299 {dimension_numbers = #tpu.dot_dimension_numbers<[1], [0], [0], [1], [0, 0, 1, 1], [], []>} : vector<32x32xf32>, vector<32x16xf32>, vector<32x16xf32> -> vector<32x16xf32>
    %c8_300 = arith.constant 8 : index
    %c0_301 = arith.constant 0 : index
    %c0_302 = arith.constant 0 : index
    %498 = vector.load %arg5[%c8_300, %c0_301, %c0_302] : memref<12x1x16xf32, #tpu.memory_space<vmem>>, vector<1x1x16xf32>
    %499 = vector.shape_cast %498 : vector<1x1x16xf32> to vector<1x16xf32>
    %500 = vector.broadcast %499 : vector<1x16xf32> to vector<32x16xf32>
    %501 = arith.addf %497, %500 : vector<32x16xf32>
    %c10 = arith.constant 10 : index
    %c0_303 = arith.constant 0 : index
    %c0_304 = arith.constant 0 : index
    %502 = vector.load %arg6[%c10, %c0_303, %c0_304] : memref<12x32x16xf32, #tpu.memory_space<vmem>>, vector<1x32x16xf32>
    %503 = vector.shape_cast %502 : vector<1x32x16xf32> to vector<32x16xf32>
    %cst_305 = arith.constant dense<0.000000e+00> : vector<32x16xf32>
    %504 = tpu.matmul %486, %503, %cst_305 {dimension_numbers = #tpu.dot_dimension_numbers<[1], [0], [0], [1], [0, 0, 1, 1], [], []>} : vector<32x32xf32>, vector<32x16xf32>, vector<32x16xf32> -> vector<32x16xf32>
    %c10_306 = arith.constant 10 : index
    %c0_307 = arith.constant 0 : index
    %c0_308 = arith.constant 0 : index
    %505 = vector.load %arg5[%c10_306, %c0_307, %c0_308] : memref<12x1x16xf32, #tpu.memory_space<vmem>>, vector<1x1x16xf32>
    %506 = vector.shape_cast %505 : vector<1x1x16xf32> to vector<1x16xf32>
    %507 = vector.broadcast %506 : vector<1x16xf32> to vector<32x16xf32>
    %508 = arith.addf %504, %507 : vector<32x16xf32>
    %509 = vector.shape_cast %494 : vector<32x16xf32> to vector<2x16x16xf32>
    %510 = vector.shape_cast %501 : vector<32x16xf32> to vector<2x16x16xf32>
    %511 = vector.shape_cast %508 : vector<32x16xf32> to vector<2x16x16xf32>
    "tpu.trace_start"() <{level = 10 : i32, message = "bqd,bkd->bqk"}> : () -> ()
    %cst_309 = arith.constant dense<0.000000e+00> : vector<2x16x16xf32>
    %512 = tpu.matmul %509, %510, %cst_309 {dimension_numbers = #tpu.dot_dimension_numbers<[2], [2], [1], [1], [0, 0, 0, 1, 1, 1], [0], [0]>} : vector<2x16x16xf32>, vector<2x16x16xf32>, vector<2x16x16xf32> -> vector<2x16x16xf32>
    "tpu.trace_stop"() : () -> ()
    %cst_310 = arith.constant 2.500000e-01 : f32
    %513 = vector.broadcast %cst_310 : f32 to vector<2x16x16xf32>
    %514 = arith.mulf %512, %513 : vector<2x16x16xf32>
    %cst_311 = arith.constant dense<0xFF800000> : vector<2x16xf32>
    %515 = vector.multi_reduction <maximumf>, %514, %cst_311 [2] : vector<2x16x16xf32> to vector<2x16xf32>
    %516 = vector.shape_cast %515 : vector<2x16xf32> to vector<2x16x1xf32>
    %517 = vector.broadcast %516 : vector<2x16x1xf32> to vector<2x16x16xf32>
    %518 = arith.subf %514, %517 : vector<2x16x16xf32>
    %519 = math.exp %518 : vector<2x16x16xf32>
    %cst_312 = arith.constant dense<0.000000e+00> : vector<2x16xf32>
    %520 = vector.multi_reduction <add>, %519, %cst_312 [2] : vector<2x16x16xf32> to vector<2x16xf32>
    %521 = vector.shape_cast %520 : vector<2x16xf32> to vector<2x16x1xf32>
    %522 = tpu.reciprocal %521 {approx = true} : vector<2x16x1xf32> -> vector<2x16x1xf32>
    %523 = vector.broadcast %522 : vector<2x16x1xf32> to vector<2x16x16xf32>
    %524 = arith.mulf %519, %523 : vector<2x16x16xf32>
    "tpu.trace_start"() <{level = 10 : i32, message = "bqk,bkd->bqd"}> : () -> ()
    %cst_313 = arith.constant dense<0.000000e+00> : vector<2x16x16xf32>
    %525 = tpu.matmul %524, %511, %cst_313 {dimension_numbers = #tpu.dot_dimension_numbers<[2], [1], [1], [2], [0, 0, 0, 1, 1, 2], [0], [0]>} : vector<2x16x16xf32>, vector<2x16x16xf32>, vector<2x16x16xf32> -> vector<2x16x16xf32>
    "tpu.trace_stop"() : () -> ()
    %526 = vector.shape_cast %525 : vector<2x16x16xf32> to vector<32x16xf32>
    %c2_314 = arith.constant 2 : index
    %c0_315 = arith.constant 0 : index
    %c0_316 = arith.constant 0 : index
    %527 = vector.load %arg10[%c2_314, %c0_315, %c0_316] : memref<4x16x32xf32, #tpu.memory_space<vmem>>, vector<1x16x32xf32>
    %528 = vector.shape_cast %527 : vector<1x16x32xf32> to vector<16x32xf32>
    %cst_317 = arith.constant dense<0.000000e+00> : vector<32x32xf32>
    %529 = tpu.matmul %526, %528, %cst_317 {dimension_numbers = #tpu.dot_dimension_numbers<[1], [0], [0], [1], [0, 0, 1, 1], [], []>} : vector<32x16xf32>, vector<16x32xf32>, vector<32x32xf32> -> vector<32x32xf32>
    %530 = arith.addf %487, %529 : vector<32x32xf32>
    %c7 = arith.constant 7 : index
    %c0_318 = arith.constant 0 : index
    %c0_319 = arith.constant 0 : index
    %531 = vector.load %arg6[%c7, %c0_318, %c0_319] : memref<12x32x16xf32, #tpu.memory_space<vmem>>, vector<1x32x16xf32>
    %532 = vector.shape_cast %531 : vector<1x32x16xf32> to vector<32x16xf32>
    %cst_320 = arith.constant dense<0.000000e+00> : vector<32x16xf32>
    %533 = tpu.matmul %486, %532, %cst_320 {dimension_numbers = #tpu.dot_dimension_numbers<[1], [0], [0], [1], [0, 0, 1, 1], [], []>} : vector<32x32xf32>, vector<32x16xf32>, vector<32x16xf32> -> vector<32x16xf32>
    %c7_321 = arith.constant 7 : index
    %c0_322 = arith.constant 0 : index
    %c0_323 = arith.constant 0 : index
    %534 = vector.load %arg5[%c7_321, %c0_322, %c0_323] : memref<12x1x16xf32, #tpu.memory_space<vmem>>, vector<1x1x16xf32>
    %535 = vector.shape_cast %534 : vector<1x1x16xf32> to vector<1x16xf32>
    %536 = vector.broadcast %535 : vector<1x16xf32> to vector<32x16xf32>
    %537 = arith.addf %533, %536 : vector<32x16xf32>
    %c9 = arith.constant 9 : index
    %c0_324 = arith.constant 0 : index
    %c0_325 = arith.constant 0 : index
    %538 = vector.load %arg6[%c9, %c0_324, %c0_325] : memref<12x32x16xf32, #tpu.memory_space<vmem>>, vector<1x32x16xf32>
    %539 = vector.shape_cast %538 : vector<1x32x16xf32> to vector<32x16xf32>
    %cst_326 = arith.constant dense<0.000000e+00> : vector<32x16xf32>
    %540 = tpu.matmul %486, %539, %cst_326 {dimension_numbers = #tpu.dot_dimension_numbers<[1], [0], [0], [1], [0, 0, 1, 1], [], []>} : vector<32x32xf32>, vector<32x16xf32>, vector<32x16xf32> -> vector<32x16xf32>
    %c9_327 = arith.constant 9 : index
    %c0_328 = arith.constant 0 : index
    %c0_329 = arith.constant 0 : index
    %541 = vector.load %arg5[%c9_327, %c0_328, %c0_329] : memref<12x1x16xf32, #tpu.memory_space<vmem>>, vector<1x1x16xf32>
    %542 = vector.shape_cast %541 : vector<1x1x16xf32> to vector<1x16xf32>
    %543 = vector.broadcast %542 : vector<1x16xf32> to vector<32x16xf32>
    %544 = arith.addf %540, %543 : vector<32x16xf32>
    %c11 = arith.constant 11 : index
    %c0_330 = arith.constant 0 : index
    %c0_331 = arith.constant 0 : index
    %545 = vector.load %arg6[%c11, %c0_330, %c0_331] : memref<12x32x16xf32, #tpu.memory_space<vmem>>, vector<1x32x16xf32>
    %546 = vector.shape_cast %545 : vector<1x32x16xf32> to vector<32x16xf32>
    %cst_332 = arith.constant dense<0.000000e+00> : vector<32x16xf32>
    %547 = tpu.matmul %486, %546, %cst_332 {dimension_numbers = #tpu.dot_dimension_numbers<[1], [0], [0], [1], [0, 0, 1, 1], [], []>} : vector<32x32xf32>, vector<32x16xf32>, vector<32x16xf32> -> vector<32x16xf32>
    %c11_333 = arith.constant 11 : index
    %c0_334 = arith.constant 0 : index
    %c0_335 = arith.constant 0 : index
    %548 = vector.load %arg5[%c11_333, %c0_334, %c0_335] : memref<12x1x16xf32, #tpu.memory_space<vmem>>, vector<1x1x16xf32>
    %549 = vector.shape_cast %548 : vector<1x1x16xf32> to vector<1x16xf32>
    %550 = vector.broadcast %549 : vector<1x16xf32> to vector<32x16xf32>
    %551 = arith.addf %547, %550 : vector<32x16xf32>
    %552 = vector.shape_cast %537 : vector<32x16xf32> to vector<2x16x16xf32>
    %553 = vector.shape_cast %544 : vector<32x16xf32> to vector<2x16x16xf32>
    %554 = vector.shape_cast %551 : vector<32x16xf32> to vector<2x16x16xf32>
    "tpu.trace_start"() <{level = 10 : i32, message = "bqd,bkd->bqk"}> : () -> ()
    %cst_336 = arith.constant dense<0.000000e+00> : vector<2x16x16xf32>
    %555 = tpu.matmul %552, %553, %cst_336 {dimension_numbers = #tpu.dot_dimension_numbers<[2], [2], [1], [1], [0, 0, 0, 1, 1, 1], [0], [0]>} : vector<2x16x16xf32>, vector<2x16x16xf32>, vector<2x16x16xf32> -> vector<2x16x16xf32>
    "tpu.trace_stop"() : () -> ()
    %cst_337 = arith.constant 2.500000e-01 : f32
    %556 = vector.broadcast %cst_337 : f32 to vector<2x16x16xf32>
    %557 = arith.mulf %555, %556 : vector<2x16x16xf32>
    %cst_338 = arith.constant dense<0xFF800000> : vector<2x16xf32>
    %558 = vector.multi_reduction <maximumf>, %557, %cst_338 [2] : vector<2x16x16xf32> to vector<2x16xf32>
    %559 = vector.shape_cast %558 : vector<2x16xf32> to vector<2x16x1xf32>
    %560 = vector.broadcast %559 : vector<2x16x1xf32> to vector<2x16x16xf32>
    %561 = arith.subf %557, %560 : vector<2x16x16xf32>
    %562 = math.exp %561 : vector<2x16x16xf32>
    %cst_339 = arith.constant dense<0.000000e+00> : vector<2x16xf32>
    %563 = vector.multi_reduction <add>, %562, %cst_339 [2] : vector<2x16x16xf32> to vector<2x16xf32>
    %564 = vector.shape_cast %563 : vector<2x16xf32> to vector<2x16x1xf32>
    %565 = tpu.reciprocal %564 {approx = true} : vector<2x16x1xf32> -> vector<2x16x1xf32>
    %566 = vector.broadcast %565 : vector<2x16x1xf32> to vector<2x16x16xf32>
    %567 = arith.mulf %562, %566 : vector<2x16x16xf32>
    "tpu.trace_start"() <{level = 10 : i32, message = "bqk,bkd->bqd"}> : () -> ()
    %cst_340 = arith.constant dense<0.000000e+00> : vector<2x16x16xf32>
    %568 = tpu.matmul %567, %554, %cst_340 {dimension_numbers = #tpu.dot_dimension_numbers<[2], [1], [1], [2], [0, 0, 0, 1, 1, 2], [0], [0]>} : vector<2x16x16xf32>, vector<2x16x16xf32>, vector<2x16x16xf32> -> vector<2x16x16xf32>
    "tpu.trace_stop"() : () -> ()
    %569 = vector.shape_cast %568 : vector<2x16x16xf32> to vector<32x16xf32>
    %c3_341 = arith.constant 3 : index
    %c0_342 = arith.constant 0 : index
    %c0_343 = arith.constant 0 : index
    %570 = vector.load %arg10[%c3_341, %c0_342, %c0_343] : memref<4x16x32xf32, #tpu.memory_space<vmem>>, vector<1x16x32xf32>
    %571 = vector.shape_cast %570 : vector<1x16x32xf32> to vector<16x32xf32>
    %cst_344 = arith.constant dense<0.000000e+00> : vector<32x32xf32>
    %572 = tpu.matmul %569, %571, %cst_344 {dimension_numbers = #tpu.dot_dimension_numbers<[1], [0], [0], [1], [0, 0, 1, 1], [], []>} : vector<32x16xf32>, vector<16x32xf32>, vector<32x32xf32> -> vector<32x32xf32>
    %573 = arith.addf %530, %572 : vector<32x32xf32>
    %574 = arith.addf %464, %573 : vector<32x32xf32>
    %575 = vector.broadcast %459 : vector<1x32xf32> to vector<32x32xf32>
    %576 = arith.addf %574, %575 : vector<32x32xf32>
    %cst_345 = arith.constant dense<0.000000e+00> : vector<32xf32>
    %577 = vector.multi_reduction <add>, %576, %cst_345 [1] : vector<32x32xf32> to vector<32xf32>
    %578 = vector.shape_cast %577 : vector<32xf32> to vector<32x1xf32>
    %cst_346 = arith.constant 3.200000e+01 : f32
    %579 = vector.broadcast %cst_346 : f32 to vector<32x1xf32>
    %580 = arith.divf %578, %579 : vector<32x1xf32>
    %581 = vector.broadcast %580 : vector<32x1xf32> to vector<32x32xf32>
    %582 = arith.subf %576, %581 : vector<32x32xf32>
    %583 = arith.mulf %582, %582 : vector<32x32xf32>
    %cst_347 = arith.constant dense<0.000000e+00> : vector<32xf32>
    %584 = vector.multi_reduction <add>, %583, %cst_347 [1] : vector<32x32xf32> to vector<32xf32>
    %585 = vector.shape_cast %584 : vector<32xf32> to vector<32x1xf32>
    %cst_348 = arith.constant 3.200000e+01 : f32
    %586 = vector.broadcast %cst_348 : f32 to vector<32x1xf32>
    %587 = arith.divf %585, %586 : vector<32x1xf32>
    %588 = vector.broadcast %580 : vector<32x1xf32> to vector<32x32xf32>
    %589 = arith.subf %576, %588 : vector<32x32xf32>
    %cst_349 = arith.constant 9.99999974E-6 : f32
    %590 = vector.broadcast %cst_349 : f32 to vector<32x1xf32>
    %591 = arith.addf %587, %590 : vector<32x1xf32>
    %592 = math.rsqrt %591 : vector<32x1xf32>
    %593 = vector.broadcast %592 : vector<32x1xf32> to vector<32x32xf32>
    %594 = arith.mulf %589, %593 : vector<32x32xf32>
    %595 = vector.broadcast %455 : vector<1x32xf32> to vector<32x32xf32>
    %596 = arith.mulf %594, %595 : vector<32x32xf32>
    %597 = vector.broadcast %457 : vector<1x32xf32> to vector<32x32xf32>
    %598 = arith.addf %596, %597 : vector<32x32xf32>
    %c1_350 = arith.constant 1 : index
    %c0_351 = arith.constant 0 : index
    %c0_352 = arith.constant 0 : index
    %599 = vector.load %arg8[%c1_350, %c0_351, %c0_352] : memref<2x32x64xf32, #tpu.memory_space<vmem>>, vector<1x32x64xf32>
    %600 = vector.shape_cast %599 : vector<1x32x64xf32> to vector<32x64xf32>
    %cst_353 = arith.constant dense<0.000000e+00> : vector<32x64xf32>
    %601 = tpu.matmul %598, %600, %cst_353 {dimension_numbers = #tpu.dot_dimension_numbers<[1], [0], [0], [1], [0, 0, 1, 1], [], []>} : vector<32x32xf32>, vector<32x64xf32>, vector<32x64xf32> -> vector<32x64xf32>
    %602 = vector.broadcast %463 : vector<1x64xf32> to vector<32x64xf32>
    %603 = arith.addf %601, %602 : vector<32x64xf32>
    %cst_354 = arith.constant 5.000000e-01 : f32
    %604 = vector.broadcast %cst_354 : f32 to vector<32x64xf32>
    %605 = arith.mulf %604, %603 : vector<32x64xf32>
    %cst_355 = arith.constant 4.471500e-02 : f32
    %606 = vector.broadcast %cst_355 : f32 to vector<32x64xf32>
    %607 = arith.mulf %606, %603 : vector<32x64xf32>
    %608 = arith.mulf %607, %603 : vector<32x64xf32>
    %609 = arith.mulf %608, %603 : vector<32x64xf32>
    %610 = arith.addf %603, %609 : vector<32x64xf32>
    %cst_356 = arith.constant 0.797884583 : f32
    %611 = vector.broadcast %cst_356 : f32 to vector<32x64xf32>
    %612 = arith.mulf %611, %610 : vector<32x64xf32>
    %613 = math.tanh %612 : vector<32x64xf32>
    %cst_357 = arith.constant 1.000000e+00 : f32
    %614 = vector.broadcast %cst_357 : f32 to vector<32x64xf32>
    %615 = arith.addf %614, %613 : vector<32x64xf32>
    %616 = arith.mulf %605, %615 : vector<32x64xf32>
    %c1_358 = arith.constant 1 : index
    %c0_359 = arith.constant 0 : index
    %c0_360 = arith.constant 0 : index
    %617 = vector.load %arg9[%c1_358, %c0_359, %c0_360] : memref<2x64x32xf32, #tpu.memory_space<vmem>>, vector<1x64x32xf32>
    %618 = vector.shape_cast %617 : vector<1x64x32xf32> to vector<64x32xf32>
    %cst_361 = arith.constant dense<0.000000e+00> : vector<32x32xf32>
    %619 = tpu.matmul %616, %618, %cst_361 {dimension_numbers = #tpu.dot_dimension_numbers<[1], [0], [0], [1], [0, 0, 1, 1], [], []>} : vector<32x64xf32>, vector<64x32xf32>, vector<32x32xf32> -> vector<32x32xf32>
    %620 = vector.broadcast %461 : vector<1x32xf32> to vector<32x32xf32>
    %621 = arith.addf %619, %620 : vector<32x32xf32>
    %622 = arith.addf %576, %621 : vector<32x32xf32>
    %623 = vector.shape_cast %622 : vector<32x32xf32> to vector<2x16x32xf32>
    %624 = vector.shape_cast %623 : vector<2x16x32xf32> to vector<32x32xf32>
    %c0_362 = arith.constant 0 : index
    %c0_363 = arith.constant 0 : index
    %625 = vector.load %arg14[%c0_362, %c0_363] : memref<3x64xf32, #tpu.memory_space<vmem>>, vector<1x32xf32>
    %c1_364 = arith.constant 1 : index
    %c0_365 = arith.constant 0 : index
    %626 = vector.load %arg14[%c1_364, %c0_365] : memref<3x64xf32, #tpu.memory_space<vmem>>, vector<1x32xf32>
    %cst_366 = arith.constant dense<0.000000e+00> : vector<32xf32>
    %627 = vector.multi_reduction <add>, %624, %cst_366 [1] : vector<32x32xf32> to vector<32xf32>
    %628 = vector.shape_cast %627 : vector<32xf32> to vector<32x1xf32>
    %cst_367 = arith.constant 3.200000e+01 : f32
    %629 = vector.broadcast %cst_367 : f32 to vector<32x1xf32>
    %630 = arith.divf %628, %629 : vector<32x1xf32>
    %631 = vector.broadcast %630 : vector<32x1xf32> to vector<32x32xf32>
    %632 = arith.subf %624, %631 : vector<32x32xf32>
    %633 = arith.mulf %632, %632 : vector<32x32xf32>
    %cst_368 = arith.constant dense<0.000000e+00> : vector<32xf32>
    %634 = vector.multi_reduction <add>, %633, %cst_368 [1] : vector<32x32xf32> to vector<32xf32>
    %635 = vector.shape_cast %634 : vector<32xf32> to vector<32x1xf32>
    %cst_369 = arith.constant 3.200000e+01 : f32
    %636 = vector.broadcast %cst_369 : f32 to vector<32x1xf32>
    %637 = arith.divf %635, %636 : vector<32x1xf32>
    %638 = vector.broadcast %630 : vector<32x1xf32> to vector<32x32xf32>
    %639 = arith.subf %624, %638 : vector<32x32xf32>
    %cst_370 = arith.constant 9.99999974E-6 : f32
    %640 = vector.broadcast %cst_370 : f32 to vector<32x1xf32>
    %641 = arith.addf %637, %640 : vector<32x1xf32>
    %642 = math.rsqrt %641 : vector<32x1xf32>
    %643 = vector.broadcast %642 : vector<32x1xf32> to vector<32x32xf32>
    %644 = arith.mulf %639, %643 : vector<32x32xf32>
    %645 = vector.broadcast %625 : vector<1x32xf32> to vector<32x32xf32>
    %646 = arith.mulf %644, %645 : vector<32x32xf32>
    %647 = vector.broadcast %626 : vector<1x32xf32> to vector<32x32xf32>
    %648 = arith.addf %646, %647 : vector<32x32xf32>
    %c0_371 = arith.constant 0 : index
    %c0_372 = arith.constant 0 : index
    %649 = vector.load %arg12[%c0_371, %c0_372] : memref<32x64xf32, #tpu.memory_space<vmem>>, vector<32x64xf32>
    %cst_373 = arith.constant dense<0.000000e+00> : vector<32x64xf32>
    %650 = tpu.matmul %648, %649, %cst_373 {dimension_numbers = #tpu.dot_dimension_numbers<[1], [0], [0], [1], [0, 0, 1, 1], [], []>} : vector<32x32xf32>, vector<32x64xf32>, vector<32x64xf32> -> vector<32x64xf32>
    %c2_374 = arith.constant 2 : index
    %c0_375 = arith.constant 0 : index
    %651 = vector.load %arg14[%c2_374, %c0_375] : memref<3x64xf32, #tpu.memory_space<vmem>>, vector<1x64xf32>
    %652 = vector.broadcast %651 : vector<1x64xf32> to vector<32x64xf32>
    %653 = arith.addf %650, %652 : vector<32x64xf32>
    %654 = vector.shape_cast %653 : vector<32x64xf32> to vector<2x16x64xf32>
    %c0_376 = arith.constant 0 : index
    %c0_377 = arith.constant 0 : index
    %c0_378 = arith.constant 0 : index
    %655 = vector.load %arg30[%c0_376, %c0_377, %c0_378] : memref<2x16x64xf32, #tpu.memory_space<vmem>>, vector<2x16x64xf32>
    tpu.vector_store %arg30[%c0_376, %c0_377, %c0_378], %654 {strides = array<i32>} : memref<2x16x64xf32, #tpu.memory_space<vmem>>, vector<2x16x64xf32>,
    return
  }
  func.func @transform_0(%arg0: i32) -> (i32, i32, i32) {
    %c0_i32 = arith.constant 0 : i32
    %c0_i32_0 = arith.constant 0 : i32
    %c0_i32_1 = arith.constant 0 : i32
    return %arg0, %c0_i32, %c0_i32_0 : i32, i32, i32
  }
  func.func @transform_1(%arg0: i32) -> (i32, i32, i32) {
    %c0_i32 = arith.constant 0 : i32
    %c0_i32_0 = arith.constant 0 : i32
    %c0_i32_1 = arith.constant 0 : i32
    return %arg0, %c0_i32, %c0_i32_0 : i32, i32, i32
  }
  func.func @transform_2(%arg0: i32) -> (i32, i32) {
    %c0_i32 = arith.constant 0 : i32
    %c0_i32_0 = arith.constant 0 : i32
    %c0_i32_1 = arith.constant 0 : i32
    return %c0_i32, %c0_i32_0 : i32, i32
  }
  func.func @transform_3(%arg0: i32) -> (i32, i32) {
    %c0_i32 = arith.constant 0 : i32
    %c0_i32_0 = arith.constant 0 : i32
    %c0_i32_1 = arith.constant 0 : i32
    return %c0_i32, %c0_i32_0 : i32, i32
  }
  func.func @transform_4(%arg0: i32) -> (i32, i32, i32) {
    %c0_i32 = arith.constant 0 : i32
    %c0_i32_0 = arith.constant 0 : i32
    %c0_i32_1 = arith.constant 0 : i32
    %c0_i32_2 = arith.constant 0 : i32
    return %c0_i32, %c0_i32_0, %c0_i32_1 : i32, i32, i32
  }
  func.func @transform_5(%arg0: i32) -> (i32, i32, i32) {
    %c0_i32 = arith.constant 0 : i32
    %c0_i32_0 = arith.constant 0 : i32
    %c0_i32_1 = arith.constant 0 : i32
    %c0_i32_2 = arith.constant 0 : i32
    return %c0_i32, %c0_i32_0, %c0_i32_1 : i32, i32, i32
  }
  func.func @transform_6(%arg0: i32) -> (i32, i32, i32) {
    %c0_i32 = arith.constant 0 : i32
    %c0_i32_0 = arith.constant 0 : i32
    %c0_i32_1 = arith.constant 0 : i32
    %c0_i32_2 = arith.constant 0 : i32
    return %c0_i32, %c0_i32_0, %c0_i32_1 : i32, i32, i32
  }
  func.func @transform_7(%arg0: i32) -> (i32, i32, i32) {
    %c0_i32 = arith.constant 0 : i32
    %c0_i32_0 = arith.constant 0 : i32
    %c0_i32_1 = arith.constant 0 : i32
    %c0_i32_2 = arith.constant 0 : i32
    return %c0_i32, %c0_i32_0, %c0_i32_1 : i32, i32, i32
  }
  func.func @transform_8(%arg0: i32) -> (i32, i32, i32) {
    %c0_i32 = arith.constant 0 : i32
    %c0_i32_0 = arith.constant 0 : i32
    %c0_i32_1 = arith.constant 0 : i32
    %c0_i32_2 = arith.constant 0 : i32
    return %c0_i32, %c0_i32_0, %c0_i32_1 : i32, i32, i32
  }
  func.func @transform_9(%arg0: i32) -> (i32, i32, i32) {
    %c0_i32 = arith.constant 0 : i32
    %c0_i32_0 = arith.constant 0 : i32
    %c0_i32_1 = arith.constant 0 : i32
    %c0_i32_2 = arith.constant 0 : i32
    return %c0_i32, %c0_i32_0, %c0_i32_1 : i32, i32, i32
  }
  func.func @transform_10(%arg0: i32) -> (i32, i32) {
    %c0_i32 = arith.constant 0 : i32
    %c0_i32_0 = arith.constant 0 : i32
    %c0_i32_1 = arith.constant 0 : i32
    return %c0_i32, %c0_i32_0 : i32, i32
  }
  func.func @transform_11(%arg0: i32) -> (i32, i32) {
    %c0_i32 = arith.constant 0 : i32
    %c0_i32_0 = arith.constant 0 : i32
    %c0_i32_1 = arith.constant 0 : i32
    return %c0_i32, %c0_i32_0 : i32, i32
  }
  func.func @transform_12(%arg0: i32) -> (i32, i32) {
    %c0_i32 = arith.constant 0 : i32
    %c0_i32_0 = arith.constant 0 : i32
    %c0_i32_1 = arith.constant 0 : i32
    return %c0_i32, %c0_i32_0 : i32, i32
  }
  func.func @transform_13(%arg0: i32) -> (i32, i32) {
    %c0_i32 = arith.constant 0 : i32
    %c0_i32_0 = arith.constant 0 : i32
    %c0_i32_1 = arith.constant 0 : i32
    return %c0_i32, %c0_i32_0 : i32, i32
  }
  func.func @transform_14(%arg0: i32) -> (i32, i32, i32) {
    %c0_i32 = arith.constant 0 : i32
    %c0_i32_0 = arith.constant 0 : i32
    %c0_i32_1 = arith.constant 0 : i32
    %c0_i32_2 = arith.constant 0 : i32
    return %c0_i32, %c0_i32_0, %c0_i32_1 : i32, i32, i32
  }
  func.func @transform_15(%arg0: i32) -> (i32, i32, i32) {
    %c0_i32 = arith.constant 0 : i32
    %c0_i32_0 = arith.constant 0 : i32
    %c0_i32_1 = arith.constant 0 : i32
    %c0_i32_2 = arith.constant 0 : i32
    return %c0_i32, %c0_i32_0, %c0_i32_1 : i32, i32, i32
  }
  func.func @transform_16(%arg0: i32) -> (i32, i32, i32) {
    %c0_i32 = arith.constant 0 : i32
    %c0_i32_0 = arith.constant 0 : i32
    %c0_i32_1 = arith.constant 0 : i32
    %c0_i32_2 = arith.constant 0 : i32
    return %c0_i32, %c0_i32_0, %c0_i32_1 : i32, i32, i32
  }
  func.func @transform_17(%arg0: i32) -> (i32, i32, i32) {
    %c0_i32 = arith.constant 0 : i32
    %c0_i32_0 = arith.constant 0 : i32
    %c0_i32_1 = arith.constant 0 : i32
    %c0_i32_2 = arith.constant 0 : i32
    return %c0_i32, %c0_i32_0, %c0_i32_1 : i32, i32, i32
  }
  func.func @transform_18(%arg0: i32) -> (i32, i32, i32) {
    %c0_i32 = arith.constant 0 : i32
    %c0_i32_0 = arith.constant 0 : i32
    %c0_i32_1 = arith.constant 0 : i32
    %c0_i32_2 = arith.constant 0 : i32
    return %c0_i32, %c0_i32_0, %c0_i32_1 : i32, i32, i32
  }
  func.func @transform_19(%arg0: i32) -> (i32, i32, i32) {
    %c0_i32 = arith.constant 0 : i32
    %c0_i32_0 = arith.constant 0 : i32
    %c0_i32_1 = arith.constant 0 : i32
    %c0_i32_2 = arith.constant 0 : i32
    return %c0_i32, %c0_i32_0, %c0_i32_1 : i32, i32, i32
  }
  func.func @transform_20(%arg0: i32) -> (i32, i32) {
    %c0_i32 = arith.constant 0 : i32
    %c0_i32_0 = arith.constant 0 : i32
    %c0_i32_1 = arith.constant 0 : i32
    return %c0_i32, %c0_i32_0 : i32, i32
  }
  func.func @transform_21(%arg0: i32) -> (i32, i32) {
    %c0_i32 = arith.constant 0 : i32
    %c0_i32_0 = arith.constant 0 : i32
    %c0_i32_1 = arith.constant 0 : i32
    return %c0_i32, %c0_i32_0 : i32, i32
  }
  func.func @transform_22(%arg0: i32) -> (i32, i32) {
    %c0_i32 = arith.constant 0 : i32
    %c0_i32_0 = arith.constant 0 : i32
    %c0_i32_1 = arith.constant 0 : i32
    return %c0_i32, %c0_i32_0 : i32, i32
  }
  func.func @transform_23(%arg0: i32) -> (i32, i32) {
    %c0_i32 = arith.constant 0 : i32
    %c0_i32_0 = arith.constant 0 : i32
    %c0_i32_1 = arith.constant 0 : i32
    return %c0_i32, %c0_i32_0 : i32, i32
  }
  func.func @transform_24(%arg0: i32) -> (i32, i32) {
    %c0_i32 = arith.constant 0 : i32
    %c0_i32_0 = arith.constant 0 : i32
    %c0_i32_1 = arith.constant 0 : i32
    return %c0_i32, %c0_i32_0 : i32, i32
  }
  func.func @transform_25(%arg0: i32) -> (i32, i32) {
    %c0_i32 = arith.constant 0 : i32
    %c0_i32_0 = arith.constant 0 : i32
    %c0_i32_1 = arith.constant 0 : i32
    return %c0_i32, %c0_i32_0 : i32, i32
  }
  func.func @transform_26(%arg0: i32) -> (i32, i32) {
    %c0_i32 = arith.constant 0 : i32
    %c0_i32_0 = arith.constant 0 : i32
    %c0_i32_1 = arith.constant 0 : i32
    return %c0_i32, %c0_i32_0 : i32, i32
  }
  func.func @transform_27(%arg0: i32) -> (i32, i32) {
    %c0_i32 = arith.constant 0 : i32
    %c0_i32_0 = arith.constant 0 : i32
    %c0_i32_1 = arith.constant 0 : i32
    return %c0_i32, %c0_i32_0 : i32, i32
  }
  func.func @transform_28(%arg0: i32) -> (i32, i32) {
    %c0_i32 = arith.constant 0 : i32
    %c0_i32_0 = arith.constant 0 : i32
    %c0_i32_1 = arith.constant 0 : i32
    return %c0_i32, %c0_i32_0 : i32, i32
  }
  func.func @transform_29(%arg0: i32) -> (i32, i32, i32) {
    %c0_i32 = arith.constant 0 : i32
    %c0_i32_0 = arith.constant 0 : i32
    %c0_i32_1 = arith.constant 0 : i32
    return %arg0, %c0_i32, %c0_i32_0 : i32, i32, i32
  }
}

</mosaic_0001>

<bundles_post_ra>
// kernel: forward.1
= control target key start
LH: loop header
LB: loop body
LE: loop exit
PB: predicated region body
PF: predicated region fallthrough
CT: control target
= control target key end

     0   :  { %s4444_s3 = smov 21   ;;  %vm134_vm0 = vcmask 523264   ;;  %s4445_s10 = smov 22   ;;  %vm189_vm1 = vcmask 261120   ;;  %v4447_v26 = vmov 32.0   ;;  %vm422_vm15 = vcmask 130048   ;;  %s5527_s0 = inlined_call_operand.smem [shape: u32[30], index: -1, kind: input, shape index: {}] }
   0x1   :  { %s3842_s6 = sld [smem:[%s5527_s0 + %s4444_s3]]   ;;  %s4446_s14 = smov 16   ;;  %4252 = vrcp.f32 %v4447_v26 }
   0x2   :  { %s1_s9 = sld [smem:[%s5527_s0]]   ;;  %s4448_s18 = smov 14  }
   0x3   :  { %s3843_s13 = sld [smem:[%s5527_s0 + %s4445_s10]]   ;;  %s4449_s22 = smov 15  }
   0x4   :  { %s4508_s17 = sld [smem:[%s5527_s0 + %s4446_s14]]   ;;  %s4450_s26 = smov 19  }
   0x5   :  { %s4547_s21 = sld [smem:[%s5527_s0 + %s4448_s18]]   ;;  %s4451_s30 = smov 17  }
   0x6   :  { %s4552_s25 = sld [smem:[%s5527_s0 + %s4449_s22]]   ;;  %s4452_s4 = smov 18  }
   0x7   :  { %v133_v0 = vld [vmem:[%s3842_s6 + $0x38] sm:$0xff]  ;;  %v132_v1 = vld [vmem:[%s3842_s6 + $0x30] sm:$0xff]  ;;  %v131_v2 = vld [vmem:[%s3842_s6 + $0x28] sm:$0xff]  ;;  %v4253_v27 = vpop.eup %4252  ;;  %s4674_s29 = sld [smem:[%s5527_s0 + %s4450_s26]]   ;;  %s4453_s8 = smov 23  }
   0x8   :  { %155 = vmatpush.msra.mxu0 %v133_v0  ;;  %v130_v3 = vld [vmem:[%s3842_s6 + $0x20] sm:$0xff]  ;;  %v129_v4 = vld [vmem:[%s3842_s6 + $0x18] sm:$0xff]  ;;  %v128_v5 = vld [vmem:[%s3842_s6 + $0x10] sm:$0xff]  ;;  %v203_v28 = vmul.f32 32.0, %v4253_v27  ;;  %vm207_vm2 = vweird.f32 %v4253_v27  ;;  %s3838_s3 = sld [smem:[%s5527_s0 + %s4451_s30]]   ;;  %s4454_s12 = smov 2  }
   0x9   :  { %v127_v6 = vld [vmem:[%s3842_s6 + $0x8] sm:$0xff]  ;;  %v126_v7 = vld [vmem:[%s3842_s6] sm:$0xff]  ;;  %v124_v10 = vld [vmem:[%s1_s9 + $0x10] sm:$0xff]  ;;  %s3839_s7 = sld [smem:[%s5527_s0 + %s4452_s4]]   ;;  %s4455_s16 = smov 20  }
   0xa   :  { %156 = vmatpush.msra.mxu0 %v132_v1  ;;  %v122_v8 = vld [vmem:[%s1_s9] sm:$0xff]  ;;  %v123_v9 = vld [vmem:[%s1_s9 + $0x8] sm:$0xff]  ;;  %v125_v11 = vld [vmem:[%s1_s9 + $0x18] sm:$0xff]  ;;  %v204_v29 = vsub.f32 1.0, %v203_v28  ;;  %s4794_s11 = sld [smem:[%s5527_s0 + %s4453_s8]]   ;;  %s4456_s20 = smov 3  }
   0xb   :  { %v176_v12 = vld [vmem:[%s3843_s13] sm:$0xff]  ;;  %v177_v16 = vld [vmem:[%s3843_s13 + $0x8] sm:$0xff]  ;;  %s4825_s15 = sld [smem:[%s5527_s0 + %s4454_s12]]   ;;  %s4457_s24 = smov 1  }
   0xc   :  { %157 = vmatpush.msra.mxu0 %v131_v2  ;;  %v205_v30 = vmul.f32 %v4253_v27, %v204_v29  ;;  %v298_v53 = vld [vmem:[%s4552_s25 + $0x18] sm:$0xff]  ;;  %v297_v55 = vld [vmem:[%s4552_s25 + $0x10] sm:$0xff]  ;;  %v296_v57 = vld [vmem:[%s4552_s25 + $0x8] sm:$0xff]  ;;  %s4832_s19 = sld [smem:[%s5527_s0 + %s4455_s16]]   ;;  %s4459_s28 = smov 26  }
   0xd   :  { %v3862_v54 = vld [vmem:[%s4552_s25 + $0x58] sm:$0xff]  ;;  %327 = vmatpush.msra.mxu1 %v298_v53  ;;  %v3861_v56 = vld [vmem:[%s4552_s25 + $0x50] sm:$0xff]  ;;  %4166 = vmatpush.msra.mxu3 %v298_v53  ;;  %v3860_v58 = vld [vmem:[%s4552_s25 + $0x48] sm:$0xff]  ;;  %s3824_s23 = sld [smem:[%s5527_s0 + %s4456_s20]]   ;;  %s4460_s2 = smov 28  }
   0xe   :  { %158 = vmatpush.msra.mxu0 %v130_v3  ;;  %v206_v31 = vadd.f32 %v4253_v27, %v205_v30  ;;  %366 = vmatpush.msra.mxu2 %v3862_v54  ;;  %v295_v59 = vld [vmem:[%s4552_s25] sm:$0xff]  ;;  %s3822_s27 = sld [smem:[%s5527_s0 + %s4457_s24]]   ;;  %s4461_s6 = smov 25  }
   0xf   :  { %328 = vmatpush.msra.mxu1 %v297_v55  ;;  %4167 = vmatpush.msra.mxu3 %v297_v55  ;;  %v3859_v60 = vld [vmem:[%s4552_s25 + $0x40] sm:$0xff]  ;;  %s3847_s1 = sld [smem:[%s5527_s0 + %s4459_s28]]   ;;  %s4462_s10 = smov 27  }
  0x10   :  { %159 = vmatpush.msra.mxu0 %v129_v4  ;;  %v4514_v32 = vsel %vm207_vm2, %v4253_v27, %v206_v31  ;;  %367 = vmatpush.msra.mxu2 %v3861_v56  ;;  %v3868_v30 = vld [vmem:[%s4552_s25 + $0x80] sm:$0xff]  ;;  %s3849_s5 = sld [smem:[%s5527_s0 + %s4460_s2]]   ;;  %s4464_s18 = smov 10  }
  0x11   :  { %329 = vmatpush.msra.mxu1 %v296_v57  ;;  %4168 = vmatpush.msra.mxu3 %v296_v57  ;;  %s4867_s9 = sld [smem:[%s5527_s0 + %s4461_s6]]   ;;  %s4465_s22 = smov 12  }
  0x12   :  { %160 = vmatpush.msra.mxu0 %v128_v5  ;;  %368 = vmatpush.msra.mxu2 %v3860_v58  ;;  %s3848_s14 = sld [smem:[%s5527_s0 + %s4462_s10]]   ;;  %s4466_s26 = smov 6  }
  0x13   :  { %330 = vmatpush.msra.mxu1 %v295_v59  ;;  %4169 = vmatpush.msra.mxu3 %v295_v59  ;;  %s4467_s30 = smov 4   ;;  %s4468_s4 = smov 5  }
  0x14   :  { %161 = vmatpush.msra.mxu0 %v127_v6  ;;  %369 = vmatpush.msra.mxu2 %v3859_v60  ;;  %s4469_s8 = smov 9   ;;  %s4470_s13 = smov 7  }
  0x15   :  { %s5066_s12 = sld [smem:[%s5527_s0 + %s4469_s8]]   ;;  %s4471_s16 = smov 8  }
  0x16   :  { %162 = vmatpush.msra.mxu0 %v126_v7  ;;  %s4472_s20 = smov 13   ;;  %s4473_s24 = smov 11  }
  0x17   :  { %3851 = vmatmul.msk.f32.vlgmr.msra.gmra.mxu0 %vm134_vm0, %v122_v8  ;;  %s4474_s28 = smov 29  }
  0x1f   :  { %3852 = vmatmul.msk.f32.gmra.mxu0 %vm134_vm0, %v123_v9 }
  0x27   :  { %3853 = vmatmul.msk.f32.gmra.mxu0 %vm134_vm0, %v124_v10 }
  0x2f   :  { %3854 = vmatmul.msk.f32.gmra.mxu0 %vm134_vm0, %v125_v11 }
  0x94   :  { %v164_v13 = vpop.f32.mrf.mxu0 }
  0x95   :  { %v4493_v14 = vadd.f32 %v176_v12, %v164_v13 }
  0x97   :  { %v190_v15 = vsel %vm189_vm1, %v4493_v14, 0.0 }
  0x98   :  { %191 = vadd.xlane.f32.xlu0 %v190_v15 }
  0x9c   :  { %v167_v17 = vpop.f32.mrf.mxu0 }
  0x9d   :  { %v4497_v18 = vadd.f32 %v177_v16, %v167_v17  ;;  %v3870_v17 = vld [vmem:[%s4552_s25 + $0x90] sm:$0xff] }
  0x9f   :  { %v193_v19 = vsel %vm189_vm1, %v4497_v18, 0.0 }
  0xa0   :  { %194 = vadd.xlane.f32.xlu0 %v193_v19 }
  0xa4   :  { %v170_v20 = vpop.f32.mrf.mxu0 }
  0xa5   :  { %v4501_v21 = vadd.f32 %v176_v12, %v170_v20  ;;  %v4566_v12 = vld [vmem:[%s4508_s17] ss:$0 sm:$0xff] }
  0xa7   :  { %v196_v22 = vsel %vm189_vm1, %v4501_v21, 0.0 }
  0xa8   :  { %197 = vadd.xlane.f32.xlu1 %v196_v22  ;;  %v4204_v22 = vld [vmem:[%s4508_s17 + $0x1] ss:$0 sm:$0xff] }
  0xac   :  { %v173_v23 = vpop.f32.mrf.mxu0 }
  0xad   :  { %v4510_v24 = vadd.f32 %v177_v16, %v173_v23  ;;  %v3871_v16 = vld [vmem:[%s4552_s25 + $0x98] sm:$0xff] }
  0xae   :  { %405 = vmatpush.msrb.mxu3 %v3871_v16  ;;  %v3900_v16 = vld [vmem:[%s4552_s25 + $0x70] sm:$0xff] }
  0xaf   :  { %v199_v25 = vsel %vm189_vm1, %v4510_v24, 0.0 }
  0xb0   :  { %200 = vadd.xlane.f32.xlu1 %v199_v25  ;;  %v3869_v25 = vld [vmem:[%s4552_s25 + $0x88] sm:$0xff]  ;;  %406 = vmatpush.msrb.mxu3 %v3870_v17 }
  0xb1   :  { %v3899_v17 = vld [vmem:[%s4552_s25 + $0x68] sm:$0xff] }
  0xb2   :  { %407 = vmatpush.msrb.mxu3 %v3869_v25 }
  0xb4   :  { %408 = vmatpush.msrb.mxu3 %v3868_v30 }
 0x10b   :  { %v192_v33 = vpop.xlane.xlu0 %191 }
 0x10c   :  { %v209_v34 = vmul.f32 %v4514_v32, %v192_v33 }
 0x10e   :  { %v4518_v35 = vsub.f32 %v4493_v14, %v209_v34 }
 0x110   :  { %v217_v36 = vmul.f32 %v4518_v35, %v4518_v35 }
 0x112   :  { %v221_v37 = vsel %vm189_vm1, %v217_v36, 0.0 }
 0x113   :  { %222 = vadd.xlane.f32.xlu2 %v221_v37  ;;  %v195_v38 = vpop.xlane.xlu0 %194 }
 0x114   :  { %v210_v39 = vmul.f32 %v4514_v32, %v195_v38 }
 0x116   :  { %v4525_v40 = vsub.f32 %v4497_v18, %v210_v39 }
 0x118   :  { %v218_v41 = vmul.f32 %v4525_v40, %v4525_v40 }
 0x11a   :  { %v224_v42 = vsel %vm189_vm1, %v218_v41, 0.0 }
 0x11b   :  { %225 = vadd.xlane.f32.xlu2 %v224_v42  ;;  %v198_v43 = vpop.xlane.xlu1 %197 }
 0x11c   :  { %v211_v44 = vmul.f32 %v4514_v32, %v198_v43 }
 0x11e   :  { %v4532_v45 = vsub.f32 %v4501_v21, %v211_v44 }
 0x120   :  { %v219_v46 = vmul.f32 %v4532_v45, %v4532_v45 }
 0x122   :  { %v227_v47 = vsel %vm189_vm1, %v219_v46, 0.0 }
 0x123   :  { %228 = vadd.xlane.f32.xlu0 %v227_v47  ;;  %v201_v48 = vpop.xlane.xlu1 %200 }
 0x124   :  { %v212_v49 = vmul.f32 %v4514_v32, %v201_v48 }
 0x126   :  { %v4539_v50 = vsub.f32 %v4510_v24, %v212_v49 }
 0x128   :  { %v220_v51 = vmul.f32 %v4539_v50, %v4539_v50 }
 0x12a   :  { %v230_v52 = vsel %vm189_vm1, %v220_v51, 0.0 }
 0x12b   :  { %231 = vadd.xlane.f32.xlu1 %v230_v52 }
 0x186   :  { %v223_v61 = vpop.xlane.xlu2 %222 }
 0x187   :  { %v233_v62 = vmul.f32 %v223_v61, %v4514_v32  ;;  %v4206_v61 = vld [vmem:[%s4547_s21 + $0x2] ss:$0 sm:$0xff] }
 0x189   :  { %v237_v63 = vadd.f32 1e-05, %v233_v62 }
 0x18b   :  { %4254 = vrsqrt.f32 %v237_v63  ;;  %vm247_vm4 = vweird.f32 %v237_v63 }
 0x18e   :  { %v226_v0 = vpop.xlane.xlu2 %225 }
 0x18f   :  { %v234_v1 = vmul.f32 %v226_v0, %v4514_v32 }
 0x191   :  { %v4255_v2 = vpop.eup %4254  ;;  %v238_v3 = vadd.f32 1e-05, %v234_v1  ;;  %v4205_v1 = vld [vmem:[%s4547_s21] ss:$0 sm:$0xff] }
 0x192   :  { %v242_v4 = vmul.f32 %v4255_v2, %v237_v63  ;;  %vm248_vm3 = vweird.f32 %v4255_v2 }
 0x193   :  { %4256 = vrsqrt.f32 %v238_v3  ;;  %vm249_vm5 = vmor %vm247_vm4, %vm248_vm3  ;;  %vm257_vm7 = vweird.f32 %v238_v3 }
 0x194   :  { %v243_v5 = vmul.f32 %v4255_v2, %v242_v4 }
 0x196   :  { %v244_v6 = vmul.f32 0.5, %v243_v5  ;;  %v229_v7 = vpop.xlane.xlu0 %228 }
 0x197   :  { %v235_v8 = vmul.f32 %v229_v7, %v4514_v32 }
 0x198   :  { %v245_v9 = vsub.f32 1.5, %v244_v6 }
 0x199   :  { %v4257_v10 = vpop.eup %4256  ;;  %v239_v11 = vadd.f32 1e-05, %v235_v8 }
 0x19a   :  { %v246_v13 = vmul.f32 %v4255_v2, %v245_v9  ;;  %v252_v15 = vmul.f32 %v4257_v10, %v238_v3  ;;  %vm258_vm6 = vweird.f32 %v4257_v10 }
 0x19b   :  { %4258 = vrsqrt.f32 %v239_v11  ;;  %vm259_vm8 = vmor %vm257_vm7, %vm258_vm6  ;;  %vm267_vm10 = vweird.f32 %v239_v11 }
 0x19c   :  { %v250_v19 = vsel %vm249_vm5, %v4255_v2, %v246_v13  ;;  %v253_v20 = vmul.f32 %v4257_v10, %v252_v15 }
 0x19d   :  { %v281_v23 = vmul.f32 %v250_v19, %v4518_v35  ;;  %v3898_v19 = vld [vmem:[%s4552_s25 + $0x60] sm:$0xff] }
 0x19e   :  { %v254_v26 = vmul.f32 0.5, %v253_v20  ;;  %v232_v27 = vpop.xlane.xlu1 %231  ;;  %v4207_v20 = vld [vmem:[%s4547_s21 + $0x4] ss:$0 sm:$0xff] }
 0x19f   :  { %v286_v28 = vmul.f32 %v4566_v12, %v281_v23  ;;  %v236_v29 = vmul.f32 %v232_v27, %v4514_v32 }
 0x1a0   :  { %v255_v31 = vsub.f32 1.5, %v254_v26 }
 0x1a1   :  { %v4259_v33 = vpop.eup %4258  ;;  %v4576_v34 = vadd.f32 %v4204_v22, %v286_v28  ;;  %v240_v36 = vadd.f32 1e-05, %v236_v29 }
 0x1a2   :  { %v256_v37 = vmul.f32 %v4257_v10, %v255_v31  ;;  %v262_v38 = vmul.f32 %v4259_v33, %v239_v11  ;;  %vm268_vm9 = vweird.f32 %v4259_v33 }
 0x1a3   :  { %4260 = vrsqrt.f32 %v240_v36  ;;  %3855 = vmatmul.msk.f32.vlgmr.msra.gmra.mxu1 %vm189_vm1, %v4576_v34  ;;  %3864 = vmatmul.msk.f32.vlgmr.msra.gmra.mxu2 %vm189_vm1, %v4576_v34  ;;  %vm269_vm11 = vmor %vm267_vm10, %vm268_vm9  ;;  %vm277_vm13 = vweird.f32 %v240_v36 }
 0x1a4   :  { %v260_v35 = vsel %vm259_vm8, %v4257_v10, %v256_v37  ;;  %v263_v39 = vmul.f32 %v4259_v33, %v262_v38 }
 0x1a5   :  { %v282_v41 = vmul.f32 %v260_v35, %v4525_v40 }
 0x1a6   :  { %v264_v42 = vmul.f32 0.5, %v263_v39 }
 0x1a7   :  { %v287_v43 = vmul.f32 %v4566_v12, %v282_v41 }
 0x1a8   :  { %v265_v44 = vsub.f32 1.5, %v264_v42 }
 0x1a9   :  { %v4261_v46 = vpop.eup %4260  ;;  %v4584_v47 = vadd.f32 %v4204_v22, %v287_v43 }
 0x1aa   :  { %v266_v48 = vmul.f32 %v4259_v33, %v265_v44  ;;  %v272_v49 = vmul.f32 %v4261_v46, %v240_v36  ;;  %vm278_vm12 = vweird.f32 %v4261_v46  ;;  %v4208_v44 = vld [vmem:[%s4547_s21 + $0x3] ss:$0 sm:$0xff] }
 0x1ab   :  { %3856 = vmatmul.msk.f32.gmra.mxu1 %vm189_vm1, %v4584_v47  ;;  %3865 = vmatmul.msk.f32.gmra.mxu2 %vm189_vm1, %v4584_v47  ;;  %vm279_vm14 = vmor %vm277_vm13, %vm278_vm12 }
 0x1ac   :  { %v270_v51 = vsel %vm269_vm11, %v4259_v33, %v266_v48  ;;  %v273_v40 = vmul.f32 %v4261_v46, %v272_v49 }
 0x1ad   :  { %v283_v52 = vmul.f32 %v270_v51, %v4532_v45 }
 0x1ae   :  { %v274_v53 = vmul.f32 0.5, %v273_v40 }
 0x1af   :  { %v288_v54 = vmul.f32 %v4566_v12, %v283_v52 }
 0x1b0   :  { %v275_v55 = vsub.f32 1.5, %v274_v53 }
 0x1b1   :  { %v4592_v56 = vadd.f32 %v4204_v22, %v288_v54 }
 0x1b2   :  { %v276_v57 = vmul.f32 %v4261_v46, %v275_v55 }
 0x1b3   :  { %3857 = vmatmul.msk.f32.gmra.mxu1 %vm189_vm1, %v4592_v56  ;;  %3866 = vmatmul.msk.f32.gmra.mxu2 %vm189_vm1, %v4592_v56 }
 0x1b4   :  { %v280_v58 = vsel %vm279_vm14, %v4261_v46, %v276_v57 }
 0x1b5   :  { %v284_v45 = vmul.f32 %v280_v58, %v4539_v50 }
 0x1b7   :  { %v289_v59 = vmul.f32 %v4566_v12, %v284_v45  ;;  %v3901_v12 = vld [vmem:[%s4552_s25 + $0x78] sm:$0xff] }
 0x1b9   :  { %v4600_v60 = vadd.f32 %v4204_v22, %v289_v59 }
 0x1bb   :  { %3858 = vmatmul.msk.f32.vlgmr.msra.gmra.mxu3 %vm189_vm1, %v4600_v60  ;;  %3867 = vmatmul.msk.f32.gmra.mxu2 %vm189_vm1, %v4600_v60 }
 0x1c3   :  { %3873 = vmatmul.msk.f32.vlgmr.msrb.gmra.mxu3 %vm189_vm1, %v4576_v34 }
 0x1cb   :  { %3874 = vmatmul.msk.f32.gmra.mxu3 %vm189_vm1, %v4584_v47 }
 0x1d3   :  { %3875 = vmatmul.msk.f32.gmra.mxu3 %vm189_vm1, %v4592_v56 }
 0x1db   :  { %3876 = vmatmul.msk.f32.gmra.mxu3 %vm189_vm1, %v4600_v60 }
 0x220   :  { %v332_v63 = vpop.f32.mrf.mxu1 }
 0x221   :  { %v333_v3 = vadd.f32 %v4205_v1, %v332_v63 }
 0x226   :  { %v371_v50 = vpop.f32.mrf.mxu2 }
 0x227   :  { %v372_v2 = vadd.f32 %v4206_v61, %v371_v50 }
 0x228   :  { %v335_v5 = vpop.f32.mrf.mxu1 }
 0x229   :  { %v336_v6 = vadd.f32 %v4205_v1, %v335_v5 }
 0x22e   :  { %v374_v62 = vpop.f32.mrf.mxu2 }
 0x22f   :  { %v375_v0 = vadd.f32 %v4206_v61, %v374_v62 }
 0x230   :  { %v338_v10 = vpop.f32.mrf.mxu1 }
 0x231   :  { %3877 = vmatpush.xpose.msk.msrb.mxu1 %vm422_vm15, %v375_v0  ;;  %v339_v13 = vadd.f32 %v4205_v1, %v338_v10  ;;  %v3890_v10 = vld [vmem:[%s4552_s25 + $0x28] sm:$0xff] }
 0x235   :  { %3878 = vmatpush.xpose.msk.msrb.mxu1 %vm422_vm15, %v372_v2 }
 0x236   :  { %v377_v4 = vpop.f32.mrf.mxu2 }
 0x237   :  { %v378_v11 = vadd.f32 %v4206_v61, %v377_v4 }
 0x238   :  { %3879 = vmatmul.msk.f32.vlgmr.msrb.gmra.mxu1 %vm422_vm15, %v333_v3 }
 0x23e   :  { %v341_v7 = vpop.f32.mrf.mxu3  ;;  %v380_v8 = vpop.f32.mrf.mxu2 }
 0x23f   :  { %v381_v9 = vadd.f32 %v4206_v61, %v380_v8  ;;  %v342_v22 = vadd.f32 %v4205_v1, %v341_v7  ;;  %v3892_v8 = vld [vmem:[%s4552_s25 + $0x38] sm:$0xff] }
 0x240   :  { %3880 = vmatmul.msk.f32.gmra.mxu1 %vm422_vm15, %v336_v6 }
 0x241   :  { %3881 = vmatpush.xpose.msk.msrb.mxu2 %vm422_vm15, %v381_v9  ;;  %v3891_v9 = vld [vmem:[%s4552_s25 + $0x30] sm:$0xff] }
 0x245   :  { %3882 = vmatpush.xpose.msk.msrb.mxu2 %vm422_vm15, %v378_v11  ;;  %v3889_v11 = vld [vmem:[%s4552_s25 + $0x20] sm:$0xff] }
 0x246   :  { %v410_v15 = vpop.f32.mrf.mxu3 }
 0x247   :  { %v411_v26 = vadd.f32 %v4207_v20, %v410_v15 }
 0x248   :  { %3883 = vmatmul.msk.f32.vlgmr.msrb.gmra.mxu2 %vm422_vm15, %v339_v13 }
 0x249   :  { %662 = vmatpush.msra.mxu2 %v3901_v12 }
 0x24b   :  { %663 = vmatpush.msra.mxu2 %v3900_v16 }
 0x24d   :  { %664 = vmatpush.msra.mxu2 %v3899_v17 }
 0x24e   :  { %v413_v23 = vpop.f32.mrf.mxu3 }
 0x24f   :  { %665 = vmatpush.msra.mxu2 %v3898_v19  ;;  %v414_v25 = vadd.f32 %v4207_v20, %v413_v23 }
 0x250   :  { %3884 = vmatmul.msk.f32.gmra.mxu2 %vm422_vm15, %v342_v22 }
 0x251   :  { %561 = vmatpush.msra.mxu3 %v414_v25 }
 0x253   :  { %562 = vmatpush.msra.mxu3 %v411_v26 }
 0x256   :  { %v416_v27 = vpop.f32.mrf.mxu3 }
 0x257   :  { %v417_v30 = vadd.f32 %v4207_v20, %v416_v27 }
 0x258   :  { %3903 = vmatmul.msk.f32.vlgmr.msra.gmra.mxu2 %vm189_vm1, %v4576_v34 }
 0x25e   :  { %v419_v28 = vpop.f32.mrf.mxu3 }
 0x25f   :  { %v420_v29 = vadd.f32 %v4207_v20, %v419_v28 }
 0x260   :  { %3904 = vmatmul.msk.f32.gmra.mxu2 %vm189_vm1, %v4584_v47 }
 0x261   :  { %590 = vmatpush.msra.mxu1 %v420_v29 }
 0x263   :  { %591 = vmatpush.msra.mxu1 %v417_v30  ;;  %v3910_v30 = vld [vmem:[%s4552_s25 + $0xb8] sm:$0xff] }
 0x264   :  { %701 = vmatpush.msrb.mxu3 %v3910_v30 }
 0x265   :  { %623 = vmatpush.msrb.mxu1 %v3892_v8 }
 0x267   :  { %624 = vmatpush.msrb.mxu1 %v3891_v9 }
 0x268   :  { %3905 = vmatmul.msk.f32.gmra.mxu2 %vm189_vm1, %v4592_v56 }
 0x269   :  { %625 = vmatpush.msrb.mxu1 %v3890_v10 }
 0x26b   :  { %626 = vmatpush.msrb.mxu1 %v3889_v11 }
 0x270   :  { %3906 = vmatmul.msk.f32.gmra.mxu2 %vm189_vm1, %v4600_v60 }
 0x2b5   :  { %v452_v39 = vpop.f32.mrf.mxu1 }
 0x2b6   :  { %v493_v41 = vmul.f32 0.25, %v452_v39 }
 0x2b8   :  { %v497_v43 = vsel %vm422_vm15, %v493_v41, -inf }
 0x2bd   :  { %v455_v62 = vpop.f32.mrf.mxu1 }
 0x2be   :  { %v494_v63 = vmul.f32 0.25, %v455_v62 }
 0x2c0   :  { %v500_v4 = vsel %vm422_vm15, %v494_v63, -inf }
 0x2cb   :  { %v487_v31 = vpop.f32.mrf.mxu2 }
 0x2cc   :  { %v495_v33 = vmul.f32 0.25, %v487_v31  ;;  %v3909_v31 = vld [vmem:[%s4552_s25 + $0xb0] sm:$0xff] }
 0x2cd   :  { %702 = vmatpush.msrb.mxu3 %v3909_v31 }
 0x2ce   :  { %v503_v36 = vsel %vm422_vm15, %v495_v33, -inf }
 0x2cf   :  { %504 = vmax.xlane.f32.xlu2 %v503_v36  ;;  %v3907_v36 = vld [vmem:[%s4552_s25 + $0xa0] sm:$0xff] }
 0x2d3   :  { %v490_v37 = vpop.f32.mrf.mxu2 }
 0x2d4   :  { %v496_v38 = vmul.f32 0.25, %v490_v37 }
 0x2d6   :  { %v506_v35 = vsel %vm422_vm15, %v496_v38, -inf }
 0x2d7   :  { %507 = vmax.xlane.f32.xlu0 %v506_v35 }
 0x2db   :  { %v667_v42 = vpop.f32.mrf.mxu2 }
 0x2dc   :  { %v668_v49 = vadd.f32 %v4208_v44, %v667_v42  ;;  %v4209_v42 = vld [vmem:[%s4547_s21 + $0x1] ss:$0 sm:$0xff] }
 0x2df   :  { %498 = vmax.xlane.f32.xlu0 %v497_v43 }
 0x2e3   :  { %v670_v46 = vpop.f32.mrf.mxu2 }
 0x2e4   :  { %v671_v48 = vadd.f32 %v4208_v44, %v670_v46  ;;  %v600_v46 = vld [vmem:[%s4674_s29 + $0x8] sm:$0xff] }
 0x2e6   :  { %3916 = vmatpush.xpose.msk.msrb.mxu0 %vm422_vm15, %v671_v48  ;;  %4170 = vmatpush.xpose.msk.msrb.mxu2 %vm422_vm15, %v671_v48  ;;  %v599_v48 = vld [vmem:[%s4674_s29] sm:$0xff] }
 0x2ea   :  { %3917 = vmatpush.xpose.msk.msrb.mxu0 %vm422_vm15, %v668_v49  ;;  %4171 = vmatpush.xpose.msk.msrb.mxu2 %vm422_vm15, %v668_v49 }
 0x2eb   :  { %v673_v51 = vpop.f32.mrf.mxu2 }
 0x2ec   :  { %v674_v53 = vadd.f32 %v4208_v44, %v673_v51 }
 0x2f3   :  { %v676_v40 = vpop.f32.mrf.mxu2 }
 0x2f4   :  { %v677_v52 = vadd.f32 %v4208_v44, %v676_v40 }
 0x2f6   :  { %3920 = vmatpush.xpose.msk.msra.mxu0 %vm422_vm15, %v677_v52 }
 0x2fa   :  { %3921 = vmatpush.xpose.msk.msra.mxu0 %vm422_vm15, %v674_v53 }
 0x342   :  { %v505_v54 = vpop.xlane.xlu2 %504 }
 0x343   :  { %v511_v55 = vsub.f32 %v495_v33, %v505_v54  ;;  %v3908_v33 = vld [vmem:[%s4552_s25 + $0xa8] sm:$0xff]  ;;  %s3833_s25 = sld [smem:[%s5527_s0 + %s4465_s22]]  }
 0x344   :  { %703 = vmatpush.msrb.mxu3 %v3908_v33 }
 0x345   :  { %v517_v57 = vmul.f32 1.442695, %v511_v55 }
 0x346   :  { %704 = vmatpush.msrb.mxu3 %v3907_v36 }
 0x347   :  { %4262 = vpow2.f32 %v517_v57 }
 0x34a   :  { %v508_v58 = vpop.xlane.xlu0 %507 }
 0x34b   :  { %v512_v45 = vsub.f32 %v496_v38, %v508_v58 }
 0x34d   :  { %v4263_v59 = vpop.eup %4262  ;;  %v519_v50 = vmul.f32 1.442695, %v512_v45  ;;  %v4210_v45 = vld [vmem:[%s4547_s21 + $0x5] ss:$0 sm:$0xff]  ;;  %s3831_s21 = sld [smem:[%s5527_s0 + %s4464_s18]]  }
 0x34e   :  { %v527_v61 = vsel %vm422_vm15, %v4263_v59, 0.0 }
 0x34f   :  { %4264 = vpow2.f32 %v519_v50  ;;  %528 = vadd.xlane.f32.xlu1 %v527_v61 }
 0x352   :  { %v499_v0 = vpop.xlane.xlu0 %498 }
 0x353   :  { %v509_v1 = vsub.f32 %v493_v41, %v499_v0 }
 0x355   :  { %v4265_v2 = vpop.eup %4264  ;;  %v513_v3 = vmul.f32 1.442695, %v509_v1 }
 0x356   :  { %v530_v5 = vsel %vm422_vm15, %v4265_v2, 0.0 }
 0x357   :  { %4266 = vpow2.f32 %v513_v3  ;;  %501 = vmax.xlane.f32.xlu1 %v500_v4  ;;  %531 = vadd.xlane.f32.xlu2 %v530_v5 }
 0x35d   :  { %v4267_v6 = vpop.eup %4266 }
 0x35e   :  { %v521_v7 = vsel %vm422_vm15, %v4267_v6, 0.0 }
 0x35f   :  { %522 = vadd.xlane.f32.xlu2 %v521_v7 }
 0x3c2   :  { %v529_v12 = vpop.xlane.xlu1 %528 }
 0x3c3   :  { %4268 = vrcp.f32 %v529_v12 }
 0x3c9   :  { %v4269_v13 = vpop.eup %4268 }
 0x3ca   :  { %v539_v15 = vmul.f32 %v4269_v13, %v4263_v59  ;;  %v502_v16 = vpop.xlane.xlu1 %501  ;;  %v532_v17 = vpop.xlane.xlu2 %531 }
 0x3cb   :  { %v510_v19 = vsub.f32 %v494_v63, %v502_v16  ;;  %4270 = vrcp.f32 %v532_v17 }
 0x3cc   :  { %3887 = vmatmul.msk.f32.vlgmr.msra.gmra.mxu1 %vm422_vm15, %v539_v15 }
 0x3cd   :  { %v515_v20 = vmul.f32 1.442695, %v510_v19 }
 0x3cf   :  { %4272 = vpow2.f32 %v515_v20 }
 0x3d1   :  { %v4271_v22 = vpop.eup %4270 }
 0x3d2   :  { %v523_v23 = vpop.xlane.xlu2 %522  ;;  %v540_v25 = vmul.f32 %v4271_v22, %v4265_v2 }
 0x3d3   :  { %4274 = vrcp.f32 %v523_v23 }
 0x3d4   :  { %3888 = vmatmul.msk.f32.gmra.mxu1 %vm422_vm15, %v540_v25 }
 0x3d5   :  { %v4273_v26 = vpop.eup %4272 }
 0x3d6   :  { %v524_v27 = vsel %vm422_vm15, %v4273_v26, 0.0 }
 0x3d7   :  { %525 = vadd.xlane.f32.xlu0 %v524_v27 }
 0x3d9   :  { %v4275_v28 = vpop.eup %4274 }
 0x3da   :  { %v537_v29 = vmul.f32 %v4275_v28, %v4267_v6 }
 0x3dc   :  { %3885 = vmatmul.msk.f32.vlgmr.msra.gmra.mxu3 %vm422_vm15, %v537_v29  ;;  %3894 = vmatmul.msk.f32.vlgmr.msrb.gmra.mxu1 %vm189_vm1, %v4576_v34 }
 0x3e4   :  { %3895 = vmatmul.msk.f32.gmra.mxu1 %vm189_vm1, %v4584_v47 }
 0x3ec   :  { %3896 = vmatmul.msk.f32.gmra.mxu1 %vm189_vm1, %v4592_v56 }
 0x3f4   :  { %3897 = vmatmul.msk.f32.gmra.mxu1 %vm189_vm1, %v4600_v60 }
 0x449   :  { %v593_v37 = vpop.f32.mrf.mxu1 }
 0x44a   :  { %v526_v38 = vpop.xlane.xlu0 %525 }
 0x44b   :  { %4276 = vrcp.f32 %v526_v38  ;;  %v3929_v38 = vld [vmem:[%s4674_s29 + $0x18] sm:$0xff] }
 0x44c   :  { %923 = vmatpush.msra.mxu3 %v3929_v38  ;;  %v1088_v38 = vld [vmem:[%s3838_s3 + $0x10] sm:$0xff] }
 0x451   :  { %v4277_v35 = vpop.eup %4276  ;;  %v596_v39 = vpop.f32.mrf.mxu1 }
 0x452   :  { %v538_v41 = vmul.f32 %v4277_v35, %v4273_v26 }
 0x454   :  { %3886 = vmatmul.msk.f32.gmra.mxu3 %vm422_vm15, %v538_v41 }
 0x459   :  { %v628_v43 = vpop.f32.mrf.mxu1 }
 0x45a   :  { %v629_v44 = vadd.f32 %v4209_v42, %v628_v43 }
 0x45c   :  { %3912 = vmatmul.msk.f32.vlgmr.msrb.gmra.mxu3 %vm189_vm1, %v4576_v34  ;;  %3918 = vmatmul.msk.f32.vlgmr.msrb.gmra.mxu0 %vm422_vm15, %v629_v44 }
 0x45d   :  { %964 = vmatpush.msrb.mxu0 %v600_v46 }
 0x45f   :  { %965 = vmatpush.msrb.mxu0 %v599_v48  ;;  %v564_v54 = vpop.f32.mrf.mxu3 }
 0x461   :  { %v631_v49 = vpop.f32.mrf.mxu1 }
 0x462   :  { %v632_v51 = vadd.f32 %v4209_v42, %v631_v49 }
 0x464   :  { %3913 = vmatmul.msk.f32.gmra.mxu3 %vm189_vm1, %v4584_v47  ;;  %3919 = vmatmul.msk.f32.vlgmr.msrb.gmra.mxu2 %vm422_vm15, %v632_v51 }
 0x469   :  { %v634_v40 = vpop.f32.mrf.mxu1 }
 0x46a   :  { %v635_v52 = vadd.f32 %v4209_v42, %v634_v40 }
 0x46c   :  { %3914 = vmatmul.msk.f32.gmra.mxu3 %vm189_vm1, %v4592_v56  ;;  %3922 = vmatmul.msk.f32.vlgmr.msra.gmra.mxu0 %vm422_vm15, %v635_v52  ;;  %v3928_v52 = vld [vmem:[%s4674_s29 + $0x10] sm:$0xff]  ;;  %s4906_s29 = sld [smem:[%s5527_s0 + %s4466_s26]]  }
 0x46d   :  { %924 = vmatpush.msra.mxu3 %v3928_v52 }
 0x471   :  { %v637_v34 = vpop.f32.mrf.mxu1 }
 0x472   :  { %v638_v53 = vadd.f32 %v4209_v42, %v637_v34 }
 0x474   :  { %3915 = vmatmul.msk.f32.gmra.mxu3 %vm189_vm1, %v4600_v60  ;;  %3923 = vmatmul.msk.f32.gmra.mxu0 %vm422_vm15, %v638_v53 }
 0x47c   :  { %3934 = vmatmul.msk.f32.vlgmr.msrb.gmra.mxu0 %vm422_vm15, %v564_v54 }
 0x4d7   :  { %v567_v47 = vpop.f32.mrf.mxu3 }
 0x4d8   :  { %3935 = vmatmul.msk.f32.gmra.mxu0 %vm422_vm15, %v567_v47 }
 0x4d9   :  { %v747_v55 = vpop.f32.mrf.mxu0 }
 0x4da   :  { %v788_v57 = vmul.f32 0.25, %v747_v55 }
 0x4dc   :  { %v792_v56 = vsel %vm422_vm15, %v788_v57, -inf }
 0x4dd   :  { %793 = vmax.xlane.f32.xlu1 %v792_v56 }
 0x4df   :  { %v706_v58 = vpop.f32.mrf.mxu3 }
 0x4e0   :  { %3936 = vmatmul.msk.f32.gmra.mxu0 %vm422_vm15, %v593_v37  ;;  %v707_v63 = vadd.f32 %v4210_v45, %v706_v58  ;;  %v4211_v58 = vld [vmem:[%s4508_s17 + $0x4] ss:$0 sm:$0xff] }
 0x4e7   :  { %v709_v59 = vpop.f32.mrf.mxu3  ;;  %v750_v50 = vpop.f32.mrf.mxu2 }
 0x4e8   :  { %v710_v60 = vadd.f32 %v4210_v45, %v709_v59  ;;  %v789_v61 = vmul.f32 0.25, %v750_v50  ;;  %3937 = vmatmul.msk.f32.gmra.mxu0 %vm422_vm15, %v596_v39 }
 0x4e9   :  { %v782_v62 = vpop.f32.mrf.mxu0 }
 0x4ea   :  { %v790_v0 = vmul.f32 0.25, %v782_v62  ;;  %856 = vmatpush.msra.mxu1 %v710_v60  ;;  %v795_v1 = vsel %vm422_vm15, %v789_v61, -inf }
 0x4eb   :  { %796 = vmax.xlane.f32.xlu2 %v795_v1 }
 0x4ec   :  { %857 = vmatpush.msra.mxu1 %v707_v63  ;;  %v798_v2 = vsel %vm422_vm15, %v790_v0, -inf }
 0x4ed   :  { %799 = vmax.xlane.f32.xlu0 %v798_v2 }
 0x4ef   :  { %v712_v3 = vpop.f32.mrf.mxu3 }
 0x4f0   :  { %v713_v9 = vadd.f32 %v4210_v45, %v712_v3 }
 0x4f1   :  { %v785_v4 = vpop.f32.mrf.mxu0 }
 0x4f2   :  { %v791_v5 = vmul.f32 0.25, %v785_v4 }
 0x4f4   :  { %v801_v6 = vsel %vm422_vm15, %v791_v5, -inf }
 0x4f5   :  { %802 = vmax.xlane.f32.xlu1 %v801_v6 }
 0x4f7   :  { %v715_v7 = vpop.f32.mrf.mxu3 }
 0x4f8   :  { %v716_v8 = vadd.f32 %v4210_v45, %v715_v7 }
 0x4f9   :  { %v967_v55 = vpop.f32.mrf.mxu0 }
 0x4fa   :  { %885 = vmatpush.msra.mxu2 %v716_v8 }
 0x4fc   :  { %886 = vmatpush.msra.mxu2 %v713_v9 }
 0x550   :  { %v794_v10 = vpop.xlane.xlu1 %793 }
 0x551   :  { %v804_v11 = vsub.f32 %v788_v57, %v794_v10 }
 0x553   :  { %v808_v12 = vmul.f32 1.442695, %v804_v11 }
 0x555   :  { %4278 = vpow2.f32 %v808_v12  ;;  %v970_v60 = vpop.f32.mrf.mxu0 }
 0x55b   :  { %v4279_v13 = vpop.eup %4278 }
 0x55c   :  { %v816_v15 = vsel %vm422_vm15, %v4279_v13, 0.0 }
 0x55d   :  { %817 = vadd.xlane.f32.xlu2 %v816_v15  ;;  %v973_v1 = vpop.f32.mrf.mxu0 }
 0x55e   :  { %v797_v16 = vpop.xlane.xlu2 %796 }
 0x55f   :  { %v805_v17 = vsub.f32 %v789_v61, %v797_v16 }
 0x560   :  { %v800_v19 = vpop.xlane.xlu0 %799 }
 0x561   :  { %v810_v20 = vmul.f32 1.442695, %v805_v17  ;;  %v806_v22 = vsub.f32 %v790_v0, %v800_v19 }
 0x563   :  { %4280 = vpow2.f32 %v810_v20  ;;  %v812_v23 = vmul.f32 1.442695, %v806_v22 }
 0x565   :  { %4282 = vpow2.f32 %v812_v23  ;;  %v976_v7 = vpop.f32.mrf.mxu0 }
 0x568   :  { %v803_v25 = vpop.xlane.xlu1 %802 }
 0x569   :  { %v4281_v26 = vpop.eup %4280  ;;  %v807_v27 = vsub.f32 %v791_v5, %v803_v25 }
 0x56a   :  { %v819_v28 = vsel %vm422_vm15, %v4281_v26, 0.0 }
 0x56b   :  { %v4283_v29 = vpop.eup %4282  ;;  %v814_v30 = vmul.f32 1.442695, %v807_v27  ;;  %820 = vadd.xlane.f32.xlu0 %v819_v28 }
 0x56c   :  { %v822_v31 = vsel %vm422_vm15, %v4283_v29, 0.0 }
 0x56d   :  { %4284 = vpow2.f32 %v814_v30  ;;  %823 = vadd.xlane.f32.xlu1 %v822_v31 }
 0x573   :  { %v4285_v33 = vpop.eup %4284 }
 0x574   :  { %v825_v36 = vsel %vm422_vm15, %v4285_v33, 0.0 }
 0x575   :  { %826 = vadd.xlane.f32.xlu2 %v825_v36 }
 0x5d0   :  { %v818_v37 = vpop.xlane.xlu2 %817 }
 0x5d1   :  { %4286 = vrcp.f32 %v818_v37  ;;  %v1089_v37 = vld [vmem:[%s3838_s3 + $0x18] sm:$0xff] }
 0x5d2   :  { %1115 = vmatpush.msrb.mxu1 %v1089_v37 }
 0x5d4   :  { %1116 = vmatpush.msrb.mxu1 %v1088_v38  ;;  %v1174_v38 = vld [vmem:[%s3839_s7 + $0x30] sm:$0xff] }
 0x5d7   :  { %v4287_v35 = vpop.eup %4286 }
 0x5d8   :  { %v832_v39 = vmul.f32 %v4287_v35, %v4279_v13  ;;  %v1087_v35 = vld [vmem:[%s3838_s3 + $0x8] sm:$0xff] }
 0x5d9   :  { %1117 = vmatpush.msrb.mxu1 %v1087_v35  ;;  %v1173_v35 = vld [vmem:[%s3839_s7 + $0x28] sm:$0xff] }
 0x5da   :  { %3924 = vmatmul.msk.f32.vlgmr.msra.gmra.mxu1 %vm422_vm15, %v832_v39  ;;  %v1086_v39 = vld [vmem:[%s3838_s3] sm:$0xff]  ;;  %s4941_s3 = sld [smem:[%s5527_s0 + %s4467_s30]]  }
 0x5db   :  { %1118 = vmatpush.msrb.mxu1 %v1086_v39  ;;  %v1172_v39 = vld [vmem:[%s3839_s7 + $0x20] sm:$0xff] }
 0x5de   :  { %v821_v41 = vpop.xlane.xlu0 %820 }
 0x5df   :  { %4288 = vrcp.f32 %v821_v41 }
 0x5e0   :  { %v824_v42 = vpop.xlane.xlu1 %823 }
 0x5e1   :  { %4290 = vrcp.f32 %v824_v42 }
 0x5e5   :  { %v4289_v43 = vpop.eup %4288 }
 0x5e6   :  { %v833_v44 = vmul.f32 %v4289_v43, %v4281_v26 }
 0x5e7   :  { %v4291_v46 = vpop.eup %4290 }
 0x5e8   :  { %v834_v48 = vmul.f32 %v4291_v46, %v4283_v29  ;;  %v827_v49 = vpop.xlane.xlu2 %826  ;;  %3925 = vmatmul.msk.f32.gmra.mxu1 %vm422_vm15, %v833_v44 }
 0x5e9   :  { %4292 = vrcp.f32 %v827_v49 }
 0x5ea   :  { %3926 = vmatmul.msk.f32.vlgmr.msra.gmra.mxu2 %vm422_vm15, %v834_v48 }
 0x5ef   :  { %v4293_v51 = vpop.eup %4292 }
 0x5f0   :  { %v835_v40 = vmul.f32 %v4293_v51, %v4285_v33 }
 0x5f2   :  { %3927 = vmatmul.msk.f32.gmra.mxu2 %vm422_vm15, %v835_v40 }
 0x657   :  { %v859_v34 = vpop.f32.mrf.mxu1 }
 0x658   :  { %3930 = vmatmul.msk.f32.vlgmr.msra.gmra.mxu3 %vm422_vm15, %v859_v34 }
 0x665   :  { %v862_v53 = vpop.f32.mrf.mxu1 }
 0x666   :  { %3931 = vmatmul.msk.f32.gmra.mxu3 %vm422_vm15, %v862_v53 }
 0x66d   :  { %v888_v54 = vpop.f32.mrf.mxu2 }
 0x66e   :  { %3932 = vmatmul.msk.f32.gmra.mxu3 %vm422_vm15, %v888_v54  ;;  %v4212_v54 = vld [vmem:[%s4508_s17 + $0x2] ss:$0 sm:$0xff] }
 0x675   :  { %v891_v47 = vpop.f32.mrf.mxu2 }
 0x676   :  { %3933 = vmatmul.msk.f32.gmra.mxu3 %vm422_vm15, %v891_v47 }
 0x6db   :  { %v926_v57 = vpop.f32.mrf.mxu3 }
 0x6dc   :  { %v968_v56 = vadd.f32 %v967_v55, %v926_v57 }
 0x6de   :  { %v979_v45 = vadd.f32 %v968_v56, %v4493_v14 }
 0x6e0   :  { %v4717_v59 = vadd.f32 %v4211_v58, %v979_v45 }
 0x6e2   :  { %v988_v50 = vsel %vm189_vm1, %v4717_v59, 0.0 }
 0x6e3   :  { %989 = vadd.xlane.f32.xlu0 %v988_v50 }
 0x6e9   :  { %v929_v61 = vpop.f32.mrf.mxu3 }
 0x6ea   :  { %v971_v62 = vadd.f32 %v970_v60, %v929_v61 }
 0x6ec   :  { %v980_v63 = vadd.f32 %v971_v62, %v4497_v18 }
 0x6ee   :  { %v4722_v0 = vadd.f32 %v4211_v58, %v980_v63 }
 0x6f0   :  { %v991_v2 = vsel %vm189_vm1, %v4722_v0, 0.0 }
 0x6f1   :  { %992 = vadd.xlane.f32.xlu1 %v991_v2  ;;  %v932_v3 = vpop.f32.mrf.mxu3 }
 0x6f2   :  { %v974_v14 = vadd.f32 %v973_v1, %v932_v3 }
 0x6f4   :  { %v981_v4 = vadd.f32 %v974_v14, %v4501_v21 }
 0x6f6   :  { %v4727_v5 = vadd.f32 %v4211_v58, %v981_v4 }
 0x6f8   :  { %v994_v6 = vsel %vm189_vm1, %v4727_v5, 0.0 }
 0x6f9   :  { %995 = vadd.xlane.f32.xlu2 %v994_v6  ;;  %v935_v8 = vpop.f32.mrf.mxu3 }
 0x6fa   :  { %v977_v18 = vadd.f32 %v976_v7, %v935_v8 }
 0x6fc   :  { %v982_v9 = vadd.f32 %v977_v18, %v4510_v24 }
 0x6fe   :  { %v4732_v10 = vadd.f32 %v4211_v58, %v982_v9  ;;  %v4213_v58 = vld [vmem:[%s4508_s17 + $0x3] ss:$0 sm:$0xff] }
 0x700   :  { %v997_v11 = vsel %vm189_vm1, %v4732_v10, 0.0 }
 0x701   :  { %998 = vadd.xlane.f32.xlu0 %v997_v11 }
 0x756   :  { %v990_v12 = vpop.xlane.xlu0 %989 }
 0x757   :  { %v1000_v21 = vmul.f32 %v990_v12, %v4514_v32 }
 0x759   :  { %v1004_v13 = vsub.f32 %v4717_v59, %v1000_v21 }
 0x75b   :  { %v1008_v15 = vmul.f32 %v1004_v13, %v1004_v13 }
 0x75d   :  { %v1012_v16 = vsel %vm189_vm1, %v1008_v15, 0.0 }
 0x75e   :  { %1013 = vadd.xlane.f32.xlu1 %v1012_v16 }
 0x764   :  { %v993_v17 = vpop.xlane.xlu1 %992 }
 0x765   :  { %v1001_v19 = vmul.f32 %v993_v17, %v4514_v32 }
 0x767   :  { %v4741_v24 = vsub.f32 %v4722_v0, %v1001_v19 }
 0x769   :  { %v1009_v20 = vmul.f32 %v4741_v24, %v4741_v24 }
 0x76b   :  { %v1015_v22 = vsel %vm189_vm1, %v1009_v20, 0.0 }
 0x76c   :  { %1016 = vadd.xlane.f32.xlu2 %v1015_v22  ;;  %v996_v23 = vpop.xlane.xlu2 %995 }
 0x76d   :  { %v1002_v25 = vmul.f32 %v996_v23, %v4514_v32 }
 0x76f   :  { %v4748_v26 = vsub.f32 %v4727_v5, %v1002_v25 }
 0x771   :  { %v1010_v27 = vmul.f32 %v4748_v26, %v4748_v26 }
 0x773   :  { %v1018_v28 = vsel %vm189_vm1, %v1010_v27, 0.0 }
 0x774   :  { %1019 = vadd.xlane.f32.xlu0 %v1018_v28  ;;  %v999_v29 = vpop.xlane.xlu0 %998 }
 0x775   :  { %v1003_v30 = vmul.f32 %v999_v29, %v4514_v32 }
 0x777   :  { %v4755_v31 = vsub.f32 %v4732_v10, %v1003_v30 }
 0x779   :  { %v1011_v33 = vmul.f32 %v4755_v31, %v4755_v31 }
 0x77b   :  { %v1021_v36 = vsel %vm189_vm1, %v1011_v33, 0.0 }
 0x77c   :  { %1022 = vadd.xlane.f32.xlu1 %v1021_v36 }
 0x7d1   :  { %v1014_v41 = vpop.xlane.xlu1 %1013 }
 0x7d2   :  { %v1024_v42 = vmul.f32 %v1014_v41, %v4514_v32  ;;  %v1171_v41 = vld [vmem:[%s3839_s7 + $0x18] sm:$0xff] }
 0x7d4   :  { %v1028_v43 = vadd.f32 1e-05, %v1024_v42  ;;  %v1169_v42 = vld [vmem:[%s3839_s7 + $0x8] sm:$0xff] }
 0x7d6   :  { %4294 = vrsqrt.f32 %v1028_v43  ;;  %vm1038_vm3 = vweird.f32 %v1028_v43 }
 0x7dc   :  { %v4295_v44 = vpop.eup %4294 }
 0x7dd   :  { %v1033_v46 = vmul.f32 %v4295_v44, %v1028_v43  ;;  %vm1039_vm2 = vweird.f32 %v4295_v44  ;;  %v1168_v43 = vld [vmem:[%s3839_s7] sm:$0xff] }
 0x7de   :  { %vm1040_vm4 = vmor %vm1038_vm3, %vm1039_vm2  ;;  %vm1397_vm3 = vcmask 1043456  }
 0x7df   :  { %v1034_v48 = vmul.f32 %v4295_v44, %v1033_v46  ;;  %v1017_v49 = vpop.xlane.xlu2 %1016 }
 0x7e0   :  { %v1025_v51 = vmul.f32 %v1017_v49, %v4514_v32 }
 0x7e1   :  { %v1035_v40 = vmul.f32 0.5, %v1034_v48 }
 0x7e2   :  { %v1029_v52 = vadd.f32 1e-05, %v1025_v51 }
 0x7e3   :  { %v1036_v34 = vsub.f32 1.5, %v1035_v40 }
 0x7e4   :  { %4296 = vrsqrt.f32 %v1029_v52  ;;  %vm1048_vm6 = vweird.f32 %v1029_v52 }
 0x7e5   :  { %v1037_v53 = vmul.f32 %v4295_v44, %v1036_v34 }
 0x7e7   :  { %v1041_v47 = vsel %vm1040_vm4, %v4295_v44, %v1037_v53  ;;  %v1020_v55 = vpop.xlane.xlu0 %1019  ;;  %v4214_v44 = vld [vmem:[%s4508_s17 + $0x6] ss:$0 sm:$0xff] }
 0x7e8   :  { %v1072_v57 = vmul.f32 %v1041_v47, %v1004_v13  ;;  %v1026_v56 = vmul.f32 %v1020_v55, %v4514_v32 }
 0x7ea   :  { %v4297_v45 = vpop.eup %4296  ;;  %v1077_v50 = vmul.f32 %v4212_v54, %v1072_v57  ;;  %v1030_v60 = vadd.f32 1e-05, %v1026_v56 }
 0x7eb   :  { %v1043_v61 = vmul.f32 %v4297_v45, %v1029_v52  ;;  %vm1049_vm5 = vweird.f32 %v4297_v45 }
 0x7ec   :  { %4298 = vrsqrt.f32 %v1030_v60  ;;  %v1082_v62 = vadd.f32 %v4213_v58, %v1077_v50  ;;  %vm1050_vm7 = vmor %vm1048_vm6, %vm1049_vm5  ;;  %vm1058_vm9 = vweird.f32 %v1030_v60 }
 0x7ed   :  { %v1044_v63 = vmul.f32 %v4297_v45, %v1043_v61 }
 0x7ee   :  { %3938 = vmatmul.msk.f32.vlgmr.msrb.gmra.mxu1 %vm189_vm1, %v1082_v62 }
 0x7ef   :  { %v1045_v1 = vmul.f32 0.5, %v1044_v63  ;;  %v1023_v2 = vpop.xlane.xlu1 %1022 }
 0x7f0   :  { %v1027_v3 = vmul.f32 %v1023_v2, %v4514_v32 }
 0x7f1   :  { %v1046_v14 = vsub.f32 1.5, %v1045_v1 }
 0x7f2   :  { %v4299_v4 = vpop.eup %4298  ;;  %v1031_v6 = vadd.f32 1e-05, %v1027_v3 }
 0x7f3   :  { %v1047_v7 = vmul.f32 %v4297_v45, %v1046_v14  ;;  %v1053_v8 = vmul.f32 %v4299_v4, %v1030_v60  ;;  %vm1059_vm8 = vweird.f32 %v4299_v4 }
 0x7f4   :  { %4300 = vrsqrt.f32 %v1031_v6  ;;  %vm1060_vm10 = vmor %vm1058_vm9, %vm1059_vm8  ;;  %vm1068_vm12 = vweird.f32 %v1031_v6 }
 0x7f5   :  { %v1051_v18 = vsel %vm1050_vm7, %v4297_v45, %v1047_v7  ;;  %v1054_v9 = vmul.f32 %v4299_v4, %v1053_v8 }
 0x7f6   :  { %v1073_v11 = vmul.f32 %v1051_v18, %v4741_v24 }
 0x7f7   :  { %v1055_v12 = vmul.f32 0.5, %v1054_v9 }
 0x7f8   :  { %v1078_v21 = vmul.f32 %v4212_v54, %v1073_v11 }
 0x7f9   :  { %v1056_v13 = vsub.f32 1.5, %v1055_v12 }
 0x7fa   :  { %v4301_v15 = vpop.eup %4300  ;;  %v1083_v16 = vadd.f32 %v4213_v58, %v1078_v21 }
 0x7fb   :  { %v1057_v17 = vmul.f32 %v4299_v4, %v1056_v13  ;;  %v1063_v19 = vmul.f32 %v4301_v15, %v1031_v6  ;;  %vm1069_vm11 = vweird.f32 %v4301_v15 }
 0x7fc   :  { %3939 = vmatmul.msk.f32.gmra.mxu1 %vm189_vm1, %v1083_v16  ;;  %vm1070_vm13 = vmor %vm1068_vm12, %vm1069_vm11  ;;  %vm1394_vm11 = vcmask 31744  }
 0x7fd   :  { %v1061_v20 = vsel %vm1060_vm10, %v4299_v4, %v1057_v17  ;;  %v1064_v22 = vmul.f32 %v4301_v15, %v1063_v19 }
 0x7fe   :  { %v1074_v23 = vmul.f32 %v1061_v20, %v4748_v26  ;;  %v1175_v26 = vld [vmem:[%s3839_s7 + $0x38] sm:$0xff] }
 0x7ff   :  { %v1065_v25 = vmul.f32 0.5, %v1064_v22  ;;  %1197 = vmatpush.msrb.mxu2 %v1175_v26 }
 0x800   :  { %v1079_v27 = vmul.f32 %v4212_v54, %v1074_v23 }
 0x801   :  { %v1066_v28 = vsub.f32 1.5, %v1065_v25  ;;  %1198 = vmatpush.msrb.mxu2 %v1174_v38 }
 0x802   :  { %v1084_v24 = vadd.f32 %v4213_v58, %v1079_v27 }
 0x803   :  { %v1067_v29 = vmul.f32 %v4301_v15, %v1066_v28  ;;  %1199 = vmatpush.msrb.mxu2 %v1173_v35 }
 0x804   :  { %3940 = vmatmul.msk.f32.gmra.mxu1 %vm189_vm1, %v1084_v24  ;;  %v4215_v24 = vld [vmem:[%s4508_s17 + $0x5] ss:$0 sm:$0xff] }
 0x805   :  { %v1071_v30 = vsel %vm1070_vm13, %v4301_v15, %v1067_v29  ;;  %1200 = vmatpush.msrb.mxu2 %v1172_v39 }
 0x806   :  { %v1075_v33 = vmul.f32 %v1071_v30, %v4755_v31  ;;  %v1170_v31 = vld [vmem:[%s3839_s7 + $0x10] sm:$0xff]  ;;  %s4946_s7 = sld [smem:[%s5527_s0 + %s4468_s4]]  }
 0x807   :  { %1201 = vmatpush.msrb.mxu2 %v1171_v41 }
 0x808   :  { %v1080_v36 = vmul.f32 %v4212_v54, %v1075_v33 }
 0x809   :  { %1202 = vmatpush.msrb.mxu2 %v1170_v31 }
 0x80a   :  { %v1085_v37 = vadd.f32 %v4213_v58, %v1080_v36 }
 0x80b   :  { %1203 = vmatpush.msrb.mxu2 %v1169_v42 }
 0x80c   :  { %3941 = vmatmul.msk.f32.gmra.mxu1 %vm189_vm1, %v1085_v37 }
 0x80d   :  { %1204 = vmatpush.msrb.mxu2 %v1168_v43 }
 0x86b   :  { %v1120_v46 = vpop.f32.mrf.mxu1 }
 0x86c   :  { %v1121_v48 = vadd.f32 %v4214_v44, %v1120_v46 }
 0x86e   :  { %v1136_v49 = vmul.f32 0.044715, %v1121_v48  ;;  %v1132_v56 = vmul.f32 0.5, %v1121_v48 }
 0x870   :  { %v1140_v51 = vmul.f32 %v1136_v49, %v1121_v48 }
 0x872   :  { %v1144_v40 = vmul.f32 %v1140_v51, %v1121_v48 }
 0x874   :  { %v1148_v52 = vadd.f32 %v1144_v40, %v1121_v48 }
 0x876   :  { %v1152_v34 = vmul.f32 0.7978846, %v1148_v52 }
 0x878   :  { %4302 = vtanh.f32 %v1152_v34 }
 0x879   :  { %v1123_v53 = vpop.f32.mrf.mxu1 }
 0x87a   :  { %v1124_v54 = vadd.f32 %v4214_v44, %v1123_v53 }
 0x87c   :  { %v1137_v47 = vmul.f32 0.044715, %v1124_v54  ;;  %v1133_v9 = vmul.f32 0.5, %v1124_v54 }
 0x87e   :  { %v4303_v55 = vpop.eup %4302  ;;  %v1141_v57 = vmul.f32 %v1137_v47, %v1124_v54 }
 0x87f   :  { %v1160_v58 = vadd.f32 1.0, %v4303_v55 }
 0x880   :  { %v1145_v45 = vmul.f32 %v1141_v57, %v1124_v54 }
 0x881   :  { %v1126_v50 = vpop.f32.mrf.mxu1  ;;  %v1164_v60 = vmul.f32 %v1160_v58, %v1132_v56 }
 0x882   :  { %v1127_v61 = vadd.f32 %v4214_v44, %v1126_v50  ;;  %v1149_v62 = vadd.f32 %v1145_v45, %v1124_v54 }
 0x883   :  { %3942 = vmatmul.msk.f32.vlgmr.msrb.gmra.mxu2 %vm134_vm0, %v1164_v60 }
 0x884   :  { %v1138_v63 = vmul.f32 0.044715, %v1127_v61  ;;  %v1153_v1 = vmul.f32 0.7978846, %v1149_v62  ;;  %v1134_v19 = vmul.f32 0.5, %v1127_v61 }
 0x886   :  { %4304 = vtanh.f32 %v1153_v1  ;;  %v1142_v2 = vmul.f32 %v1138_v63, %v1127_v61 }
 0x888   :  { %v1146_v3 = vmul.f32 %v1142_v2, %v1127_v61 }
 0x889   :  { %v1129_v14 = vpop.f32.mrf.mxu1 }
 0x88a   :  { %v1130_v4 = vadd.f32 %v4214_v44, %v1129_v14  ;;  %v1150_v6 = vadd.f32 %v1146_v3, %v1127_v61 }
 0x88c   :  { %v4305_v7 = vpop.eup %4304  ;;  %v1139_v8 = vmul.f32 0.044715, %v1130_v4  ;;  %v1154_v18 = vmul.f32 0.7978846, %v1150_v6  ;;  %v1135_v25 = vmul.f32 0.5, %v1130_v4 }
 0x88d   :  { %v1161_v11 = vadd.f32 1.0, %v4305_v7 }
 0x88e   :  { %4306 = vtanh.f32 %v1154_v18  ;;  %v1143_v12 = vmul.f32 %v1139_v8, %v1130_v4 }
 0x88f   :  { %v1165_v21 = vmul.f32 %v1161_v11, %v1133_v9 }
 0x890   :  { %v1147_v13 = vmul.f32 %v1143_v12, %v1130_v4 }
 0x891   :  { %3943 = vmatmul.msk.f32.gmra.mxu2 %vm134_vm0, %v1165_v21 }
 0x892   :  { %v1151_v15 = vadd.f32 %v1147_v13, %v1130_v4 }
 0x894   :  { %v4307_v16 = vpop.eup %4306  ;;  %v1155_v17 = vmul.f32 0.7978846, %v1151_v15 }
 0x895   :  { %v1162_v20 = vadd.f32 1.0, %v4307_v16 }
 0x896   :  { %4308 = vtanh.f32 %v1155_v17  ;;  %v1352_v17 = vld [vmem:[%s4832_s19 + $0x18] sm:$0xff] }
 0x897   :  { %v1166_v22 = vmul.f32 %v1162_v20, %v1134_v19  ;;  %v1383_v19 = vld [vmem:[%s3824_s23] sm:$0xf]  ;;  %v1351_v20 = vld [vmem:[%s4832_s19 + $0x10] sm:$0xff]  ;;  %1373 = vmatpush.msrb.mxu3 %v1352_v17  ;;  %s5479_s23 = sld [smem:[%s5527_s0 + %s4472_s20]]  }
 0x898   :  { %3947 = vmatpush.msk.msra.mxu0 %vm1397_vm3, %v1383_v19  ;;  %vm1357_vm3 = vcmask 1041409  }
 0x899   :  { %3944 = vmatmul.msk.f32.gmra.mxu2 %vm134_vm0, %v1166_v22  ;;  %1374 = vmatpush.msrb.mxu3 %v1351_v20 }
 0x89c   :  { %v4309_v23 = vpop.eup %4308 }
 0x89d   :  { %v1163_v27 = vadd.f32 1.0, %v4309_v23 }
 0x89f   :  { %v1167_v28 = vmul.f32 %v1163_v27, %v1135_v25  ;;  %v1350_v27 = vld [vmem:[%s4832_s19 + $0x8] sm:$0xff] }
 0x8a0   :  { %1375 = vmatpush.msrb.mxu3 %v1350_v27 }
 0x8a1   :  { %3945 = vmatmul.msk.f32.gmra.mxu2 %vm134_vm0, %v1167_v28 }
 0x906   :  { %v1206_v29 = vpop.f32.mrf.mxu2 }
 0x907   :  { %v1207_v30 = vadd.f32 %v4215_v24, %v1206_v29  ;;  %v1349_v29 = vld [vmem:[%s4832_s19] sm:$0xff]  ;;  %s5176_s19 = sld [smem:[%s5527_s0 + %s4471_s16]]  }
 0x908   :  { %1376 = vmatpush.msrb.mxu3 %v1349_v29  ;;  %v1425_v29 = vld [vmem:[%s3847_s1] sm:$0xff]  ;;  %s3850_s1 = sld [smem:[%s5527_s0 + %s4474_s28]]  }
 0x909   :  { %v1218_v33 = vadd.f32 %v1207_v30, %v4717_v59 }
 0x90a   :  { %1445 = vmatpush.msra.mxu3 %v1425_v29 }
 0x90b   :  { %v1224_v36 = vsel %vm189_vm1, %v1218_v33, 0.0 }
 0x90c   :  { %1225 = vadd.xlane.f32.xlu2 %v1224_v36 }
 0x914   :  { %v1209_v37 = vpop.f32.mrf.mxu2 }
 0x915   :  { %v1210_v26 = vadd.f32 %v4215_v24, %v1209_v37 }
 0x917   :  { %v1219_v38 = vadd.f32 %v1210_v26, %v4722_v0 }
 0x919   :  { %v1227_v35 = vsel %vm189_vm1, %v1219_v38, 0.0 }
 0x91a   :  { %1228 = vadd.xlane.f32.xlu0 %v1227_v35 }
 0x91c   :  { %v1212_v39 = vpop.f32.mrf.mxu2 }
 0x91d   :  { %v1213_v41 = vadd.f32 %v4215_v24, %v1212_v39 }
 0x91f   :  { %v1220_v31 = vadd.f32 %v1213_v41, %v4727_v5  ;;  %v1381_v41 = vld [vmem:[%s3822_s27] sm:$0x1] }
 0x920   :  { %1390 = vst [vmem:[#allocation1] ss:$9 sm:$0xff] %v1381_v41 }
 0x921   :  { %v1230_v42 = vsel %vm189_vm1, %v1220_v31, 0.0 }
 0x922   :  { %1231 = vadd.xlane.f32.xlu1 %v1230_v42  ;;  %v4217_v42 = vld [vmem:[%s4794_s11 + $0x1] ss:$0 sm:$0xff] }
 0x924   :  { %v1215_v43 = vpop.f32.mrf.mxu2 }
 0x925   :  { %v1216_v44 = vadd.f32 %v4215_v24, %v1215_v43 }
 0x927   :  { %v1221_v59 = vadd.f32 %v1216_v44, %v4732_v10 }
 0x929   :  { %v1233_v0 = vsel %vm189_vm1, %v1221_v59, 0.0 }
 0x92a   :  { %1234 = vadd.xlane.f32.xlu2 %v1233_v0 }
 0x97f   :  { %v1226_v46 = vpop.xlane.xlu2 %1225 }
 0x980   :  { %v1236_v48 = vmul.f32 %v1226_v46, %v4514_v32 }
 0x982   :  { %v4799_v5 = vsub.f32 %v1218_v33, %v1236_v48  ;;  %v4216_v33 = vld [vmem:[%s4794_s11] ss:$0 sm:$0xff] }
 0x984   :  { %v1244_v49 = vmul.f32 %v4799_v5, %v4799_v5 }
 0x986   :  { %v1248_v51 = vsel %vm189_vm1, %v1244_v49, 0.0 }
 0x987   :  { %1249 = vadd.xlane.f32.xlu0 %v1248_v51 }
 0x98d   :  { %v1229_v40 = vpop.xlane.xlu0 %1228 }
 0x98e   :  { %v1237_v52 = vmul.f32 %v1229_v40, %v4514_v32 }
 0x990   :  { %v4805_v34 = vsub.f32 %v1219_v38, %v1237_v52 }
 0x992   :  { %v1245_v10 = vmul.f32 %v4805_v34, %v4805_v34 }
 0x994   :  { %v1251_v53 = vsel %vm189_vm1, %v1245_v10, 0.0 }
 0x995   :  { %v1232_v54 = vpop.xlane.xlu1 %1231  ;;  %1252 = vadd.xlane.f32.xlu1 %v1251_v53 }
 0x996   :  { %v1238_v47 = vmul.f32 %v1232_v54, %v4514_v32 }
 0x998   :  { %v4811_v55 = vsub.f32 %v1220_v31, %v1238_v47  ;;  %v1382_v31 = vld [vmem:[%s3822_s27 + $0x1] sm:$0x1]  ;;  %s3832_s27 = sld [smem:[%s5527_s0 + %s4473_s24]]  }
 0x999   :  { %1392 = vst [vmem:[#allocation1 + $0x1] ss:$9 sm:$0xff] %v1382_v31 }
 0x99a   :  { %v1246_v57 = vmul.f32 %v4811_v55, %v4811_v55 }
 0x99c   :  { %v1254_v56 = vsel %vm189_vm1, %v1246_v57, 0.0 }
 0x99d   :  { %v1235_v58 = vpop.xlane.xlu2 %1234  ;;  %1255 = vadd.xlane.f32.xlu2 %v1254_v56  ;;  %v4458_v56 = vmov 16.0  }
 0x99e   :  { %v1239_v45 = vmul.f32 %v1235_v58, %v4514_v32 }
 0x9a0   :  { %v4817_v50 = vsub.f32 %v1221_v59, %v1239_v45  ;;  %v1393_v54 = vld [vmem:[#allocation1] sm:$0xff] }
 0x9a1   :  { %3948 = vmatmul.msk.f32.vlgmr.msra.gmra.mxu0 %vm1394_vm11, %v1393_v54 }
 0x9a2   :  { %v1247_v60 = vmul.f32 %v4817_v50, %v4817_v50 }
 0x9a4   :  { %v1257_v61 = vsel %vm189_vm1, %v1247_v60, 0.0 }
 0x9a5   :  { %1258 = vadd.xlane.f32.xlu0 %v1257_v61 }
 0x9fa   :  { %v1250_v62 = vpop.xlane.xlu0 %1249 }
 0x9fb   :  { %v1260_v63 = vmul.f32 %v1250_v62, %v4514_v32 }
 0x9fd   :  { %v1264_v1 = vadd.f32 1e-05, %v1260_v63 }
 0x9ff   :  { %4310 = vrsqrt.f32 %v1264_v1  ;;  %vm1274_vm2 = vweird.f32 %v1264_v1 }
 0xa05   :  { %v4311_v2 = vpop.eup %4310 }
 0xa06   :  { %v1269_v3 = vmul.f32 %v4311_v2, %v1264_v1  ;;  %vm1275_vm14 = vweird.f32 %v4311_v2 }
 0xa07   :  { %vm1276_vm4 = vmor %vm1274_vm2, %vm1275_vm14 }
 0xa08   :  { %v1270_v14 = vmul.f32 %v4311_v2, %v1269_v3  ;;  %v1253_v4 = vpop.xlane.xlu1 %1252 }
 0xa09   :  { %v1261_v6 = vmul.f32 %v1253_v4, %v4514_v32 }
 0xa0a   :  { %v1271_v8 = vmul.f32 0.5, %v1270_v14 }
 0xa0b   :  { %v1265_v7 = vadd.f32 1e-05, %v1261_v6 }
 0xa0c   :  { %v1272_v18 = vsub.f32 1.5, %v1271_v8 }
 0xa0d   :  { %4312 = vrsqrt.f32 %v1265_v7  ;;  %vm1284_vm6 = vweird.f32 %v1265_v7 }
 0xa0e   :  { %v1273_v13 = vmul.f32 %v4311_v2, %v1272_v18 }
 0xa10   :  { %v1256_v9 = vpop.xlane.xlu2 %1255  ;;  %v1277_v22 = vsel %vm1276_vm4, %v4311_v2, %v1273_v13  ;;  %vm1426_vm4 = vcmask 64512  }
 0xa11   :  { %v1262_v11 = vmul.f32 %v1256_v9, %v4514_v32  ;;  %v1308_v36 = vmul.f32 %v1277_v22, %v4799_v5 }
 0xa13   :  { %v4313_v12 = vpop.eup %4312  ;;  %v1266_v21 = vadd.f32 1e-05, %v1262_v11  ;;  %v1313_v43 = vmul.f32 %v4216_v33, %v1308_v36  ;;  %v4218_v36 = vld [vmem:[%s4825_s15] ss:$0 sm:$0xff]  ;;  %s5154_s15 = sld [smem:[%s5527_s0 + %s4470_s13]]  }
 0xa14   :  { %v1279_v15 = vmul.f32 %v4313_v12, %v1265_v7  ;;  %vm1285_vm5 = vweird.f32 %v4313_v12 }
 0xa15   :  { %4314 = vrsqrt.f32 %v1266_v21  ;;  %vm1286_vm7 = vmor %vm1284_vm6, %vm1285_vm5  ;;  %v1318_v5 = vadd.f32 %v4217_v42, %v1313_v43  ;;  %vm1294_vm9 = vweird.f32 %v1266_v21  ;;  %v1491_v43 = vld [vmem:[%s3848_s14 + $0x30] sm:$0xff] }
 0xa16   :  { %v1280_v16 = vmul.f32 %v4313_v12, %v1279_v15 }
 0xa18   :  { %v1281_v23 = vmul.f32 0.5, %v1280_v16  ;;  %v1259_v25 = vpop.xlane.xlu0 %1258 }
 0xa19   :  { %v1263_v28 = vmul.f32 %v1259_v25, %v4514_v32 }
 0xa1a   :  { %v1282_v24 = vsub.f32 1.5, %v1281_v23 }
 0xa1b   :  { %v4315_v30 = vpop.eup %4314  ;;  %v1267_v37 = vadd.f32 1e-05, %v1263_v28 }
 0xa1c   :  { %v1283_v26 = vmul.f32 %v4313_v12, %v1282_v24  ;;  %v1289_v38 = vmul.f32 %v4315_v30, %v1266_v21  ;;  %vm1295_vm8 = vweird.f32 %v4315_v30 }
 0xa1d   :  { %4316 = vrsqrt.f32 %v1267_v37  ;;  %vm1296_vm10 = vmor %vm1294_vm9, %vm1295_vm8  ;;  %vm1304_vm13 = vweird.f32 %v1267_v37 }
 0xa1e   :  { %v1287_v35 = vsel %vm1286_vm7, %v4313_v12, %v1283_v26  ;;  %v1290_v39 = vmul.f32 %v4315_v30, %v1289_v38  ;;  %4318 = vrcp.f32 %v4458_v56  ;;  %v1422_v38 = vld [vmem:[%s3849_s5 + $0x8] sm:$0xff] }
 0xa1f   :  { %v1309_v44 = vmul.f32 %v1287_v35, %v4805_v34  ;;  %v1322_v34 = vsel %vm189_vm1, %v1318_v5, 0.0  ;;  %v1421_v35 = vld [vmem:[%s3849_s5] sm:$0xff] }
 0xa20   :  { %v1291_v59 = vmul.f32 0.5, %v1290_v39  ;;  %v4219_v39 = vld [vmem:[%s4794_s11 + $0x2] ss:$0 sm:$0xff]  ;;  %s4463_s11 = smov 24  }
 0xa21   :  { %v1314_v0 = vmul.f32 %v4216_v33, %v1309_v44  ;;  %v1490_v44 = vld [vmem:[%s3848_s14 + $0x28] sm:$0xff]  ;;  %v1485_v5 = vld [vmem:[%s3848_s14] sm:$0xff]  ;;  %s3845_s17 = sld [smem:[%s5527_s0 + %s4463_s11]]  }
 0xa22   :  { %v1292_v46 = vsub.f32 1.5, %v1291_v59  ;;  %v1489_v59 = vld [vmem:[%s3848_s14 + $0x20] sm:$0xff] }
 0xa23   :  { %v4317_v48 = vpop.eup %4316  ;;  %v1319_v49 = vadd.f32 %v4217_v42, %v1314_v0  ;;  %v1488_v0 = vld [vmem:[%s3848_s14 + $0x18] sm:$0xff] }
 0xa24   :  { %v1293_v51 = vmul.f32 %v4315_v30, %v1292_v46  ;;  %v1299_v40 = vmul.f32 %v4317_v48, %v1267_v37  ;;  %vm1305_vm12 = vweird.f32 %v4317_v48  ;;  %v4319_v63 = vpop.eup %4318  ;;  %v1418_v37 = vpop.f32.mrf.mxu0  ;;  %v1487_v46 = vld [vmem:[%s3848_s14 + $0x10] sm:$0xff] }
 0xa25   :  { %v1323_v52 = vsel %vm189_vm1, %v1319_v49, 0.0  ;;  %vm1306_vm14 = vmor %vm1304_vm13, %vm1305_vm12  ;;  %v1341_v6 = vmul.f32 16.0, %v4319_v63  ;;  %vm1345_vm2 = vweird.f32 %v4319_v63  ;;  %v1419_v26 = vadd.f32 %v4218_v36, %v1418_v37 }
 0xa26   :  { %v1297_v10 = vsel %vm1296_vm10, %v4315_v30, %v1293_v51  ;;  %v1300_v53 = vmul.f32 %v4317_v48, %v1299_v40  ;;  %v1324_v47 = vadd.f32 %v1323_v52, %v1322_v34  ;;  %v1424_v30 = vld [vmem:[%s3849_s5 + $0x18] sm:$0xff]  ;;  %v4220_v51 = vld [vmem:[%s4867_s9] ss:$0 sm:$0xff] }
 0xa27   :  { %v1310_v58 = vmul.f32 %v1297_v10, %v4811_v55  ;;  %v1342_v9 = vsub.f32 1.0, %v1341_v6  ;;  %1465 = vmatpush.msrb.mxu0 %v1424_v30  ;;  %v1563_v6 = vld [vmem:[%s3831_s21 + $0x18] sm:$0xff] }
 0xa28   :  { %v1301_v57 = vmul.f32 0.5, %v1300_v53  ;;  %v1325_v61 = vrot.slane %v1324_v47, 4 }
 0xa29   :  { %v1315_v62 = vmul.f32 %v4216_v33, %v1310_v58  ;;  %v1343_v13 = vmul.f32 %v4319_v63, %v1342_v9 }
 0xa2a   :  { %v1302_v45 = vsub.f32 1.5, %v1301_v57  ;;  %v1326_v3 = vadd.f32 %v1325_v61, %v1324_v47  ;;  %v1534_v61 = vld [vmem:[%s3845_s17 + $0x38] sm:$0xff] }
 0xa2b   :  { %v1320_v14 = vadd.f32 %v4217_v42, %v1315_v62  ;;  %v1344_v19 = vadd.f32 %v4319_v63, %v1343_v13  ;;  %1548 = vmatpush.msra.mxu2 %v1534_v61  ;;  %v1533_v62 = vld [vmem:[%s3845_s17 + $0x30] sm:$0xff]  ;;  %v3970_v61 = vld [vmem:[%s4946_s7 + $0x98] sm:$0xff] }
 0xa2c   :  { %v1303_v60 = vmul.f32 %v4317_v48, %v1302_v45  ;;  %v1327_v8 = vrot.slane %v1326_v3, 2 }
 0xa2d   :  { %v1331_v18 = vsel %vm189_vm1, %v1320_v14, 0.0  ;;  %v1346_v23 = vsel %vm1345_vm2, %v4319_v63, %v1344_v19  ;;  %1549 = vmatpush.msra.mxu2 %v1533_v62  ;;  %v1532_v63 = vld [vmem:[%s3845_s17 + $0x28] sm:$0xff]  ;;  %v1706_v62 = vld [vmem:[%s4946_s7 + $0x10] sm:$0xff] }
 0xa2e   :  { %v1307_v1 = vsel %vm1306_vm14, %v4317_v48, %v1303_v60  ;;  %v1328_v12 = vadd.f32 %v1327_v8, %v1326_v3  ;;  %v1486_v48 = vld [vmem:[%s3848_s14 + $0x8] sm:$0xff]  ;;  %v1529_v3 = vld [vmem:[%s3845_s17 + $0x10] sm:$0xff]  ;;  %v4221_v8 = vld [vmem:[%s4867_s9 + $0x1] ss:$0 sm:$0xff] }
 0xa2f   :  { %v1311_v2 = vmul.f32 %v1307_v1, %v4817_v50  ;;  %1550 = vmatpush.msra.mxu2 %v1532_v63  ;;  %v1531_v1 = vld [vmem:[%s3845_s17 + $0x20] sm:$0xff]  ;;  %v1528_v14 = vld [vmem:[%s3845_s17 + $0x8] sm:$0xff]  ;;  %v3960_v63 = vld [vmem:[%s4946_s7 + $0x50] sm:$0xff] }
 0xa30   :  { %v1329_v16 = vrot.slane %v1328_v12, 1 }
 0xa31   :  { %v1316_v4 = vmul.f32 %v4216_v33, %v1311_v2  ;;  %v1423_v33 = vld [vmem:[%s3849_s5 + $0x10] sm:$0xff]  ;;  %v1530_v2 = vld [vmem:[%s3845_s17 + $0x18] sm:$0xff]  ;;  %1551 = vmatpush.msra.mxu2 %v1531_v1 }
 0xa32   :  { %v1330_v20 = vadd.f32 %v1329_v16, %v1328_v12  ;;  %1466 = vmatpush.msrb.mxu0 %v1423_v33  ;;  %v3969_v1 = vld [vmem:[%s4946_s7 + $0x90] sm:$0xff] }
 0xa33   :  { %v1321_v7 = vadd.f32 %v4217_v42, %v1316_v4  ;;  %v1492_v42 = vld [vmem:[%s3848_s14 + $0x38] sm:$0xff]  ;;  %1552 = vmatpush.msra.mxu2 %v1530_v2  ;;  %v1527_v4 = vld [vmem:[%s3845_s17] sm:$0xff]  ;;  %v1705_v2 = vld [vmem:[%s4946_s7 + $0x8] sm:$0xff] }
 0xa34   :  { %v1347_v27 = vmul.f32 %v1346_v23, %v1330_v20  ;;  %1467 = vmatpush.msrb.mxu0 %v1422_v38  ;;  %1506 = vmatpush.msra.mxu1 %v1492_v42  ;;  %v1560_v20 = vld [vmem:[%s3831_s21] sm:$0xff] }
 0xa35   :  { %v1332_v55 = vsel %vm189_vm1, %v1321_v7, 0.0  ;;  %1553 = vmatpush.msra.mxu2 %v1529_v3  ;;  %v1562_v7 = vld [vmem:[%s3831_s21 + $0x10] sm:$0xff]  ;;  %v3959_v3 = vld [vmem:[%s4946_s7 + $0x48] sm:$0xff] }
 0xa36   :  { %v1333_v11 = vadd.f32 %v1332_v55, %v1331_v18  ;;  %1468 = vmatpush.msrb.mxu0 %v1421_v35  ;;  %1507 = vmatpush.msra.mxu1 %v1491_v43 }
 0xa37   :  { %1554 = vmatpush.msra.mxu2 %v1528_v14  ;;  %v3968_v14 = vld [vmem:[%s4946_s7 + $0x88] sm:$0xff] }
 0xa38   :  { %v1334_v21 = vrot.slane %v1333_v11, 4  ;;  %1508 = vmatpush.msra.mxu1 %v1490_v44 }
 0xa39   :  { %1555 = vmatpush.msra.mxu2 %v1527_v4  ;;  %v1704_v4 = vld [vmem:[%s4946_s7] sm:$0xff] }
 0xa3a   :  { %v1335_v15 = vadd.f32 %v1334_v21, %v1333_v11  ;;  %1509 = vmatpush.msra.mxu1 %v1489_v59 }
 0xa3b   :  { %1814 = vmatpush.msrb.mxu2 %v3970_v61  ;;  %v3988_v61 = vld [vmem:[%s4946_s7 + $0x20] sm:$0xff] }
 0xa3c   :  { %v1336_v17 = vrot.slane %v1335_v15, 2  ;;  %1510 = vmatpush.msra.mxu1 %v1488_v0 }
 0xa3d   :  { %1815 = vmatpush.msrb.mxu2 %v3969_v1 }
 0xa3e   :  { %v1337_v50 = vadd.f32 %v1336_v17, %v1335_v15  ;;  %1511 = vmatpush.msra.mxu1 %v1487_v46 }
 0xa3f   :  { %1816 = vmatpush.msrb.mxu2 %v3968_v14 }
 0xa40   :  { %v1338_v22 = vrot.slane %v1337_v50, 1  ;;  %1512 = vmatpush.msra.mxu1 %v1486_v48 }
 0xa42   :  { %v1339_v25 = vadd.f32 %v1338_v22, %v1337_v50  ;;  %1513 = vmatpush.msra.mxu1 %v1485_v5  ;;  %v1561_v50 = vld [vmem:[%s3831_s21 + $0x8] sm:$0xff]  ;;  %v4222_v22 = vld [vmem:[%s4867_s9 + $0x2] ss:$0 sm:$0xff] }
 0xa44   :  { %v1348_v28 = vmul.f32 %v1346_v23, %v1339_v25 }
 0xa46   :  { %v1358_v24 = vsel %vm1357_vm3, %v1348_v28, %v1347_v27  ;;  %v1588_v28 = vld [vmem:[%s3833_s25 + $0x8] sm:$0xff] }
 0xa47   :  { %3946 = vmatmul.msk.f32.vlgmr.msrb.gmra.mxu3 %vm189_vm1, %v1358_v24  ;;  %v1587_v24 = vld [vmem:[%s3833_s25] sm:$0xff] }
 0xa48   :  { %1579 = vmatpush.msrb.mxu3 %v1563_v6  ;;  %v3958_v6 = vld [vmem:[%s4946_s7 + $0x40] sm:$0xff] }
 0xa4a   :  { %1580 = vmatpush.msrb.mxu3 %v1562_v7  ;;  %v3967_v7 = vld [vmem:[%s4946_s7 + $0x80] sm:$0xff] }
 0xa4b   :  { %1817 = vmatpush.msrb.mxu2 %v3967_v7 }
 0xa4c   :  { %1581 = vmatpush.msrb.mxu3 %v1561_v50 }
 0xa4e   :  { %1582 = vmatpush.msrb.mxu3 %v1560_v20 }
 0xa4f   :  { %3949 = vmatmul.msk.f32.vlgmr.msra.gmra.mxu3 %vm1426_vm4, %v1419_v26 }
 0xaca   :  { %v1378_v41 = vpop.f32.mrf.mxu3 }
 0xacb   :  { %v1379_v31 = vadd.f32 %v4219_v39, %v1378_v41 }
 0xacd   :  { %3950 = vmatmul.msk.f32.vlgmr.msrb.gmra.mxu0 %vm189_vm1, %v1379_v31 }
 0xad2   :  { %v1447_v49 = vpop.f32.mrf.mxu3 }
 0xb4a   :  { %v1470_v40 = vpop.f32.mrf.mxu0 }
 0xb4b   :  { %v1471_v52 = vadd.f32 %v1470_v40, %v1447_v49 }
 0xb4d   :  { %v1475_v10 = vadd.f32 %v4220_v51, %v1471_v52 }
 0xb4f   :  { %v1477_v53 = vmul.f32 0.044715, %v1475_v10  ;;  %v1476_v58 = vmul.f32 0.5, %v1475_v10 }
 0xb51   :  { %v1478_v34 = vmul.f32 %v1477_v53, %v1475_v10 }
 0xb53   :  { %v1479_v54 = vmul.f32 %v1478_v34, %v1475_v10 }
 0xb55   :  { %v1480_v47 = vadd.f32 %v1479_v54, %v1475_v10 }
 0xb57   :  { %v1481_v57 = vmul.f32 0.7978846, %v1480_v47 }
 0xb59   :  { %4320 = vtanh.f32 %v1481_v57 }
 0xb5f   :  { %v4321_v56 = vpop.eup %4320 }
 0xb60   :  { %v1483_v45 = vadd.f32 1.0, %v4321_v56 }
 0xb62   :  { %v1484_v60 = vmul.f32 %v1483_v45, %v1476_v58  ;;  %v1707_v45 = vld [vmem:[%s4946_s7 + $0x18] sm:$0xff] }
 0xb63   :  { %1736 = vmatpush.msra.mxu0 %v1707_v45 }
 0xb64   :  { %3951 = vmatmul.msk.f32.vlgmr.msra.gmra.mxu1 %vm134_vm0, %v1484_v60  ;;  %v3961_v60 = vld [vmem:[%s4946_s7 + $0x58] sm:$0xff] }
 0xb65   :  { %1775 = vmatpush.msrb.mxu1 %v3961_v60  ;;  %1737 = vmatpush.msra.mxu0 %v1706_v62 }
 0xb67   :  { %1776 = vmatpush.msrb.mxu1 %v3960_v63  ;;  %1738 = vmatpush.msra.mxu0 %v1705_v2 }
 0xb69   :  { %1777 = vmatpush.msrb.mxu1 %v3959_v3  ;;  %1739 = vmatpush.msra.mxu0 %v1704_v4 }
 0xb6b   :  { %1778 = vmatpush.msrb.mxu1 %v3958_v6 }
 0xbe1   :  { %v1515_v18 = vpop.f32.mrf.mxu1 }
 0xbe2   :  { %v1516_v55 = vadd.f32 %v4221_v8, %v1515_v18 }
 0xbe4   :  { %v1519_v9 = vmul.f32 0.044715, %v1516_v55  ;;  %v1518_v16 = vmul.f32 0.5, %v1516_v55 }
 0xbe6   :  { %v1520_v11 = vmul.f32 %v1519_v9, %v1516_v55 }
 0xbe8   :  { %v1521_v12 = vmul.f32 %v1520_v11, %v1516_v55 }
 0xbea   :  { %v1522_v21 = vadd.f32 %v1521_v12, %v1516_v55 }
 0xbec   :  { %v1523_v13 = vmul.f32 0.7978846, %v1522_v21 }
 0xbee   :  { %4322 = vtanh.f32 %v1523_v13 }
 0xbf4   :  { %v4323_v15 = vpop.eup %4322 }
 0xbf5   :  { %v1525_v17 = vadd.f32 1.0, %v4323_v15 }
 0xbf7   :  { %v1526_v19 = vmul.f32 %v1525_v17, %v1518_v16 }
 0xbf9   :  { %3952 = vmatmul.msk.f32.vlgmr.msra.gmra.mxu2 %vm134_vm0, %v1526_v19 }
 0xc7c   :  { %v1557_v23 = vpop.f32.mrf.mxu2 }
 0xc7d   :  { %v1558_v25 = vadd.f32 %v4222_v22, %v1557_v23 }
 0xc7f   :  { %3953 = vmatmul.msk.f32.vlgmr.msrb.gmra.mxu3 %vm189_vm1, %v1558_v25 }
 0xd02   :  { %v1584_v27 = vpop.f32.mrf.mxu3 }
 0xd03   :  { %v1590_v29 = vrot.slane %v1584_v27, 1  ;;  %v1591_v30 = vperm.slane %v1584_v27, 0 }
 0xd05   :  { %v1592_v33 = vperm.slane %v1590_v29, 0  ;;  %v4889_v36 = vadd.f32 %v1591_v30, %v1588_v28  ;;  %v4891_v37 = vadd.f32 %v1591_v30, %v1587_v24 }
 0xd07   :  { %v1609_v26 = vsel %vm189_vm1, %v4889_v36, 0.0  ;;  %v1606_v38 = vsel %vm189_vm1, %v4891_v37, 0.0  ;;  %v4897_v35 = vadd.f32 %v1592_v33, %v1587_v24  ;;  %v4901_v41 = vadd.f32 %v1592_v33, %v1588_v28 }
 0xd08   :  { %1610 = vadd.xlane.f32.xlu2 %v1609_v26  ;;  %1607 = vadd.xlane.f32.xlu1 %v1606_v38 }
 0xd09   :  { %v1612_v39 = vsel %vm189_vm1, %v4897_v35, 0.0  ;;  %v1615_v31 = vsel %vm189_vm1, %v4901_v41, 0.0 }
 0xd0a   :  { %1613 = vadd.xlane.f32.xlu0 %v1612_v39 }
 0xd10   :  { %1616 = vadd.xlane.f32.xlu1 %v1615_v31 }
 0xd7b   :  { %v1611_v42 = vpop.xlane.xlu2 %1610  ;;  %v1608_v43 = vpop.xlane.xlu1 %1607 }
 0xd7c   :  { %v1619_v44 = vmul.f32 %v1611_v42, %v4514_v32  ;;  %v1618_v59 = vmul.f32 %v1608_v43, %v4514_v32 }
 0xd7d   :  { %v1614_v0 = vpop.xlane.xlu0 %1613 }
 0xd7e   :  { %v4913_v46 = vsub.f32 %v4889_v36, %v1619_v44  ;;  %v4916_v48 = vsub.f32 %v4891_v37, %v1618_v59  ;;  %v1620_v5 = vmul.f32 %v1614_v0, %v4514_v32  ;;  %v4223_v44 = vld [vmem:[%s4906_s29] ss:$0 sm:$0xff] }
 0xd80   :  { %v4920_v49 = vsub.f32 %v4897_v35, %v1620_v5  ;;  %v1626_v51 = vmul.f32 %v4916_v48, %v4916_v48  ;;  %v1627_v40 = vmul.f32 %v4913_v46, %v4913_v46  ;;  %v3991_v5 = vld [vmem:[%s4946_s7 + $0x38] sm:$0xff] }
 0xd81   :  { %2031 = vmatpush.msra.mxu2 %v3991_v5 }
 0xd82   :  { %v1630_v52 = vsel %vm189_vm1, %v1626_v51, 0.0  ;;  %v1633_v10 = vsel %vm189_vm1, %v1627_v40, 0.0  ;;  %v1628_v53 = vmul.f32 %v4920_v49, %v4920_v49  ;;  %v3990_v51 = vld [vmem:[%s4946_s7 + $0x30] sm:$0xff]  ;;  %v4224_v40 = vld [vmem:[%s4906_s29 + $0x1] ss:$0 sm:$0xff] }
 0xd83   :  { %1631 = vadd.xlane.f32.xlu2 %v1630_v52  ;;  %v1617_v34 = vpop.xlane.xlu1 %1616  ;;  %1634 = vadd.xlane.f32.xlu0 %v1633_v10 }
 0xd84   :  { %v1621_v54 = vmul.f32 %v1617_v34, %v4514_v32  ;;  %v1636_v47 = vsel %vm189_vm1, %v1628_v53, 0.0  ;;  %2032 = vmatpush.msra.mxu2 %v3990_v51 }
 0xd85   :  { %1637 = vadd.xlane.f32.xlu1 %v1636_v47 }
 0xd86   :  { %v4933_v57 = vsub.f32 %v4901_v41, %v1621_v54  ;;  %v3989_v54 = vld [vmem:[%s4946_s7 + $0x28] sm:$0xff] }
 0xd87   :  { %2033 = vmatpush.msra.mxu2 %v3989_v54 }
 0xd88   :  { %v1629_v56 = vmul.f32 %v4933_v57, %v4933_v57 }
 0xd89   :  { %2034 = vmatpush.msra.mxu2 %v3988_v61 }
 0xd8a   :  { %v1639_v58 = vsel %vm189_vm1, %v1629_v56, 0.0 }
 0xd8b   :  { %1640 = vadd.xlane.f32.xlu2 %v1639_v58 }
 0xdf6   :  { %v1632_v8 = vpop.xlane.xlu2 %1631  ;;  %v1635_v18 = vpop.xlane.xlu0 %1634 }
 0xdf7   :  { %v1642_v55 = vmul.f32 %v1632_v8, %v4514_v32  ;;  %v1643_v9 = vmul.f32 %v1635_v18, %v4514_v32  ;;  %v4226_v18 = vld [vmem:[%s4941_s3 + $0x2] ss:$0 sm:$0xff] }
 0xdf8   :  { %v1638_v11 = vpop.xlane.xlu1 %1637 }
 0xdf9   :  { %v1646_v12 = vadd.f32 1e-05, %v1642_v55  ;;  %v1647_v21 = vadd.f32 1e-05, %v1643_v9  ;;  %v1644_v13 = vmul.f32 %v1638_v11, %v4514_v32 }
 0xdfb   :  { %4324 = vrsqrt.f32 %v1646_v12  ;;  %v1648_v15 = vadd.f32 1e-05, %v1644_v13  ;;  %vm1656_vm6 = vweird.f32 %v1646_v12  ;;  %vm1666_vm9 = vweird.f32 %v1647_v21  ;;  %v4227_v13 = vld [vmem:[%s4941_s3 + $0x4] ss:$0 sm:$0xff] }
 0xdfc   :  { %4326 = vrsqrt.f32 %v1647_v21 }
 0xdfd   :  { %4328 = vrsqrt.f32 %v1648_v15  ;;  %vm1676_vm12 = vweird.f32 %v1648_v15 }
 0xdfe   :  { %v1641_v16 = vpop.xlane.xlu2 %1640 }
 0xdff   :  { %v1645_v17 = vmul.f32 %v1641_v16, %v4514_v32 }
 0xe01   :  { %v4325_v19 = vpop.eup %4324  ;;  %v4964_v50 = vadd.f32 1e-05, %v1645_v17 }
 0xe02   :  { %v4327_v20 = vpop.eup %4326  ;;  %v1651_v22 = vmul.f32 %v4325_v19, %v1646_v12  ;;  %vm1657_vm5 = vweird.f32 %v4325_v19  ;;  %v4225_v12 = vld [vmem:[%s4941_s3] ss:$0 sm:$0xff] }
 0xe03   :  { %v4329_v23 = vpop.eup %4328  ;;  %v1661_v25 = vmul.f32 %v4327_v20, %v1647_v21  ;;  %4330 = vrsqrt.f32 %v4964_v50  ;;  %vm1667_vm7 = vweird.f32 %v4327_v20  ;;  %vm1658_vm8 = vmor %vm1656_vm6, %vm1657_vm5  ;;  %vm1686_vm2 = vweird.f32 %v4964_v50 }
 0xe04   :  { %v1652_v27 = vmul.f32 %v4325_v19, %v1651_v22  ;;  %v1671_v28 = vmul.f32 %v4329_v23, %v1648_v15  ;;  %vm1668_vm10 = vmor %vm1666_vm9, %vm1667_vm7  ;;  %vm1677_vm11 = vweird.f32 %v4329_v23 }
 0xe05   :  { %v1662_v24 = vmul.f32 %v4327_v20, %v1661_v25  ;;  %vm1678_vm13 = vmor %vm1676_vm12, %vm1677_vm11 }
 0xe06   :  { %v1653_v29 = vmul.f32 0.5, %v1652_v27  ;;  %v1672_v30 = vmul.f32 %v4329_v23, %v1671_v28 }
 0xe07   :  { %v1663_v33 = vmul.f32 0.5, %v1662_v24 }
 0xe08   :  { %v1654_v26 = vsub.f32 1.5, %v1653_v29  ;;  %v1673_v42 = vmul.f32 0.5, %v1672_v30  ;;  %v4000_v29 = vld [vmem:[%s4946_s7 + $0x78] sm:$0xff] }
 0xe09   :  { %v4331_v38 = vpop.eup %4330  ;;  %v1664_v39 = vsub.f32 1.5, %v1663_v33 }
 0xe0a   :  { %v1655_v31 = vmul.f32 %v4325_v19, %v1654_v26  ;;  %v1681_v43 = vmul.f32 %v4331_v38, %v4964_v50  ;;  %v1674_v53 = vsub.f32 1.5, %v1673_v42  ;;  %vm1687_vm14 = vweird.f32 %v4331_v38  ;;  %v3997_v42 = vld [vmem:[%s4946_s7 + $0x60] sm:$0xff] }
 0xe0b   :  { %v1665_v59 = vmul.f32 %v4327_v20, %v1664_v39  ;;  %vm1688_vm3 = vmor %vm1686_vm2, %vm1687_vm14 }
 0xe0c   :  { %v1659_v0 = vsel %vm1658_vm8, %v4325_v19, %v1655_v31  ;;  %v1682_v34 = vmul.f32 %v4331_v38, %v1681_v43  ;;  %v1675_v45 = vmul.f32 %v4329_v23, %v1674_v53  ;;  %v3998_v31 = vld [vmem:[%s4946_s7 + $0x68] sm:$0xff] }
 0xe0d   :  { %v1690_v52 = vmul.f32 %v1659_v0, %v4916_v48  ;;  %v1669_v10 = vsel %vm1668_vm10, %v4327_v20, %v1665_v59 }
 0xe0e   :  { %v1691_v58 = vmul.f32 %v1669_v10, %v4913_v46  ;;  %v1683_v60 = vmul.f32 0.5, %v1682_v34  ;;  %v1679_v62 = vsel %vm1678_vm13, %v4329_v23, %v1675_v45 }
 0xe0f   :  { %v1695_v47 = vmul.f32 %v4223_v44, %v1690_v52  ;;  %v1692_v1 = vmul.f32 %v1679_v62, %v4920_v49 }
 0xe10   :  { %v1696_v48 = vmul.f32 %v4223_v44, %v1691_v58  ;;  %v1684_v46 = vsub.f32 1.5, %v1683_v60  ;;  %v4229_v58 = vld [vmem:[%s4941_s3 + $0x3] ss:$0 sm:$0xff] }
 0xe11   :  { %v4974_v56 = vadd.f32 %v4224_v40, %v1695_v47  ;;  %v1697_v3 = vmul.f32 %v4223_v44, %v1692_v1 }
 0xe12   :  { %v4984_v63 = vadd.f32 %v4224_v40, %v1696_v48  ;;  %v1685_v2 = vmul.f32 %v4331_v38, %v1684_v46 }
 0xe13   :  { %3954 = vmatmul.msk.f32.vlgmr.msra.gmra.mxu0 %vm189_vm1, %v4974_v56  ;;  %3963 = vmatmul.msk.f32.vlgmr.msrb.gmra.mxu1 %vm189_vm1, %v4974_v56  ;;  %v4994_v4 = vadd.f32 %v4224_v40, %v1697_v3 }
 0xe14   :  { %3972 = vmatmul.msk.f32.vlgmr.msrb.gmra.mxu2 %vm189_vm1, %v4974_v56  ;;  %v1689_v14 = vsel %vm1688_vm3, %v4331_v38, %v1685_v2  ;;  %v3999_v38 = vld [vmem:[%s4946_s7 + $0x70] sm:$0xff] }
 0xe15   :  { %v1693_v49 = vmul.f32 %v1689_v14, %v4933_v57 }
 0xe17   :  { %v1698_v6 = vmul.f32 %v4223_v44, %v1693_v49 }
 0xe19   :  { %v5003_v7 = vadd.f32 %v4224_v40, %v1698_v6 }
 0xe1b   :  { %3955 = vmatmul.msk.f32.gmra.mxu0 %vm189_vm1, %v4984_v63  ;;  %3964 = vmatmul.msk.f32.gmra.mxu1 %vm189_vm1, %v4984_v63 }
 0xe1c   :  { %3973 = vmatmul.msk.f32.gmra.mxu2 %vm189_vm1, %v4984_v63 }
 0xe23   :  { %3956 = vmatmul.msk.f32.gmra.mxu0 %vm189_vm1, %v4994_v4  ;;  %3965 = vmatmul.msk.f32.gmra.mxu1 %vm189_vm1, %v4994_v4 }
 0xe24   :  { %3974 = vmatmul.msk.f32.gmra.mxu2 %vm189_vm1, %v4994_v4 }
 0xe2b   :  { %3957 = vmatmul.msk.f32.gmra.mxu0 %vm189_vm1, %v5003_v7  ;;  %3966 = vmatmul.msk.f32.gmra.mxu1 %vm189_vm1, %v5003_v7 }
 0xe2c   :  { %3975 = vmatmul.msk.f32.gmra.mxu2 %vm189_vm1, %v5003_v7 }
 0xe34   :  { %3993 = vmatmul.msk.f32.vlgmr.msra.gmra.mxu2 %vm189_vm1, %v4974_v56 }
 0xe3c   :  { %3994 = vmatmul.msk.f32.gmra.mxu2 %vm189_vm1, %v4984_v63 }
 0xe44   :  { %3995 = vmatmul.msk.f32.gmra.mxu2 %vm189_vm1, %v4994_v4 }
 0xe4c   :  { %3996 = vmatmul.msk.f32.gmra.mxu2 %vm189_vm1, %v5003_v7 }
 0xe90   :  { %v1780_v57 = vpop.f32.mrf.mxu1  ;;  %v1741_v8 = vpop.f32.mrf.mxu0 }
 0xe91   :  { %v1781_v21 = vadd.f32 %v4226_v18, %v1780_v57  ;;  %v1742_v16 = vadd.f32 %v4225_v12, %v1741_v8 }
 0xe97   :  { %v1819_v55 = vpop.f32.mrf.mxu2 }
 0xe98   :  { %v1783_v9 = vpop.f32.mrf.mxu1  ;;  %v1744_v50 = vpop.f32.mrf.mxu0  ;;  %v1820_v20 = vadd.f32 %v4227_v13, %v1819_v55 }
 0xe99   :  { %v1784_v11 = vadd.f32 %v4226_v18, %v1783_v9  ;;  %v1745_v23 = vadd.f32 %v4225_v12, %v1744_v50 }
 0xe9b   :  { %3976 = vmatpush.xpose.msk.msra.mxu3 %vm422_vm15, %v1784_v11 }
 0xe9f   :  { %v1822_v15 = vpop.f32.mrf.mxu2  ;;  %3977 = vmatpush.xpose.msk.msra.mxu3 %vm422_vm15, %v1781_v21 }
 0xea0   :  { %v1823_v17 = vadd.f32 %v4227_v13, %v1822_v15  ;;  %v1786_v19 = vpop.f32.mrf.mxu1  ;;  %v1747_v28 = vpop.f32.mrf.mxu0 }
 0xea1   :  { %v1787_v24 = vadd.f32 %v4226_v18, %v1786_v19  ;;  %v1748_v33 = vadd.f32 %v4225_v12, %v1747_v28 }
 0xea2   :  { %1969 = vmatpush.msrb.mxu0 %v1823_v17  ;;  %3978 = vmatmul.msk.f32.vlgmr.msra.gmra.mxu3 %vm422_vm15, %v1742_v16 }
 0xea4   :  { %1970 = vmatpush.msrb.mxu0 %v1820_v20 }
 0xea7   :  { %v1825_v22 = vpop.f32.mrf.mxu2 }
 0xea8   :  { %v1789_v25 = vpop.f32.mrf.mxu1  ;;  %v1826_v39 = vadd.f32 %v4227_v13, %v1825_v22  ;;  %v1750_v43 = vpop.f32.mrf.mxu0 }
 0xea9   :  { %v1790_v27 = vadd.f32 %v4226_v18, %v1789_v25  ;;  %v1751_v44 = vadd.f32 %v4225_v12, %v1750_v43 }
 0xeaa   :  { %3979 = vmatmul.msk.f32.gmra.mxu3 %vm422_vm15, %v1745_v23 }
 0xeab   :  { %3980 = vmatpush.xpose.msk.msrb.mxu3 %vm422_vm15, %v1790_v27 }
 0xeaf   :  { %v1828_v30 = vpop.f32.mrf.mxu2  ;;  %3981 = vmatpush.xpose.msk.msrb.mxu3 %vm422_vm15, %v1787_v24 }
 0xeb0   :  { %v1829_v26 = vadd.f32 %v4227_v13, %v1828_v30 }
 0xeb2   :  { %1998 = vmatpush.msra.mxu1 %v1829_v26  ;;  %3982 = vmatmul.msk.f32.vlgmr.msrb.gmra.mxu3 %vm422_vm15, %v1748_v33  ;;  %v4228_v26 = vld [vmem:[%s4941_s3 + $0x1] ss:$0 sm:$0xff] }
 0xeb3   :  { %2070 = vmatpush.msra.mxu3 %v4000_v29 }
 0xeb4   :  { %1999 = vmatpush.msra.mxu1 %v1826_v39 }
 0xeb5   :  { %2071 = vmatpush.msra.mxu3 %v3999_v38 }
 0xeb7   :  { %2072 = vmatpush.msra.mxu3 %v3998_v31  ;;  %v2036_v24 = vpop.f32.mrf.mxu2 }
 0xeb8   :  { %v2037_v31 = vadd.f32 %v4228_v26, %v2036_v24 }
 0xeb9   :  { %2073 = vmatpush.msra.mxu3 %v3997_v42 }
 0xeba   :  { %3983 = vmatmul.msk.f32.gmra.mxu3 %vm422_vm15, %v1751_v44 }
 0xebf   :  { %v2039_v43 = vpop.f32.mrf.mxu2 }
 0xec0   :  { %v2040_v44 = vadd.f32 %v4228_v26, %v2039_v43 }
 0xec2   :  { %4002 = vmatmul.msk.f32.vlgmr.msra.gmra.mxu3 %vm189_vm1, %v4974_v56 }
 0xeca   :  { %4003 = vmatmul.msk.f32.gmra.mxu3 %vm189_vm1, %v4984_v63 }
 0xed2   :  { %4004 = vmatmul.msk.f32.gmra.mxu3 %vm189_vm1, %v4994_v4 }
 0xeda   :  { %4005 = vmatmul.msk.f32.gmra.mxu3 %vm189_vm1, %v5003_v7 }
 0xf25   :  { %v1860_v59 = vpop.f32.mrf.mxu3 }
 0xf26   :  { %v1901_v34 = vmul.f32 0.25, %v1860_v59  ;;  %v2042_v59 = vpop.f32.mrf.mxu2 }
 0xf28   :  { %v1905_v47 = vsel %vm422_vm15, %v1901_v34, -inf }
 0xf2d   :  { %v1863_v0 = vpop.f32.mrf.mxu3 }
 0xf2e   :  { %v1902_v6 = vmul.f32 0.25, %v1863_v0  ;;  %v2043_v0 = vadd.f32 %v4228_v26, %v2042_v59  ;;  %v4028_v59 = vld [vmem:[%s5066_s12 + $0x18] sm:$0xff] }
 0xf30   :  { %v1908_v9 = vsel %vm422_vm15, %v1902_v6, -inf }
 0xf35   :  { %v1895_v5 = vpop.f32.mrf.mxu3 }
 0xf36   :  { %v1903_v51 = vmul.f32 0.25, %v1895_v5  ;;  %v2045_v5 = vpop.f32.mrf.mxu2 }
 0xf38   :  { %v1911_v40 = vsel %vm422_vm15, %v1903_v51, -inf }
 0xf39   :  { %1912 = vmax.xlane.f32.xlu0 %v1911_v40  ;;  %v4009_v40 = vld [vmem:[%s4946_s7 + $0xb8] sm:$0xff] }
 0xf3a   :  { %2109 = vmatpush.msra.mxu0 %v4009_v40 }
 0xf3d   :  { %v1898_v52 = vpop.f32.mrf.mxu3 }
 0xf3e   :  { %v1904_v10 = vmul.f32 0.25, %v1898_v52  ;;  %v4008_v52 = vld [vmem:[%s4946_s7 + $0xb0] sm:$0xff] }
 0xf3f   :  { %2110 = vmatpush.msra.mxu0 %v4008_v52 }
 0xf40   :  { %v1914_v53 = vsel %vm422_vm15, %v1904_v10, -inf }
 0xf41   :  { %1915 = vmax.xlane.f32.xlu1 %v1914_v53  ;;  %v4007_v53 = vld [vmem:[%s4946_s7 + $0xa8] sm:$0xff] }
 0xf42   :  { %2111 = vmatpush.msra.mxu0 %v4007_v53 }
 0xf45   :  { %v2075_v54 = vpop.f32.mrf.mxu3 }
 0xf46   :  { %v2076_v61 = vadd.f32 %v4229_v58, %v2075_v54  ;;  %v4006_v54 = vld [vmem:[%s4946_s7 + $0xa0] sm:$0xff] }
 0xf47   :  { %2112 = vmatpush.msra.mxu0 %v4006_v54 }
 0xf49   :  { %1906 = vmax.xlane.f32.xlu1 %v1905_v47 }
 0xf4d   :  { %v2078_v45 = vpop.f32.mrf.mxu3 }
 0xf4e   :  { %v2079_v60 = vadd.f32 %v4229_v58, %v2078_v45 }
 0xf50   :  { %4015 = vmatpush.xpose.msk.msrb.mxu1 %vm422_vm15, %v2079_v60 }
 0xf54   :  { %4016 = vmatpush.xpose.msk.msrb.mxu1 %vm422_vm15, %v2076_v61 }
 0xf55   :  { %v2081_v13 = vpop.f32.mrf.mxu3 }
 0xf56   :  { %v2082_v27 = vadd.f32 %v4229_v58, %v2081_v13 }
 0xf5d   :  { %v2084_v16 = vpop.f32.mrf.mxu3 }
 0xf5e   :  { %v2085_v22 = vadd.f32 %v4229_v58, %v2084_v16  ;;  %v4230_v16 = vld [vmem:[%s4941_s3 + $0x5] ss:$0 sm:$0xff] }
 0xfac   :  { %v1913_v48 = vpop.xlane.xlu0 %1912 }
 0xfad   :  { %v1919_v62 = vsub.f32 %v1903_v51, %v1913_v48  ;;  %v2046_v51 = vadd.f32 %v4228_v26, %v2045_v5 }
 0xfaf   :  { %v1925_v46 = vmul.f32 1.442695, %v1919_v62 }
 0xfb1   :  { %4332 = vpow2.f32 %v1925_v46 }
 0xfb4   :  { %v1916_v1 = vpop.xlane.xlu1 %1915 }
 0xfb5   :  { %v1920_v2 = vsub.f32 %v1904_v10, %v1916_v1  ;;  %v2008_v10 = vld [vmem:[%s5066_s12 + $0x8] sm:$0xff] }
 0xfb7   :  { %v4333_v3 = vpop.eup %4332  ;;  %v1927_v14 = vmul.f32 1.442695, %v1920_v2 }
 0xfb8   :  { %v1935_v49 = vsel %vm422_vm15, %v4333_v3, 0.0 }
 0xfb9   :  { %4334 = vpow2.f32 %v1927_v14  ;;  %1936 = vadd.xlane.f32.xlu2 %v1935_v49 }
 0xfbc   :  { %v1907_v57 = vpop.xlane.xlu1 %1906 }
 0xfbd   :  { %v1917_v8 = vsub.f32 %v1901_v34, %v1907_v57  ;;  %v2007_v34 = vld [vmem:[%s5066_s12] sm:$0xff] }
 0xfbf   :  { %v4335_v18 = vpop.eup %4334  ;;  %v1921_v55 = vmul.f32 1.442695, %v1917_v8 }
 0xfc0   :  { %v1938_v11 = vsel %vm422_vm15, %v4335_v18, 0.0 }
 0xfc1   :  { %4336 = vpow2.f32 %v1921_v55  ;;  %1909 = vmax.xlane.f32.xlu2 %v1908_v9  ;;  %1939 = vadd.xlane.f32.xlu0 %v1938_v11 }
 0xfc7   :  { %v4337_v12 = vpop.eup %4336 }
 0xfc8   :  { %v1929_v21 = vsel %vm422_vm15, %v4337_v12, 0.0 }
 0xfc9   :  { %1930 = vadd.xlane.f32.xlu0 %v1929_v21 }
0x102c   :  { %v1937_v15 = vpop.xlane.xlu2 %1936 }
0x102d   :  { %4338 = vrcp.f32 %v1937_v15 }
0x1033   :  { %v4339_v17 = vpop.eup %4338 }
0x1034   :  { %v1947_v19 = vmul.f32 %v4339_v17, %v4333_v3  ;;  %v1910_v50 = vpop.xlane.xlu2 %1909  ;;  %v1940_v20 = vpop.xlane.xlu0 %1939 }
0x1035   :  { %v1918_v23 = vsub.f32 %v1902_v6, %v1910_v50  ;;  %4340 = vrcp.f32 %v1940_v20 }
0x1036   :  { %3986 = vmatmul.msk.f32.vlgmr.msra.gmra.mxu1 %vm422_vm15, %v1947_v19 }
0x1037   :  { %v1923_v25 = vmul.f32 1.442695, %v1918_v23  ;;  %4019 = vmatpush.xpose.msk.msra.mxu1 %vm422_vm15, %v2085_v22 }
0x1039   :  { %4342 = vpow2.f32 %v1923_v25 }
0x103b   :  { %v4341_v28 = vpop.eup %4340  ;;  %4020 = vmatpush.xpose.msk.msra.mxu1 %vm422_vm15, %v2082_v27 }
0x103c   :  { %v1931_v29 = vpop.xlane.xlu0 %1930  ;;  %v1948_v30 = vmul.f32 %v4341_v28, %v4335_v18 }
0x103d   :  { %4344 = vrcp.f32 %v1931_v29 }
0x103e   :  { %3987 = vmatmul.msk.f32.gmra.mxu1 %vm422_vm15, %v1948_v30 }
0x103f   :  { %v4343_v33 = vpop.eup %4342 }
0x1040   :  { %v1932_v38 = vsel %vm422_vm15, %v4343_v33, 0.0 }
0x1041   :  { %1933 = vadd.xlane.f32.xlu1 %v1932_v38 }
0x1043   :  { %v4345_v39 = vpop.eup %4344 }
0x1044   :  { %v1945_v42 = vmul.f32 %v4345_v39, %v4337_v12 }
0x1046   :  { %3984 = vmatmul.msk.f32.vlgmr.msrb.gmra.mxu0 %vm422_vm15, %v1945_v42  ;;  %4017 = vmatmul.msk.f32.vlgmr.msrb.gmra.mxu1 %vm422_vm15, %v2037_v31 }
0x1047   :  { %2372 = vmatpush.msrb.mxu1 %v2008_v10  ;;  %2331 = vmatpush.msrb.mxu0 %v4028_v59  ;;  %v2496_v59 = vld [vmem:[%s5154_s15 + $0x10] sm:$0xff] }
0x1049   :  { %2373 = vmatpush.msrb.mxu1 %v2007_v34 }
0x104e   :  { %4018 = vmatmul.msk.f32.gmra.mxu1 %vm422_vm15, %v2040_v44 }
0x1056   :  { %4021 = vmatmul.msk.f32.vlgmr.msra.gmra.mxu1 %vm422_vm15, %v2043_v0 }
0x105e   :  { %4022 = vmatmul.msk.f32.gmra.mxu1 %vm422_vm15, %v2046_v51 }
0x10b3   :  { %v2001_v47 = vpop.f32.mrf.mxu1 }
0x10b4   :  { %v1934_v58 = vpop.xlane.xlu1 %1933 }
0x10b5   :  { %4346 = vrcp.f32 %v1934_v58 }
0x10bb   :  { %v4347_v45 = vpop.eup %4346  ;;  %v2004_v60 = vpop.f32.mrf.mxu1 }
0x10bc   :  { %v1946_v61 = vmul.f32 %v4347_v45, %v4343_v33  ;;  %v4027_v45 = vld [vmem:[%s5066_s12 + $0x10] sm:$0xff] }
0x10bd   :  { %2332 = vmatpush.msrb.mxu0 %v4027_v45 }
0x10be   :  { %3985 = vmatmul.msk.f32.gmra.mxu0 %vm422_vm15, %v1946_v61 }
0x10c3   :  { %v1972_v48 = vpop.f32.mrf.mxu0  ;;  %v2155_v62 = vpop.f32.mrf.mxu1 }
0x10c4   :  { %v2196_v46 = vmul.f32 0.25, %v2155_v62  ;;  %4033 = vmatmul.msk.f32.vlgmr.msrb.gmra.mxu1 %vm422_vm15, %v1972_v48 }
0x10c6   :  { %4011 = vmatmul.msk.f32.vlgmr.msra.gmra.mxu0 %vm189_vm1, %v4974_v56  ;;  %v2200_v1 = vsel %vm422_vm15, %v2196_v46, -inf }
0x10c7   :  { %2201 = vmax.xlane.f32.xlu2 %v2200_v1 }
0x10cb   :  { %v2158_v2 = vpop.f32.mrf.mxu1 }
0x10cc   :  { %v2197_v3 = vmul.f32 0.25, %v2158_v2 }
0x10ce   :  { %4012 = vmatmul.msk.f32.gmra.mxu0 %vm189_vm1, %v4984_v63  ;;  %v2203_v14 = vsel %vm422_vm15, %v2197_v3, -inf }
0x10cf   :  { %2204 = vmax.xlane.f32.xlu0 %v2203_v14 }
0x10d3   :  { %v2190_v49 = vpop.f32.mrf.mxu1 }
0x10d4   :  { %v2198_v6 = vmul.f32 0.25, %v2190_v49 }
0x10d6   :  { %4013 = vmatmul.msk.f32.gmra.mxu0 %vm189_vm1, %v4994_v4  ;;  %v2206_v57 = vsel %vm422_vm15, %v2198_v6, -inf }
0x10d7   :  { %2207 = vmax.xlane.f32.xlu1 %v2206_v57 }
0x10db   :  { %v2193_v56 = vpop.f32.mrf.mxu1 }
0x10dc   :  { %v2199_v8 = vmul.f32 0.25, %v2193_v56 }
0x10de   :  { %4014 = vmatmul.msk.f32.gmra.mxu0 %vm189_vm1, %v5003_v7  ;;  %v2209_v18 = vsel %vm422_vm15, %v2199_v8, -inf }
0x10df   :  { %2210 = vmax.xlane.f32.xlu2 %v2209_v18 }
0x113a   :  { %v2202_v63 = vpop.xlane.xlu2 %2201 }
0x113b   :  { %v2212_v55 = vsub.f32 %v2196_v46, %v2202_v63  ;;  %v1975_v9 = vpop.f32.mrf.mxu0 }
0x113c   :  { %4034 = vmatmul.msk.f32.gmra.mxu1 %vm422_vm15, %v1975_v9 }
0x113d   :  { %v2216_v11 = vmul.f32 1.442695, %v2212_v55 }
0x113f   :  { %4348 = vpow2.f32 %v2216_v11 }
0x1141   :  { %v2375_v46 = vpop.f32.mrf.mxu1 }
0x1142   :  { %v2205_v4 = vpop.xlane.xlu0 %2204 }
0x1143   :  { %v2213_v12 = vsub.f32 %v2197_v3, %v2205_v4  ;;  %v2114_v21 = vpop.f32.mrf.mxu0  ;;  %v4231_v3 = vld [vmem:[%s4906_s29 + $0x4] ss:$0 sm:$0xff] }
0x1144   :  { %4035 = vmatmul.msk.f32.gmra.mxu1 %vm422_vm15, %v2001_v47  ;;  %v2115_v25 = vadd.f32 %v4230_v16, %v2114_v21 }
0x1145   :  { %v4349_v13 = vpop.eup %4348  ;;  %v2218_v15 = vmul.f32 1.442695, %v2213_v12 }
0x1146   :  { %v2224_v7 = vsel %vm422_vm15, %v4349_v13, 0.0 }
0x1147   :  { %4350 = vpow2.f32 %v2218_v15  ;;  %2225 = vadd.xlane.f32.xlu0 %v2224_v7 }
0x114a   :  { %v2208_v17 = vpop.xlane.xlu1 %2207 }
0x114b   :  { %v2214_v19 = vsub.f32 %v2198_v6, %v2208_v17  ;;  %v2117_v50 = vpop.f32.mrf.mxu0 }
0x114c   :  { %v2118_v20 = vadd.f32 %v4230_v16, %v2117_v50  ;;  %4036 = vmatmul.msk.f32.gmra.mxu1 %vm422_vm15, %v2004_v60 }
0x114d   :  { %v4351_v22 = vpop.eup %4350  ;;  %v2220_v23 = vmul.f32 1.442695, %v2214_v19 }
0x114e   :  { %2264 = vmatpush.msrb.mxu2 %v2118_v20  ;;  %v2227_v27 = vsel %vm422_vm15, %v4351_v22, 0.0 }
0x114f   :  { %4352 = vpow2.f32 %v2220_v23  ;;  %2228 = vadd.xlane.f32.xlu1 %v2227_v27 }
0x1150   :  { %2265 = vmatpush.msrb.mxu2 %v2115_v25 }
0x1152   :  { %v2211_v28 = vpop.xlane.xlu2 %2210 }
0x1153   :  { %v2215_v24 = vsub.f32 %v2199_v8, %v2211_v28  ;;  %v2120_v29 = vpop.f32.mrf.mxu0 }
0x1154   :  { %v2121_v42 = vadd.f32 %v4230_v16, %v2120_v29 }
0x1155   :  { %v4353_v30 = vpop.eup %4352  ;;  %v2222_v33 = vmul.f32 1.442695, %v2215_v24 }
0x1156   :  { %v2230_v26 = vsel %vm422_vm15, %v4353_v30, 0.0 }
0x1157   :  { %4354 = vpow2.f32 %v2222_v33  ;;  %2231 = vadd.xlane.f32.xlu2 %v2230_v26 }
0x115b   :  { %v2123_v38 = vpop.f32.mrf.mxu0 }
0x115c   :  { %v2124_v39 = vadd.f32 %v4230_v16, %v2123_v38 }
0x115d   :  { %v4355_v31 = vpop.eup %4354 }
0x115e   :  { %2293 = vmatpush.msrb.mxu3 %v2124_v39  ;;  %v2233_v43 = vsel %vm422_vm15, %v4355_v31, 0.0 }
0x115f   :  { %2234 = vadd.xlane.f32.xlu0 %v2233_v43 }
0x1160   :  { %2294 = vmatpush.msrb.mxu3 %v2121_v42 }
0x11b9   :  { %v2378_v49 = vpop.f32.mrf.mxu1 }
0x11ba   :  { %v2226_v44 = vpop.xlane.xlu0 %2225 }
0x11bb   :  { %4356 = vrcp.f32 %v2226_v44  ;;  %v2497_v44 = vld [vmem:[%s5154_s15 + $0x18] sm:$0xff] }
0x11bc   :  { %2523 = vmatpush.msra.mxu2 %v2497_v44 }
0x11be   :  { %2524 = vmatpush.msra.mxu2 %v2496_v59  ;;  %v2581_v59 = vld [vmem:[%s5176_s19 + $0x28] sm:$0xff] }
0x11c1   :  { %v4357_v0 = vpop.eup %4356  ;;  %v2381_v55 = vpop.f32.mrf.mxu1 }
0x11c2   :  { %v2240_v5 = vmul.f32 %v4357_v0, %v4349_v13  ;;  %v2229_v51 = vpop.xlane.xlu1 %2228  ;;  %v2495_v0 = vld [vmem:[%s5154_s15 + $0x8] sm:$0xff] }
0x11c3   :  { %4358 = vrcp.f32 %v2229_v51  ;;  %2525 = vmatpush.msra.mxu2 %v2495_v0  ;;  %v2580_v0 = vld [vmem:[%s5176_s19 + $0x20] sm:$0xff] }
0x11c4   :  { %4023 = vmatmul.msk.f32.vlgmr.msrb.gmra.mxu2 %vm422_vm15, %v2240_v5  ;;  %v2494_v5 = vld [vmem:[%s5154_s15] sm:$0xff] }
0x11c5   :  { %2526 = vmatpush.msra.mxu2 %v2494_v5  ;;  %v2579_v5 = vld [vmem:[%s5176_s19 + $0x18] sm:$0xff] }
0x11c9   :  { %v4359_v40 = vpop.eup %4358  ;;  %v2384_v13 = vpop.f32.mrf.mxu1 }
0x11ca   :  { %v2232_v52 = vpop.xlane.xlu2 %2231  ;;  %v2241_v10 = vmul.f32 %v4359_v40, %v4351_v22 }
0x11cb   :  { %4360 = vrcp.f32 %v2232_v52 }
0x11cc   :  { %4024 = vmatmul.msk.f32.gmra.mxu2 %vm422_vm15, %v2241_v10 }
0x11d1   :  { %v4361_v53 = vpop.eup %4360 }
0x11d2   :  { %v2242_v34 = vmul.f32 %v4361_v53, %v4353_v30  ;;  %v2235_v54 = vpop.xlane.xlu0 %2234 }
0x11d3   :  { %4362 = vrcp.f32 %v2235_v54 }
0x11d4   :  { %4025 = vmatmul.msk.f32.vlgmr.msrb.gmra.mxu3 %vm422_vm15, %v2242_v34 }
0x11d9   :  { %v4363_v47 = vpop.eup %4362 }
0x11da   :  { %v2243_v58 = vmul.f32 %v4363_v47, %v4355_v31 }
0x11dc   :  { %4026 = vmatmul.msk.f32.gmra.mxu3 %vm422_vm15, %v2243_v58 }
0x1247   :  { %v2267_v60 = vpop.f32.mrf.mxu2 }
0x1248   :  { %4029 = vmatmul.msk.f32.vlgmr.msrb.gmra.mxu0 %vm422_vm15, %v2267_v60 }
0x124f   :  { %v2270_v61 = vpop.f32.mrf.mxu2 }
0x1250   :  { %4030 = vmatmul.msk.f32.gmra.mxu0 %vm422_vm15, %v2270_v61 }
0x1257   :  { %v2296_v48 = vpop.f32.mrf.mxu3 }
0x1258   :  { %4031 = vmatmul.msk.f32.gmra.mxu0 %vm422_vm15, %v2296_v48 }
0x125f   :  { %v2299_v62 = vpop.f32.mrf.mxu3 }
0x1260   :  { %4032 = vmatmul.msk.f32.gmra.mxu0 %vm422_vm15, %v2299_v62 }
0x12c5   :  { %v2334_v1 = vpop.f32.mrf.mxu0 }
0x12c6   :  { %v2376_v2 = vadd.f32 %v2375_v46, %v2334_v1 }
0x12c8   :  { %v2387_v14 = vadd.f32 %v2376_v2, %v4891_v37 }
0x12ca   :  { %v5108_v6 = vadd.f32 %v4231_v3, %v2387_v14 }
0x12cc   :  { %v2396_v57 = vsel %vm189_vm1, %v5108_v6, 0.0 }
0x12cd   :  { %2397 = vadd.xlane.f32.xlu1 %v2396_v57  ;;  %v2337_v56 = vpop.f32.mrf.mxu0  ;;  %v4233_v57 = vld [vmem:[%s4906_s29 + $0x3] ss:$0 sm:$0xff] }
0x12ce   :  { %v2379_v8 = vadd.f32 %v2378_v49, %v2337_v56 }
0x12d0   :  { %v2388_v18 = vadd.f32 %v2379_v8, %v4889_v36 }
0x12d2   :  { %v5113_v63 = vadd.f32 %v4231_v3, %v2388_v18 }
0x12d4   :  { %v2399_v9 = vsel %vm189_vm1, %v5113_v63, 0.0 }
0x12d5   :  { %2400 = vadd.xlane.f32.xlu2 %v2399_v9  ;;  %v2340_v11 = vpop.f32.mrf.mxu0 }
0x12d6   :  { %v2382_v37 = vadd.f32 %v2381_v55, %v2340_v11 }
0x12d8   :  { %v2389_v4 = vadd.f32 %v2382_v37, %v4897_v35 }
0x12da   :  { %v5118_v12 = vadd.f32 %v4231_v3, %v2389_v4 }
0x12dc   :  { %v2402_v21 = vsel %vm189_vm1, %v5118_v12, 0.0 }
0x12dd   :  { %2403 = vadd.xlane.f32.xlu0 %v2402_v21  ;;  %v2343_v15 = vpop.f32.mrf.mxu0 }
0x12de   :  { %v2385_v36 = vadd.f32 %v2384_v13, %v2343_v15 }
0x12e0   :  { %v2390_v7 = vadd.f32 %v2385_v36, %v4901_v41 }
0x12e2   :  { %v5123_v16 = vadd.f32 %v4231_v3, %v2390_v7  ;;  %v4232_v3 = vld [vmem:[%s4906_s29 + $0x2] ss:$0 sm:$0xff] }
0x12e4   :  { %v2405_v17 = vsel %vm189_vm1, %v5123_v16, 0.0 }
0x12e5   :  { %2406 = vadd.xlane.f32.xlu1 %v2405_v17 }
0x1340   :  { %v2398_v19 = vpop.xlane.xlu1 %2397 }
0x1341   :  { %v2408_v35 = vmul.f32 %v2398_v19, %v4514_v32 }
0x1343   :  { %v2412_v50 = vsub.f32 %v5108_v6, %v2408_v35 }
0x1345   :  { %v2416_v20 = vmul.f32 %v2412_v50, %v2412_v50 }
0x1347   :  { %v2420_v22 = vsel %vm189_vm1, %v2416_v20, 0.0 }
0x1348   :  { %v2401_v23 = vpop.xlane.xlu2 %2400  ;;  %2421 = vadd.xlane.f32.xlu2 %v2420_v22 }
0x1349   :  { %v2409_v25 = vmul.f32 %v2401_v23, %v4514_v32 }
0x134b   :  { %v5132_v41 = vsub.f32 %v5113_v63, %v2409_v25 }
0x134d   :  { %v2417_v27 = vmul.f32 %v5132_v41, %v5132_v41 }
0x134f   :  { %v2423_v28 = vsel %vm189_vm1, %v2417_v27, 0.0 }
0x1350   :  { %2424 = vadd.xlane.f32.xlu0 %v2423_v28  ;;  %v2404_v24 = vpop.xlane.xlu0 %2403 }
0x1351   :  { %v2410_v29 = vmul.f32 %v2404_v24, %v4514_v32 }
0x1353   :  { %v5139_v30 = vsub.f32 %v5118_v12, %v2410_v29 }
0x1355   :  { %v2418_v33 = vmul.f32 %v5139_v30, %v5139_v30 }
0x1357   :  { %v2426_v26 = vsel %vm189_vm1, %v2418_v33, 0.0 }
0x1358   :  { %2427 = vadd.xlane.f32.xlu1 %v2426_v26  ;;  %v2407_v38 = vpop.xlane.xlu1 %2406 }
0x1359   :  { %v2411_v39 = vmul.f32 %v2407_v38, %v4514_v32 }
0x135b   :  { %v5146_v31 = vsub.f32 %v5123_v16, %v2411_v39 }
0x135d   :  { %v2419_v42 = vmul.f32 %v5146_v31, %v5146_v31 }
0x135f   :  { %v2429_v43 = vsel %vm189_vm1, %v2419_v42, 0.0 }
0x1360   :  { %2430 = vadd.xlane.f32.xlu2 %v2429_v43 }
0x13bb   :  { %v2422_v51 = vpop.xlane.xlu2 %2421 }
0x13bc   :  { %v2432_v40 = vmul.f32 %v2422_v51, %v4514_v32  ;;  %v2578_v51 = vld [vmem:[%s5176_s19 + $0x10] sm:$0xff] }
0x13be   :  { %v2436_v52 = vadd.f32 1e-05, %v2432_v40  ;;  %v2577_v40 = vld [vmem:[%s5176_s19 + $0x8] sm:$0xff] }
0x13c0   :  { %4364 = vrsqrt.f32 %v2436_v52  ;;  %vm2446_vm5 = vweird.f32 %v2436_v52 }
0x13c3   :  { %v2425_v10 = vpop.xlane.xlu0 %2424 }
0x13c4   :  { %v2433_v53 = vmul.f32 %v2425_v10, %v4514_v32  ;;  %v4234_v10 = vld [vmem:[%s4906_s29 + $0x6] ss:$0 sm:$0xff] }
0x13c6   :  { %v4365_v34 = vpop.eup %4364  ;;  %v2437_v54 = vadd.f32 1e-05, %v2433_v53 }
0x13c7   :  { %v2441_v47 = vmul.f32 %v4365_v34, %v2436_v52  ;;  %vm2447_vm4 = vweird.f32 %v4365_v34  ;;  %v2576_v52 = vld [vmem:[%s5176_s19] sm:$0xff] }
0x13c8   :  { %4366 = vrsqrt.f32 %v2437_v54  ;;  %vm2448_vm6 = vmor %vm2446_vm5, %vm2447_vm4  ;;  %vm2456_vm8 = vweird.f32 %v2437_v54 }
0x13c9   :  { %v2442_v58 = vmul.f32 %v4365_v34, %v2441_v47 }
0x13cb   :  { %v2443_v45 = vmul.f32 0.5, %v2442_v58  ;;  %v2428_v60 = vpop.xlane.xlu1 %2427 }
0x13cc   :  { %v2434_v61 = vmul.f32 %v2428_v60, %v4514_v32 }
0x13cd   :  { %v2444_v48 = vsub.f32 1.5, %v2443_v45 }
0x13ce   :  { %v4367_v62 = vpop.eup %4366  ;;  %v2438_v46 = vadd.f32 1e-05, %v2434_v61 }
0x13cf   :  { %v2445_v1 = vmul.f32 %v4365_v34, %v2444_v48  ;;  %v2451_v2 = vmul.f32 %v4367_v62, %v2437_v54  ;;  %vm2457_vm7 = vweird.f32 %v4367_v62 }
0x13d0   :  { %4368 = vrsqrt.f32 %v2438_v46  ;;  %vm2458_vm9 = vmor %vm2456_vm8, %vm2457_vm7  ;;  %vm2466_vm11 = vweird.f32 %v2438_v46 }
0x13d1   :  { %v2449_v14 = vsel %vm2448_vm6, %v4365_v34, %v2445_v1  ;;  %v2452_v49 = vmul.f32 %v4367_v62, %v2451_v2 }
0x13d2   :  { %v2480_v56 = vmul.f32 %v2449_v14, %v2412_v50 }
0x13d3   :  { %v2453_v8 = vmul.f32 0.5, %v2452_v49  ;;  %v2431_v18 = vpop.xlane.xlu2 %2430 }
0x13d4   :  { %v2485_v55 = vmul.f32 %v4232_v3, %v2480_v56  ;;  %v2435_v9 = vmul.f32 %v2431_v18, %v4514_v32 }
0x13d5   :  { %v2454_v11 = vsub.f32 1.5, %v2453_v8 }
0x13d6   :  { %v4369_v37 = vpop.eup %4368  ;;  %v2490_v4 = vadd.f32 %v4233_v57, %v2485_v55  ;;  %v2439_v21 = vadd.f32 1e-05, %v2435_v9 }
0x13d7   :  { %v2455_v13 = vmul.f32 %v4367_v62, %v2454_v11  ;;  %v2461_v15 = vmul.f32 %v4369_v37, %v2438_v46  ;;  %vm2467_vm10 = vweird.f32 %v4369_v37 }
0x13d8   :  { %4370 = vrsqrt.f32 %v2439_v21  ;;  %4037 = vmatmul.msk.f32.vlgmr.msra.gmra.mxu2 %vm189_vm1, %v2490_v4  ;;  %vm2468_vm12 = vmor %vm2466_vm11, %vm2467_vm10  ;;  %vm2476_vm14 = vweird.f32 %v2439_v21 }
0x13d9   :  { %v2459_v36 = vsel %vm2458_vm9, %v4367_v62, %v2455_v13  ;;  %v2462_v7 = vmul.f32 %v4369_v37, %v2461_v15 }
0x13da   :  { %v2481_v17 = vmul.f32 %v2459_v36, %v5132_v41 }
0x13db   :  { %v2463_v19 = vmul.f32 0.5, %v2462_v7 }
0x13dc   :  { %v2486_v35 = vmul.f32 %v4232_v3, %v2481_v17 }
0x13dd   :  { %v2464_v50 = vsub.f32 1.5, %v2463_v19 }
0x13de   :  { %v4371_v20 = vpop.eup %4370  ;;  %v2491_v22 = vadd.f32 %v4233_v57, %v2486_v35 }
0x13df   :  { %v2465_v23 = vmul.f32 %v4369_v37, %v2464_v50  ;;  %v2471_v25 = vmul.f32 %v4371_v20, %v2439_v21  ;;  %vm2477_vm13 = vweird.f32 %v4371_v20 }
0x13e0   :  { %4038 = vmatmul.msk.f32.gmra.mxu2 %vm189_vm1, %v2491_v22  ;;  %vm2478_vm2 = vmor %vm2476_vm14, %vm2477_vm13 }
0x13e1   :  { %v2469_v27 = vsel %vm2468_vm12, %v4369_v37, %v2465_v23  ;;  %v2472_v28 = vmul.f32 %v4371_v20, %v2471_v25 }
0x13e2   :  { %v2482_v24 = vmul.f32 %v2469_v27, %v5139_v30  ;;  %v2583_v30 = vld [vmem:[%s5176_s19 + $0x38] sm:$0xff] }
0x13e3   :  { %v2473_v29 = vmul.f32 0.5, %v2472_v28  ;;  %2605 = vmatpush.msra.mxu3 %v2583_v30 }
0x13e4   :  { %v2487_v33 = vmul.f32 %v4232_v3, %v2482_v24 }
0x13e5   :  { %v2474_v26 = vsub.f32 1.5, %v2473_v29 }
0x13e6   :  { %v2492_v41 = vadd.f32 %v4233_v57, %v2487_v33 }
0x13e7   :  { %v2475_v38 = vmul.f32 %v4371_v20, %v2474_v26 }
0x13e8   :  { %4039 = vmatmul.msk.f32.gmra.mxu2 %vm189_vm1, %v2492_v41  ;;  %v4235_v41 = vld [vmem:[%s4906_s29 + $0x5] ss:$0 sm:$0xff] }
0x13e9   :  { %v2479_v39 = vsel %vm2478_vm2, %v4371_v20, %v2475_v38 }
0x13ea   :  { %v2483_v42 = vmul.f32 %v2479_v39, %v5146_v31  ;;  %v2582_v31 = vld [vmem:[%s5176_s19 + $0x30] sm:$0xff] }
0x13eb   :  { %2606 = vmatpush.msra.mxu3 %v2582_v31 }
0x13ec   :  { %v2488_v43 = vmul.f32 %v4232_v3, %v2483_v42 }
0x13ed   :  { %2607 = vmatpush.msra.mxu3 %v2581_v59 }
0x13ee   :  { %v2493_v44 = vadd.f32 %v4233_v57, %v2488_v43 }
0x13ef   :  { %2608 = vmatpush.msra.mxu3 %v2580_v0 }
0x13f0   :  { %4040 = vmatmul.msk.f32.gmra.mxu2 %vm189_vm1, %v2493_v44 }
0x13f1   :  { %2609 = vmatpush.msra.mxu3 %v2579_v5 }
0x13f3   :  { %2610 = vmatpush.msra.mxu3 %v2578_v51 }
0x13f5   :  { %2611 = vmatpush.msra.mxu3 %v2577_v40 }
0x13f7   :  { %2612 = vmatpush.msra.mxu3 %v2576_v52 }
0x145b   :  { %v2528_v53 = vpop.f32.mrf.mxu2 }
0x145c   :  { %v2529_v34 = vadd.f32 %v4234_v10, %v2528_v53 }
0x145e   :  { %v2544_v54 = vmul.f32 0.044715, %v2529_v34  ;;  %v2540_v8 = vmul.f32 0.5, %v2529_v34 }
0x1460   :  { %v2548_v47 = vmul.f32 %v2544_v54, %v2529_v34 }
0x1462   :  { %v2552_v58 = vmul.f32 %v2548_v47, %v2529_v34 }
0x1463   :  { %v2531_v45 = vpop.f32.mrf.mxu2 }
0x1464   :  { %v2556_v60 = vadd.f32 %v2552_v58, %v2529_v34  ;;  %v2532_v61 = vadd.f32 %v4234_v10, %v2531_v45 }
0x1466   :  { %v2560_v48 = vmul.f32 0.7978846, %v2556_v60  ;;  %v2545_v62 = vmul.f32 0.044715, %v2532_v61  ;;  %v2541_v7 = vmul.f32 0.5, %v2532_v61 }
0x1468   :  { %4372 = vtanh.f32 %v2560_v48  ;;  %v2549_v46 = vmul.f32 %v2545_v62, %v2532_v61 }
0x146a   :  { %v2553_v1 = vmul.f32 %v2549_v46, %v2532_v61 }
0x146b   :  { %v2534_v2 = vpop.f32.mrf.mxu2 }
0x146c   :  { %v2535_v3 = vadd.f32 %v4234_v10, %v2534_v2  ;;  %v2557_v14 = vadd.f32 %v2553_v1, %v2532_v61 }
0x146e   :  { %v4373_v49 = vpop.eup %4372  ;;  %v2546_v57 = vmul.f32 0.044715, %v2535_v3  ;;  %v2561_v56 = vmul.f32 0.7978846, %v2557_v14  ;;  %v2542_v25 = vmul.f32 0.5, %v2535_v3 }
0x146f   :  { %v2568_v18 = vadd.f32 1.0, %v4373_v49 }
0x1470   :  { %v2550_v55 = vmul.f32 %v2546_v57, %v2535_v3  ;;  %4374 = vtanh.f32 %v2561_v56 }
0x1471   :  { %v2572_v9 = vmul.f32 %v2568_v18, %v2540_v8  ;;  %v4055_v8 = vld [vmem:[%s4946_s7 + $0xd8] sm:$0xff] }
0x1472   :  { %v2554_v11 = vmul.f32 %v2550_v55, %v2535_v3  ;;  %v4064_v18 = vld [vmem:[%s4946_s7 + $0x118] sm:$0xff]  ;;  %2770 = vmatpush.msra.mxu0 %v4055_v8 }
0x1473   :  { %v2537_v37 = vpop.f32.mrf.mxu2  ;;  %4041 = vmatmul.msk.f32.vlgmr.msra.gmra.mxu3 %vm134_vm0, %v2572_v9  ;;  %v4073_v55 = vld [vmem:[%s4946_s7 + $0x158] sm:$0xff]  ;;  %2809 = vmatpush.msra.mxu1 %v4064_v18  ;;  %v4054_v9 = vld [vmem:[%s4946_s7 + $0xd0] sm:$0xff] }
0x1474   :  { %v2538_v4 = vadd.f32 %v4234_v10, %v2537_v37  ;;  %v2558_v21 = vadd.f32 %v2554_v11, %v2535_v3  ;;  %2848 = vmatpush.msrb.mxu2 %v4073_v55  ;;  %v4063_v11 = vld [vmem:[%s4946_s7 + $0x110] sm:$0xff]  ;;  %2771 = vmatpush.msra.mxu0 %v4054_v9 }
0x1475   :  { %v4072_v37 = vld [vmem:[%s4946_s7 + $0x150] sm:$0xff]  ;;  %2810 = vmatpush.msra.mxu1 %v4063_v11 }
0x1476   :  { %v4375_v13 = vpop.eup %4374  ;;  %v2547_v15 = vmul.f32 0.044715, %v2538_v4  ;;  %v2562_v36 = vmul.f32 0.7978846, %v2558_v21  ;;  %v2543_v29 = vmul.f32 0.5, %v2538_v4  ;;  %2849 = vmatpush.msrb.mxu2 %v4072_v37  ;;  %v4062_v21 = vld [vmem:[%s4946_s7 + $0x108] sm:$0xff] }
0x1477   :  { %v2569_v17 = vadd.f32 1.0, %v4375_v13  ;;  %v4071_v13 = vld [vmem:[%s4946_s7 + $0x148] sm:$0xff]  ;;  %2811 = vmatpush.msra.mxu1 %v4062_v21 }
0x1478   :  { %v2551_v19 = vmul.f32 %v2547_v15, %v2538_v4  ;;  %4376 = vtanh.f32 %v2562_v36  ;;  %2850 = vmatpush.msrb.mxu2 %v4071_v13  ;;  %v4052_v15 = vld [vmem:[%s4946_s7 + $0xc0] sm:$0xff] }
0x1479   :  { %v2573_v35 = vmul.f32 %v2569_v17, %v2541_v7  ;;  %v4061_v36 = vld [vmem:[%s4946_s7 + $0x100] sm:$0xff] }
0x147a   :  { %v2555_v50 = vmul.f32 %v2551_v19, %v2538_v4  ;;  %v4070_v7 = vld [vmem:[%s4946_s7 + $0x140] sm:$0xff]  ;;  %2812 = vmatpush.msra.mxu1 %v4061_v36 }
0x147b   :  { %4042 = vmatmul.msk.f32.gmra.mxu3 %vm134_vm0, %v2573_v35  ;;  %2851 = vmatpush.msrb.mxu2 %v4070_v7 }
0x147c   :  { %v2559_v20 = vadd.f32 %v2555_v50, %v2538_v4  ;;  %v4053_v4 = vld [vmem:[%s4946_s7 + $0xc8] sm:$0xff] }
0x147d   :  { %2772 = vmatpush.msra.mxu0 %v4053_v4 }
0x147e   :  { %v4377_v22 = vpop.eup %4376  ;;  %v2563_v23 = vmul.f32 0.7978846, %v2559_v20 }
0x147f   :  { %v2570_v27 = vadd.f32 1.0, %v4377_v22  ;;  %2773 = vmatpush.msra.mxu0 %v4052_v15 }
0x1480   :  { %4378 = vtanh.f32 %v2563_v23 }
0x1481   :  { %v2574_v28 = vmul.f32 %v2570_v27, %v2542_v25 }
0x1483   :  { %4043 = vmatmul.msk.f32.gmra.mxu3 %vm134_vm0, %v2574_v28 }
0x1486   :  { %v4379_v24 = vpop.eup %4378 }
0x1487   :  { %v2571_v33 = vadd.f32 1.0, %v4379_v24 }
0x1489   :  { %v2575_v26 = vmul.f32 %v2571_v33, %v2543_v29 }
0x148b   :  { %4044 = vmatmul.msk.f32.gmra.mxu3 %vm134_vm0, %v2575_v26 }
0x14f6   :  { %v2614_v38 = vpop.f32.mrf.mxu3 }
0x14f7   :  { %v2615_v39 = vadd.f32 %v4235_v41, %v2614_v38 }
0x14f9   :  { %v5193_v42 = vadd.f32 %v2615_v39, %v5108_v6 }
0x14fb   :  { %v2638_v43 = vsel %vm189_vm1, %v5193_v42, 0.0 }
0x14fc   :  { %2639 = vadd.xlane.f32.xlu0 %v2638_v43  ;;  %v5256_v43 = vld [vmem:[%s4906_s29 + $0x8] ss:$0 sm:$0xff] }
0x14fe   :  { %v2617_v44 = vpop.f32.mrf.mxu3 }
0x14ff   :  { %v2618_v30 = vadd.f32 %v4235_v41, %v2617_v44 }
0x1501   :  { %v5198_v31 = vadd.f32 %v2618_v30, %v5113_v63 }
0x1503   :  { %v2641_v59 = vsel %vm189_vm1, %v5198_v31, 0.0 }
0x1504   :  { %2642 = vadd.xlane.f32.xlu1 %v2641_v59  ;;  %v4096_v59 = vld [vmem:[%s4946_s7 + $0xf8] sm:$0xff] }
0x1505   :  { %3066 = vmatpush.msra.mxu2 %v4096_v59  ;;  %v4105_v59 = vld [vmem:[%s4946_s7 + $0x138] sm:$0xff] }
0x1506   :  { %v2620_v0 = vpop.f32.mrf.mxu3 }
0x1507   :  { %v2621_v5 = vadd.f32 %v4235_v41, %v2620_v0  ;;  %v4095_v0 = vld [vmem:[%s4946_s7 + $0xf0] sm:$0xff] }
0x1508   :  { %3067 = vmatpush.msra.mxu2 %v4095_v0 }
0x1509   :  { %v5203_v51 = vadd.f32 %v2621_v5, %v5118_v12  ;;  %v4237_v5 = vld [vmem:[%s4906_s29 + $0x9] ss:$0 sm:$0xff] }
0x150b   :  { %v2644_v6 = vsel %vm189_vm1, %v5203_v51, 0.0 }
0x150c   :  { %2645 = vadd.xlane.f32.xlu2 %v2644_v6 }
0x150e   :  { %v2623_v40 = vpop.f32.mrf.mxu3 }
0x150f   :  { %v2624_v52 = vadd.f32 %v4235_v41, %v2623_v40 }
0x1511   :  { %v5208_v10 = vadd.f32 %v2624_v52, %v5123_v16 }
0x1513   :  { %v2647_v63 = vsel %vm189_vm1, %v5208_v10, 0.0 }
0x1514   :  { %2648 = vadd.xlane.f32.xlu0 %v2647_v63  ;;  %v4094_v63 = vld [vmem:[%s4946_s7 + $0xe8] sm:$0xff] }
0x1515   :  { %3068 = vmatpush.msra.mxu2 %v4094_v63  ;;  %v4103_v63 = vld [vmem:[%s4946_s7 + $0x128] sm:$0xff] }
0x156f   :  { %v2640_v53 = vpop.xlane.xlu0 %2639 }
0x1570   :  { %v2650_v34 = vmul.f32 %v2640_v53, %v4514_v32 }
0x1572   :  { %v5214_v54 = vsub.f32 %v5193_v42, %v2650_v34 }
0x1574   :  { %v2658_v12 = vmul.f32 %v5214_v54, %v5214_v54 }
0x1576   :  { %v2662_v47 = vsel %vm189_vm1, %v2658_v12, 0.0 }
0x1577   :  { %2663 = vadd.xlane.f32.xlu1 %v2662_v47  ;;  %v2643_v58 = vpop.xlane.xlu1 %2642 }
0x1578   :  { %v2651_v16 = vmul.f32 %v2643_v58, %v4514_v32 }
0x157a   :  { %v5221_v45 = vsub.f32 %v5198_v31, %v2651_v16 }
0x157c   :  { %v2659_v60 = vmul.f32 %v5221_v45, %v5221_v45 }
0x157e   :  { %v2665_v61 = vsel %vm189_vm1, %v2659_v60, 0.0 }
0x157f   :  { %v2646_v48 = vpop.xlane.xlu2 %2645  ;;  %2666 = vadd.xlane.f32.xlu2 %v2665_v61  ;;  %v4093_v61 = vld [vmem:[%s4946_s7 + $0xe0] sm:$0xff] }
0x1580   :  { %v2652_v62 = vmul.f32 %v2646_v48, %v4514_v32  ;;  %3069 = vmatpush.msra.mxu2 %v4093_v61 }
0x1582   :  { %v5228_v46 = vsub.f32 %v5203_v51, %v2652_v62 }
0x1584   :  { %v2660_v1 = vmul.f32 %v5228_v46, %v5228_v46 }
0x1586   :  { %v2668_v2 = vsel %vm189_vm1, %v2660_v1, 0.0 }
0x1587   :  { %v2649_v3 = vpop.xlane.xlu0 %2648  ;;  %2669 = vadd.xlane.f32.xlu0 %v2668_v2 }
0x1588   :  { %v2653_v14 = vmul.f32 %v2649_v3, %v4514_v32 }
0x158a   :  { %v5235_v49 = vsub.f32 %v5208_v10, %v2653_v14 }
0x158c   :  { %v2661_v57 = vmul.f32 %v5235_v49, %v5235_v49 }
0x158e   :  { %v2671_v56 = vsel %vm189_vm1, %v2661_v57, 0.0 }
0x158f   :  { %2672 = vadd.xlane.f32.xlu1 %v2671_v56 }
0x15ea   :  { %v2664_v17 = vpop.xlane.xlu1 %2663 }
0x15eb   :  { %v2674_v19 = vmul.f32 %v2664_v17, %v4514_v32 }
0x15ed   :  { %v2678_v35 = vadd.f32 1e-05, %v2674_v19  ;;  %v4239_v19 = vld [vmem:[%s4941_s3 + $0x8] ss:$0 sm:$0xff] }
0x15ef   :  { %4380 = vrsqrt.f32 %v2678_v35  ;;  %vm2688_vm4 = vweird.f32 %v2678_v35 }
0x15f2   :  { %v2667_v50 = vpop.xlane.xlu2 %2666 }
0x15f3   :  { %v2675_v20 = vmul.f32 %v2667_v50, %v4514_v32 }
0x15f5   :  { %v4381_v22 = vpop.eup %4380  ;;  %v2679_v23 = vadd.f32 1e-05, %v2675_v20 }
0x15f6   :  { %v2683_v25 = vmul.f32 %v4381_v22, %v2678_v35  ;;  %vm2689_vm3 = vweird.f32 %v4381_v22 }
0x15f7   :  { %4382 = vrsqrt.f32 %v2679_v23  ;;  %vm2690_vm5 = vmor %vm2688_vm4, %vm2689_vm3  ;;  %vm2698_vm7 = vweird.f32 %v2679_v23 }
0x15f8   :  { %v2684_v27 = vmul.f32 %v4381_v22, %v2683_v25  ;;  %v4240_v25 = vld [vmem:[%s4941_s3 + $0xa] ss:$0 sm:$0xff] }
0x15fa   :  { %v2685_v28 = vmul.f32 0.5, %v2684_v27  ;;  %v2670_v24 = vpop.xlane.xlu0 %2669 }
0x15fb   :  { %v2676_v29 = vmul.f32 %v2670_v24, %v4514_v32 }
0x15fc   :  { %v2686_v33 = vsub.f32 1.5, %v2685_v28 }
0x15fd   :  { %v4383_v26 = vpop.eup %4382  ;;  %v2680_v41 = vadd.f32 1e-05, %v2676_v29 }
0x15fe   :  { %v2687_v38 = vmul.f32 %v4381_v22, %v2686_v33  ;;  %v2693_v39 = vmul.f32 %v4383_v26, %v2679_v23  ;;  %vm2699_vm6 = vweird.f32 %v4383_v26 }
0x15ff   :  { %4384 = vrsqrt.f32 %v2680_v41  ;;  %vm2700_vm8 = vmor %vm2698_vm7, %vm2699_vm6  ;;  %vm2708_vm10 = vweird.f32 %v2680_v41 }
0x1600   :  { %v2691_v44 = vsel %vm2690_vm5, %v4381_v22, %v2687_v38  ;;  %v2694_v30 = vmul.f32 %v4383_v26, %v2693_v39  ;;  %v4238_v22 = vld [vmem:[%s4941_s3 + $0x6] ss:$0 sm:$0xff] }
0x1601   :  { %v2722_v6 = vmul.f32 %v2691_v44, %v5214_v54 }
0x1602   :  { %v2695_v40 = vmul.f32 0.5, %v2694_v30  ;;  %v2673_v52 = vpop.xlane.xlu1 %2672 }
0x1603   :  { %v2727_v53 = vmul.f32 %v5256_v43, %v2722_v6  ;;  %v2677_v34 = vmul.f32 %v2673_v52, %v4514_v32 }
0x1604   :  { %v2696_v12 = vsub.f32 1.5, %v2695_v40  ;;  %v4104_v40 = vld [vmem:[%s4946_s7 + $0x130] sm:$0xff] }
0x1605   :  { %v4385_v47 = vpop.eup %4384  ;;  %v5265_v58 = vadd.f32 %v4237_v5, %v2727_v53  ;;  %v2681_v16 = vadd.f32 1e-05, %v2677_v34  ;;  %v4102_v53 = vld [vmem:[%s4946_s7 + $0x120] sm:$0xff] }
0x1606   :  { %v2697_v60 = vmul.f32 %v4383_v26, %v2696_v12  ;;  %v2703_v54 = vmul.f32 %v4385_v47, %v2680_v41  ;;  %vm2709_vm9 = vweird.f32 %v4385_v47 }
0x1607   :  { %4386 = vrsqrt.f32 %v2681_v16  ;;  %4057 = vmatmul.msk.f32.vlgmr.msra.gmra.mxu0 %vm189_vm1, %v5265_v58  ;;  %4066 = vmatmul.msk.f32.vlgmr.msra.gmra.mxu1 %vm189_vm1, %v5265_v58  ;;  %vm2710_vm11 = vmor %vm2708_vm10, %vm2709_vm9  ;;  %vm2718_vm13 = vweird.f32 %v2681_v16 }
0x1608   :  { %v2701_v48 = vsel %vm2700_vm8, %v4383_v26, %v2697_v60  ;;  %v2704_v62 = vmul.f32 %v4385_v47, %v2703_v54  ;;  %4075 = vmatmul.msk.f32.vlgmr.msrb.gmra.mxu2 %vm189_vm1, %v5265_v58 }
0x1609   :  { %v2723_v1 = vmul.f32 %v2701_v48, %v5221_v45 }
0x160a   :  { %v2705_v2 = vmul.f32 0.5, %v2704_v62 }
0x160b   :  { %v2728_v3 = vmul.f32 %v5256_v43, %v2723_v1 }
0x160c   :  { %v2706_v14 = vsub.f32 1.5, %v2705_v2 }
0x160d   :  { %v4387_v57 = vpop.eup %4386  ;;  %v5276_v56 = vadd.f32 %v4237_v5, %v2728_v3 }
0x160e   :  { %v2707_v8 = vmul.f32 %v4385_v47, %v2706_v14  ;;  %v2713_v18 = vmul.f32 %v4387_v57, %v2681_v16  ;;  %vm2719_vm12 = vweird.f32 %v4387_v57 }
0x160f   :  { %4058 = vmatmul.msk.f32.gmra.mxu0 %vm189_vm1, %v5276_v56  ;;  %4067 = vmatmul.msk.f32.gmra.mxu1 %vm189_vm1, %v5276_v56  ;;  %vm2720_vm14 = vmor %vm2718_vm13, %vm2719_vm12 }
0x1610   :  { %v2711_v45 = vsel %vm2710_vm11, %v4385_v47, %v2707_v8  ;;  %v2714_v55 = vmul.f32 %v4387_v57, %v2713_v18  ;;  %4076 = vmatmul.msk.f32.gmra.mxu2 %vm189_vm1, %v5276_v56 }
0x1611   :  { %v2724_v9 = vmul.f32 %v2711_v45, %v5228_v46 }
0x1612   :  { %v2715_v11 = vmul.f32 0.5, %v2714_v55 }
0x1613   :  { %v2729_v37 = vmul.f32 %v5256_v43, %v2724_v9 }
0x1614   :  { %v2716_v4 = vsub.f32 1.5, %v2715_v11 }
0x1615   :  { %v5286_v21 = vadd.f32 %v4237_v5, %v2729_v37 }
0x1616   :  { %v2717_v13 = vmul.f32 %v4387_v57, %v2716_v4 }
0x1617   :  { %4059 = vmatmul.msk.f32.gmra.mxu0 %vm189_vm1, %v5286_v21  ;;  %4068 = vmatmul.msk.f32.gmra.mxu1 %vm189_vm1, %v5286_v21 }
0x1618   :  { %v2721_v15 = vsel %vm2720_vm14, %v4387_v57, %v2717_v13  ;;  %4077 = vmatmul.msk.f32.gmra.mxu2 %vm189_vm1, %v5286_v21  ;;  %v4242_v57 = vld [vmem:[%s4941_s3 + $0x9] ss:$0 sm:$0xff] }
0x1619   :  { %v2725_v46 = vmul.f32 %v2721_v15, %v5235_v49 }
0x161b   :  { %v2730_v36 = vmul.f32 %v5256_v43, %v2725_v46 }
0x161d   :  { %v5296_v7 = vadd.f32 %v4237_v5, %v2730_v36 }
0x161f   :  { %4060 = vmatmul.msk.f32.gmra.mxu0 %vm189_vm1, %v5296_v7  ;;  %4069 = vmatmul.msk.f32.gmra.mxu1 %vm189_vm1, %v5296_v7 }
0x1620   :  { %4078 = vmatmul.msk.f32.gmra.mxu2 %vm189_vm1, %v5296_v7 }
0x1628   :  { %4098 = vmatmul.msk.f32.vlgmr.msra.gmra.mxu2 %vm189_vm1, %v5265_v58 }
0x1630   :  { %4099 = vmatmul.msk.f32.gmra.mxu2 %vm189_vm1, %v5276_v56 }
0x1638   :  { %4100 = vmatmul.msk.f32.gmra.mxu2 %vm189_vm1, %v5286_v21 }
0x1640   :  { %4101 = vmatmul.msk.f32.gmra.mxu2 %vm189_vm1, %v5296_v7 }
0x1684   :  { %v2814_v49 = vpop.f32.mrf.mxu1  ;;  %v2775_v17 = vpop.f32.mrf.mxu0 }
0x1685   :  { %v2815_v23 = vadd.f32 %v4239_v19, %v2814_v49  ;;  %v2776_v28 = vadd.f32 %v4238_v22, %v2775_v17 }
0x168b   :  { %v2853_v35 = vpop.f32.mrf.mxu2 }
0x168c   :  { %v2817_v50 = vpop.f32.mrf.mxu1  ;;  %v2778_v33 = vpop.f32.mrf.mxu0  ;;  %v2854_v26 = vadd.f32 %v4240_v25, %v2853_v35 }
0x168d   :  { %v2818_v20 = vadd.f32 %v4239_v19, %v2817_v50  ;;  %v2779_v38 = vadd.f32 %v4238_v22, %v2778_v33 }
0x168f   :  { %4079 = vmatpush.xpose.msk.msrb.mxu3 %vm422_vm15, %v2818_v20 }
0x1693   :  { %v2856_v27 = vpop.f32.mrf.mxu2  ;;  %4080 = vmatpush.xpose.msk.msrb.mxu3 %vm422_vm15, %v2815_v23 }
0x1694   :  { %v2857_v24 = vadd.f32 %v4240_v25, %v2856_v27  ;;  %v2820_v29 = vpop.f32.mrf.mxu1  ;;  %v2781_v44 = vpop.f32.mrf.mxu0 }
0x1695   :  { %v2821_v30 = vadd.f32 %v4239_v19, %v2820_v29  ;;  %v2782_v5 = vadd.f32 %v4238_v22, %v2781_v44 }
0x1696   :  { %3003 = vmatpush.msrb.mxu0 %v2857_v24  ;;  %4081 = vmatmul.msk.f32.vlgmr.msrb.gmra.mxu3 %vm422_vm15, %v2776_v28 }
0x1698   :  { %3004 = vmatpush.msrb.mxu0 %v2854_v26 }
0x169b   :  { %v2859_v41 = vpop.f32.mrf.mxu2 }
0x169c   :  { %v2823_v39 = vpop.f32.mrf.mxu1  ;;  %v2860_v52 = vadd.f32 %v4240_v25, %v2859_v41  ;;  %v2784_v34 = vpop.f32.mrf.mxu0 }
0x169d   :  { %v2824_v43 = vadd.f32 %v4239_v19, %v2823_v39  ;;  %v2785_v12 = vadd.f32 %v4238_v22, %v2784_v34 }
0x169e   :  { %4082 = vmatmul.msk.f32.gmra.mxu3 %vm422_vm15, %v2779_v38 }
0x169f   :  { %4083 = vmatpush.xpose.msk.msra.mxu3 %vm422_vm15, %v2824_v43 }
0x16a3   :  { %v2862_v0 = vpop.f32.mrf.mxu2  ;;  %4084 = vmatpush.xpose.msk.msra.mxu3 %vm422_vm15, %v2821_v30 }
0x16a4   :  { %v2863_v6 = vadd.f32 %v4240_v25, %v2862_v0 }
0x16a6   :  { %3032 = vmatpush.msrb.mxu1 %v2863_v6  ;;  %4085 = vmatmul.msk.f32.vlgmr.msra.gmra.mxu3 %vm422_vm15, %v2782_v5  ;;  %v4241_v6 = vld [vmem:[%s4941_s3 + $0x7] ss:$0 sm:$0xff] }
0x16a7   :  { %3105 = vmatpush.msrb.mxu3 %v4105_v59 }
0x16a8   :  { %3033 = vmatpush.msrb.mxu1 %v2860_v52 }
0x16a9   :  { %3106 = vmatpush.msrb.mxu3 %v4104_v40 }
0x16ab   :  { %3107 = vmatpush.msrb.mxu3 %v4103_v63  ;;  %v3071_v30 = vpop.f32.mrf.mxu2 }
0x16ac   :  { %v3072_v63 = vadd.f32 %v4241_v6, %v3071_v30 }
0x16ad   :  { %3108 = vmatpush.msrb.mxu3 %v4102_v53 }
0x16ae   :  { %4086 = vmatmul.msk.f32.gmra.mxu3 %vm422_vm15, %v2785_v12 }
0x16b3   :  { %v3074_v34 = vpop.f32.mrf.mxu2 }
0x16b4   :  { %v3075_v12 = vadd.f32 %v4241_v6, %v3074_v34 }
0x16b6   :  { %4107 = vmatmul.msk.f32.vlgmr.msrb.gmra.mxu3 %vm189_vm1, %v5265_v58 }
0x16be   :  { %4108 = vmatmul.msk.f32.gmra.mxu3 %vm189_vm1, %v5276_v56 }
0x16c6   :  { %4109 = vmatmul.msk.f32.gmra.mxu3 %vm189_vm1, %v5286_v21 }
0x16ce   :  { %4110 = vmatmul.msk.f32.gmra.mxu3 %vm189_vm1, %v5296_v7 }
0x1719   :  { %v2894_v47 = vpop.f32.mrf.mxu3 }
0x171a   :  { %v2935_v2 = vmul.f32 0.25, %v2894_v47  ;;  %v3077_v47 = vpop.f32.mrf.mxu2 }
0x171c   :  { %v2939_v14 = vsel %vm422_vm15, %v2935_v2, -inf }
0x1721   :  { %v2897_v16 = vpop.f32.mrf.mxu3 }
0x1722   :  { %v2936_v36 = vmul.f32 0.25, %v2897_v16  ;;  %v3078_v16 = vadd.f32 %v4241_v6, %v3077_v47  ;;  %v4133_v47 = vld [vmem:[%s5066_s12 + $0x38] sm:$0xff] }
0x1724   :  { %v2942_v50 = vsel %vm422_vm15, %v2936_v36, -inf }
0x1729   :  { %v2929_v60 = vpop.f32.mrf.mxu3 }
0x172a   :  { %v2937_v54 = vmul.f32 0.25, %v2929_v60  ;;  %v3080_v60 = vpop.f32.mrf.mxu2 }
0x172c   :  { %v2945_v61 = vsel %vm422_vm15, %v2937_v54, -inf }
0x172d   :  { %2946 = vmax.xlane.f32.xlu2 %v2945_v61  ;;  %v4114_v61 = vld [vmem:[%s4946_s7 + $0x178] sm:$0xff] }
0x172e   :  { %3144 = vmatpush.msra.mxu0 %v4114_v61 }
0x1731   :  { %v2932_v48 = vpop.f32.mrf.mxu3 }
0x1732   :  { %v2938_v62 = vmul.f32 0.25, %v2932_v48  ;;  %v4113_v48 = vld [vmem:[%s4946_s7 + $0x170] sm:$0xff] }
0x1733   :  { %3145 = vmatpush.msra.mxu0 %v4113_v48 }
0x1734   :  { %v2948_v1 = vsel %vm422_vm15, %v2938_v62, -inf }
0x1735   :  { %2949 = vmax.xlane.f32.xlu0 %v2948_v1  ;;  %v4112_v1 = vld [vmem:[%s4946_s7 + $0x168] sm:$0xff] }
0x1736   :  { %3146 = vmatpush.msra.mxu0 %v4112_v1 }
0x1739   :  { %v3110_v3 = vpop.f32.mrf.mxu3 }
0x173a   :  { %v3111_v45 = vadd.f32 %v4242_v57, %v3110_v3  ;;  %v4111_v3 = vld [vmem:[%s4946_s7 + $0x160] sm:$0xff] }
0x173b   :  { %3147 = vmatpush.msra.mxu0 %v4111_v3 }
0x173d   :  { %2940 = vmax.xlane.f32.xlu0 %v2939_v14 }
0x1741   :  { %v3113_v8 = vpop.f32.mrf.mxu3 }
0x1742   :  { %v3114_v18 = vadd.f32 %v4242_v57, %v3113_v8 }
0x1744   :  { %4120 = vmatpush.xpose.msk.msra.mxu1 %vm422_vm15, %v3114_v18 }
0x1748   :  { %4121 = vmatpush.xpose.msk.msra.mxu1 %vm422_vm15, %v3111_v45 }
0x1749   :  { %v3116_v25 = vpop.f32.mrf.mxu3 }
0x174a   :  { %v3117_v43 = vadd.f32 %v4242_v57, %v3116_v25 }
0x1751   :  { %v3119_v28 = vpop.f32.mrf.mxu3 }
0x1752   :  { %v3120_v41 = vadd.f32 %v4242_v57, %v3119_v28  ;;  %v4243_v28 = vld [vmem:[%s4941_s3 + $0xb] ss:$0 sm:$0xff] }
0x17a0   :  { %v2947_v55 = vpop.xlane.xlu2 %2946 }
0x17a1   :  { %v2953_v9 = vsub.f32 %v2937_v54, %v2947_v55  ;;  %v3081_v54 = vadd.f32 %v4241_v6, %v3080_v60 }
0x17a3   :  { %v2959_v11 = vmul.f32 1.442695, %v2953_v9 }
0x17a5   :  { %4388 = vpow2.f32 %v2959_v11 }
0x17a8   :  { %v2950_v37 = vpop.xlane.xlu0 %2949 }
0x17a9   :  { %v2954_v4 = vsub.f32 %v2938_v62, %v2950_v37  ;;  %v4092_v62 = vld [vmem:[%s5066_s12 + $0x28] sm:$0xff] }
0x17ab   :  { %v4389_v13 = vpop.eup %4388  ;;  %v2961_v15 = vmul.f32 1.442695, %v2954_v4 }
0x17ac   :  { %v2969_v46 = vsel %vm422_vm15, %v4389_v13, 0.0 }
0x17ad   :  { %4390 = vpow2.f32 %v2961_v15  ;;  %2970 = vadd.xlane.f32.xlu1 %v2969_v46 }
0x17b0   :  { %v2941_v49 = vpop.xlane.xlu0 %2940 }
0x17b1   :  { %v2951_v17 = vsub.f32 %v2935_v2, %v2941_v49  ;;  %v4091_v2 = vld [vmem:[%s5066_s12 + $0x20] sm:$0xff] }
0x17b3   :  { %v4391_v19 = vpop.eup %4390  ;;  %v2955_v35 = vmul.f32 1.442695, %v2951_v17 }
0x17b4   :  { %v2972_v20 = vsel %vm422_vm15, %v4391_v19, 0.0 }
0x17b5   :  { %4392 = vpow2.f32 %v2955_v35  ;;  %2943 = vmax.xlane.f32.xlu1 %v2942_v50  ;;  %2973 = vadd.xlane.f32.xlu2 %v2972_v20 }
0x17bb   :  { %v4393_v22 = vpop.eup %4392 }
0x17bc   :  { %v2963_v23 = vsel %vm422_vm15, %v4393_v22, 0.0 }
0x17bd   :  { %2964 = vadd.xlane.f32.xlu2 %v2963_v23 }
0x1820   :  { %v2971_v27 = vpop.xlane.xlu1 %2970 }
0x1821   :  { %4394 = vrcp.f32 %v2971_v27 }
0x1827   :  { %v4395_v24 = vpop.eup %4394 }
0x1828   :  { %v2981_v29 = vmul.f32 %v4395_v24, %v4389_v13  ;;  %v2944_v33 = vpop.xlane.xlu1 %2943  ;;  %v2974_v26 = vpop.xlane.xlu2 %2973 }
0x1829   :  { %v2952_v38 = vsub.f32 %v2936_v36, %v2944_v33  ;;  %4396 = vrcp.f32 %v2974_v26 }
0x182a   :  { %4089 = vmatmul.msk.f32.vlgmr.msrb.gmra.mxu1 %vm422_vm15, %v2981_v29 }
0x182b   :  { %v2957_v39 = vmul.f32 1.442695, %v2952_v38  ;;  %4124 = vmatpush.xpose.msk.msrb.mxu1 %vm422_vm15, %v3120_v41 }
0x182d   :  { %4398 = vpow2.f32 %v2957_v39 }
0x182f   :  { %v4397_v44 = vpop.eup %4396  ;;  %4125 = vmatpush.xpose.msk.msrb.mxu1 %vm422_vm15, %v3117_v43 }
0x1830   :  { %v2965_v59 = vpop.xlane.xlu2 %2964  ;;  %v2982_v0 = vmul.f32 %v4397_v44, %v4391_v19 }
0x1831   :  { %4400 = vrcp.f32 %v2965_v59 }
0x1832   :  { %4090 = vmatmul.msk.f32.gmra.mxu1 %vm422_vm15, %v2982_v0 }
0x1833   :  { %v4399_v5 = vpop.eup %4398 }
0x1834   :  { %v2966_v40 = vsel %vm422_vm15, %v4399_v5, 0.0 }
0x1835   :  { %2967 = vadd.xlane.f32.xlu0 %v2966_v40 }
0x1837   :  { %v4401_v52 = vpop.eup %4400 }
0x1838   :  { %v2979_v53 = vmul.f32 %v4401_v52, %v4393_v22 }
0x183a   :  { %4087 = vmatmul.msk.f32.vlgmr.msrb.gmra.mxu0 %vm422_vm15, %v2979_v53  ;;  %4122 = vmatmul.msk.f32.vlgmr.msra.gmra.mxu1 %vm422_vm15, %v3072_v63 }
0x183b   :  { %3407 = vmatpush.msra.mxu1 %v4092_v62  ;;  %3366 = vmatpush.msrb.mxu0 %v4133_v47  ;;  %v4144_v47 = vld [vmem:[%s5154_s15 + $0x30] sm:$0xff] }
0x183d   :  { %3408 = vmatpush.msra.mxu1 %v4091_v2 }
0x1842   :  { %4123 = vmatmul.msk.f32.gmra.mxu1 %vm422_vm15, %v3075_v12 }
0x184a   :  { %4126 = vmatmul.msk.f32.vlgmr.msrb.gmra.mxu1 %vm422_vm15, %v3078_v16 }
0x1852   :  { %4127 = vmatmul.msk.f32.gmra.mxu1 %vm422_vm15, %v3081_v54 }
0x18a7   :  { %v3035_v14 = vpop.f32.mrf.mxu1 }
0x18a8   :  { %v2968_v57 = vpop.xlane.xlu0 %2967 }
0x18a9   :  { %4402 = vrcp.f32 %v2968_v57 }
0x18af   :  { %v4403_v8 = vpop.eup %4402  ;;  %v3038_v18 = vpop.f32.mrf.mxu1 }
0x18b0   :  { %v2980_v45 = vmul.f32 %v4403_v8, %v4399_v5  ;;  %v4132_v8 = vld [vmem:[%s5066_s12 + $0x30] sm:$0xff] }
0x18b1   :  { %3367 = vmatpush.msrb.mxu0 %v4132_v8 }
0x18b2   :  { %4088 = vmatmul.msk.f32.gmra.mxu0 %vm422_vm15, %v2980_v45 }
0x18b7   :  { %v3006_v55 = vpop.f32.mrf.mxu0  ;;  %v3190_v9 = vpop.f32.mrf.mxu1 }
0x18b8   :  { %v3231_v11 = vmul.f32 0.25, %v3190_v9  ;;  %4138 = vmatmul.msk.f32.vlgmr.msra.gmra.mxu1 %vm422_vm15, %v3006_v55 }
0x18ba   :  { %4116 = vmatmul.msk.f32.vlgmr.msra.gmra.mxu0 %vm189_vm1, %v5265_v58  ;;  %v3235_v37 = vsel %vm422_vm15, %v3231_v11, -inf }
0x18bb   :  { %3236 = vmax.xlane.f32.xlu1 %v3235_v37 }
0x18bf   :  { %v3193_v4 = vpop.f32.mrf.mxu1 }
0x18c0   :  { %v3232_v13 = vmul.f32 0.25, %v3193_v4 }
0x18c2   :  { %4117 = vmatmul.msk.f32.gmra.mxu0 %vm189_vm1, %v5276_v56  ;;  %v3238_v15 = vsel %vm422_vm15, %v3232_v13, -inf }
0x18c3   :  { %3239 = vmax.xlane.f32.xlu2 %v3238_v15 }
0x18c7   :  { %v3225_v46 = vpop.f32.mrf.mxu1 }
0x18c8   :  { %v3233_v36 = vmul.f32 0.25, %v3225_v46 }
0x18ca   :  { %4118 = vmatmul.msk.f32.gmra.mxu0 %vm189_vm1, %v5286_v21  ;;  %v3241_v49 = vsel %vm422_vm15, %v3233_v36, -inf }
0x18cb   :  { %3242 = vmax.xlane.f32.xlu0 %v3241_v49 }
0x18cf   :  { %v3228_v58 = vpop.f32.mrf.mxu1 }
0x18d0   :  { %v3234_v17 = vmul.f32 0.25, %v3228_v58 }
0x18d2   :  { %4119 = vmatmul.msk.f32.gmra.mxu0 %vm189_vm1, %v5296_v7  ;;  %v3244_v19 = vsel %vm422_vm15, %v3234_v17, -inf }
0x18d3   :  { %3245 = vmax.xlane.f32.xlu1 %v3244_v19 }
0x192e   :  { %v3237_v56 = vpop.xlane.xlu1 %3236 }
0x192f   :  { %v3247_v35 = vsub.f32 %v3231_v11, %v3237_v56  ;;  %v3009_v50 = vpop.f32.mrf.mxu0 }
0x1930   :  { %4139 = vmatmul.msk.f32.gmra.mxu1 %vm422_vm15, %v3009_v50 }
0x1931   :  { %v3251_v20 = vmul.f32 1.442695, %v3247_v35 }
0x1933   :  { %4404 = vpow2.f32 %v3251_v20 }
0x1935   :  { %v3410_v11 = vpop.f32.mrf.mxu1 }
0x1936   :  { %v3240_v21 = vpop.xlane.xlu2 %3239 }
0x1937   :  { %v3248_v22 = vsub.f32 %v3232_v13, %v3240_v21  ;;  %v3149_v23 = vpop.f32.mrf.mxu0  ;;  %v4244_v13 = vld [vmem:[%s4906_s29 + $0xc] ss:$0 sm:$0xff] }
0x1938   :  { %4140 = vmatmul.msk.f32.gmra.mxu1 %vm422_vm15, %v3035_v14  ;;  %v3150_v39 = vadd.f32 %v4243_v28, %v3149_v23 }
0x1939   :  { %v4405_v25 = vpop.eup %4404  ;;  %v3253_v27 = vmul.f32 1.442695, %v3248_v22 }
0x193a   :  { %v3259_v7 = vsel %vm422_vm15, %v4405_v25, 0.0 }
0x193b   :  { %4406 = vpow2.f32 %v3253_v27  ;;  %3260 = vadd.xlane.f32.xlu2 %v3259_v7 }
0x193e   :  { %v3243_v24 = vpop.xlane.xlu0 %3242 }
0x193f   :  { %v3249_v29 = vsub.f32 %v3233_v36, %v3243_v24  ;;  %v3152_v33 = vpop.f32.mrf.mxu0 }
0x1940   :  { %v3153_v26 = vadd.f32 %v4243_v28, %v3152_v33  ;;  %4141 = vmatmul.msk.f32.gmra.mxu1 %vm422_vm15, %v3038_v18 }
0x1941   :  { %v4407_v41 = vpop.eup %4406  ;;  %v3255_v38 = vmul.f32 1.442695, %v3249_v29 }
0x1942   :  { %3299 = vmatpush.msrb.mxu2 %v3153_v26  ;;  %v3262_v43 = vsel %vm422_vm15, %v4407_v41, 0.0 }
0x1943   :  { %4408 = vpow2.f32 %v3255_v38  ;;  %3263 = vadd.xlane.f32.xlu0 %v3262_v43 }
0x1944   :  { %3300 = vmatpush.msrb.mxu2 %v3150_v39 }
0x1946   :  { %v3246_v44 = vpop.xlane.xlu1 %3245 }
0x1947   :  { %v3250_v30 = vsub.f32 %v3234_v17, %v3246_v44  ;;  %v3155_v59 = vpop.f32.mrf.mxu0 }
0x1948   :  { %v3156_v53 = vadd.f32 %v4243_v28, %v3155_v59 }
0x1949   :  { %v4409_v0 = vpop.eup %4408  ;;  %v3257_v5 = vmul.f32 1.442695, %v3250_v30 }
0x194a   :  { %v3265_v6 = vsel %vm422_vm15, %v4409_v0, 0.0 }
0x194b   :  { %4410 = vpow2.f32 %v3257_v5  ;;  %3266 = vadd.xlane.f32.xlu1 %v3265_v6 }
0x194f   :  { %v3158_v40 = vpop.f32.mrf.mxu0 }
0x1950   :  { %v3159_v52 = vadd.f32 %v4243_v28, %v3158_v40 }
0x1951   :  { %v4411_v63 = vpop.eup %4410 }
0x1952   :  { %3328 = vmatpush.msra.mxu3 %v3159_v52  ;;  %v3268_v34 = vsel %vm422_vm15, %v4411_v63, 0.0 }
0x1953   :  { %3269 = vadd.xlane.f32.xlu2 %v3268_v34 }
0x1954   :  { %3329 = vmatpush.msra.mxu3 %v3156_v53 }
0x19ad   :  { %v3413_v46 = vpop.f32.mrf.mxu1 }
0x19ae   :  { %v3261_v12 = vpop.xlane.xlu2 %3260 }
0x19af   :  { %4412 = vrcp.f32 %v3261_v12  ;;  %v4145_v12 = vld [vmem:[%s5154_s15 + $0x38] sm:$0xff] }
0x19b0   :  { %3559 = vmatpush.msra.mxu2 %v4145_v12  ;;  %v4157_v12 = vld [vmem:[%s5176_s19 + $0x78] sm:$0xff] }
0x19b1   :  { %3642 = vmatpush.msrb.mxu3 %v4157_v12 }
0x19b2   :  { %3560 = vmatpush.msra.mxu2 %v4144_v47  ;;  %v4156_v47 = vld [vmem:[%s5176_s19 + $0x70] sm:$0xff] }
0x19b3   :  { %3643 = vmatpush.msrb.mxu3 %v4156_v47 }
0x19b5   :  { %v4413_v16 = vpop.eup %4412  ;;  %v3416_v35 = vpop.f32.mrf.mxu1 }
0x19b6   :  { %v3275_v60 = vmul.f32 %v4413_v16, %v4405_v25  ;;  %v3264_v54 = vpop.xlane.xlu0 %3263  ;;  %v4143_v16 = vld [vmem:[%s5154_s15 + $0x28] sm:$0xff] }
0x19b7   :  { %4414 = vrcp.f32 %v3264_v54  ;;  %3561 = vmatpush.msra.mxu2 %v4143_v16  ;;  %v4155_v16 = vld [vmem:[%s5176_s19 + $0x68] sm:$0xff] }
0x19b8   :  { %4128 = vmatmul.msk.f32.vlgmr.msrb.gmra.mxu2 %vm422_vm15, %v3275_v60  ;;  %v4142_v60 = vld [vmem:[%s5154_s15 + $0x20] sm:$0xff]  ;;  %3644 = vmatpush.msrb.mxu3 %v4155_v16 }
0x19b9   :  { %3562 = vmatpush.msra.mxu2 %v4142_v60  ;;  %v4154_v60 = vld [vmem:[%s5176_s19 + $0x60] sm:$0xff] }
0x19ba   :  { %3645 = vmatpush.msrb.mxu3 %v4154_v60 }
0x19bd   :  { %v4415_v61 = vpop.eup %4414  ;;  %v3419_v25 = vpop.f32.mrf.mxu1 }
0x19be   :  { %v3267_v48 = vpop.xlane.xlu1 %3266  ;;  %v3276_v62 = vmul.f32 %v4415_v61, %v4407_v41 }
0x19bf   :  { %4416 = vrcp.f32 %v3267_v48 }
0x19c0   :  { %4129 = vmatmul.msk.f32.gmra.mxu2 %vm422_vm15, %v3276_v62 }
0x19c5   :  { %v4417_v1 = vpop.eup %4416 }
0x19c6   :  { %v3277_v2 = vmul.f32 %v4417_v1, %v4409_v0  ;;  %v3270_v3 = vpop.xlane.xlu2 %3269 }
0x19c7   :  { %4418 = vrcp.f32 %v3270_v3 }
0x19c8   :  { %4130 = vmatmul.msk.f32.vlgmr.msra.gmra.mxu3 %vm422_vm15, %v3277_v2 }
0x19cd   :  { %v4419_v14 = vpop.eup %4418 }
0x19ce   :  { %v3278_v57 = vmul.f32 %v4419_v14, %v4411_v63 }
0x19d0   :  { %4131 = vmatmul.msk.f32.gmra.mxu3 %vm422_vm15, %v3278_v57 }
0x1a3b   :  { %v3302_v18 = vpop.f32.mrf.mxu2 }
0x1a3c   :  { %4134 = vmatmul.msk.f32.vlgmr.msrb.gmra.mxu0 %vm422_vm15, %v3302_v18 }
0x1a43   :  { %v3305_v45 = vpop.f32.mrf.mxu2 }
0x1a44   :  { %4135 = vmatmul.msk.f32.gmra.mxu0 %vm422_vm15, %v3305_v45 }
0x1a4b   :  { %v3331_v55 = vpop.f32.mrf.mxu3 }
0x1a4c   :  { %4136 = vmatmul.msk.f32.gmra.mxu0 %vm422_vm15, %v3331_v55 }
0x1a53   :  { %v3334_v9 = vpop.f32.mrf.mxu3 }
0x1a54   :  { %4137 = vmatmul.msk.f32.gmra.mxu0 %vm422_vm15, %v3334_v9 }
0x1ab9   :  { %v3369_v37 = vpop.f32.mrf.mxu0 }
0x1aba   :  { %v3411_v4 = vadd.f32 %v3410_v11, %v3369_v37 }
0x1abc   :  { %v3422_v15 = vadd.f32 %v3411_v4, %v5193_v42 }
0x1abe   :  { %v5396_v36 = vadd.f32 %v4244_v13, %v3422_v15 }
0x1ac0   :  { %v3431_v49 = vsel %vm189_vm1, %v5396_v36, 0.0 }
0x1ac1   :  { %3432 = vadd.xlane.f32.xlu0 %v3431_v49  ;;  %v3372_v58 = vpop.f32.mrf.mxu0  ;;  %v4246_v49 = vld [vmem:[%s4906_s29 + $0xb] ss:$0 sm:$0xff] }
0x1ac2   :  { %v3414_v17 = vadd.f32 %v3413_v46, %v3372_v58 }
0x1ac4   :  { %v3423_v19 = vadd.f32 %v3414_v17, %v5198_v31 }
0x1ac6   :  { %v5401_v56 = vadd.f32 %v4244_v13, %v3423_v19 }
0x1ac8   :  { %v3434_v50 = vsel %vm189_vm1, %v5401_v56, 0.0 }
0x1ac9   :  { %3435 = vadd.xlane.f32.xlu1 %v3434_v50  ;;  %v3375_v20 = vpop.f32.mrf.mxu0 }
0x1aca   :  { %v3417_v42 = vadd.f32 %v3416_v35, %v3375_v20 }
0x1acc   :  { %v3424_v21 = vadd.f32 %v3417_v42, %v5203_v51 }
0x1ace   :  { %v5406_v22 = vadd.f32 %v4244_v13, %v3424_v21 }
0x1ad0   :  { %v3437_v23 = vsel %vm189_vm1, %v5406_v22, 0.0 }
0x1ad1   :  { %3438 = vadd.xlane.f32.xlu2 %v3437_v23  ;;  %v3378_v27 = vpop.f32.mrf.mxu0 }
0x1ad2   :  { %v3420_v31 = vadd.f32 %v3419_v25, %v3378_v27 }
0x1ad4   :  { %v3425_v7 = vadd.f32 %v3420_v31, %v5208_v10 }
0x1ad6   :  { %v5411_v28 = vadd.f32 %v4244_v13, %v3425_v7  ;;  %v4245_v13 = vld [vmem:[%s4906_s29 + $0xa] ss:$0 sm:$0xff] }
0x1ad8   :  { %v3440_v24 = vsel %vm189_vm1, %v5411_v28, 0.0 }
0x1ad9   :  { %3441 = vadd.xlane.f32.xlu0 %v3440_v24 }
0x1b34   :  { %v3433_v29 = vpop.xlane.xlu0 %3432 }
0x1b35   :  { %v3443_v51 = vmul.f32 %v3433_v29, %v4514_v32 }
0x1b37   :  { %v3447_v33 = vsub.f32 %v5396_v36, %v3443_v51 }
0x1b39   :  { %v3451_v26 = vmul.f32 %v3447_v33, %v3447_v33 }
0x1b3b   :  { %v3455_v41 = vsel %vm189_vm1, %v3451_v26, 0.0 }
0x1b3c   :  { %v3436_v38 = vpop.xlane.xlu1 %3435  ;;  %3456 = vadd.xlane.f32.xlu1 %v3455_v41 }
0x1b3d   :  { %v3444_v39 = vmul.f32 %v3436_v38, %v4514_v32 }
0x1b3f   :  { %v5420_v10 = vsub.f32 %v5401_v56, %v3444_v39 }
0x1b41   :  { %v3452_v43 = vmul.f32 %v5420_v10, %v5420_v10 }
0x1b43   :  { %v3458_v44 = vsel %vm189_vm1, %v3452_v43, 0.0 }
0x1b44   :  { %3459 = vadd.xlane.f32.xlu2 %v3458_v44  ;;  %v3439_v30 = vpop.xlane.xlu2 %3438 }
0x1b45   :  { %v3445_v59 = vmul.f32 %v3439_v30, %v4514_v32 }
0x1b47   :  { %v5427_v0 = vsub.f32 %v5406_v22, %v3445_v59 }
0x1b49   :  { %v3453_v5 = vmul.f32 %v5427_v0, %v5427_v0 }
0x1b4b   :  { %v3461_v6 = vsel %vm189_vm1, %v3453_v5, 0.0 }
0x1b4c   :  { %3462 = vadd.xlane.f32.xlu0 %v3461_v6  ;;  %v3442_v40 = vpop.xlane.xlu0 %3441 }
0x1b4d   :  { %v3446_v52 = vmul.f32 %v3442_v40, %v4514_v32 }
0x1b4f   :  { %v5434_v63 = vsub.f32 %v5411_v28, %v3446_v52 }
0x1b51   :  { %v3454_v53 = vmul.f32 %v5434_v63, %v5434_v63 }
0x1b53   :  { %v3464_v34 = vsel %vm189_vm1, %v3454_v53, 0.0 }
0x1b54   :  { %3465 = vadd.xlane.f32.xlu1 %v3464_v34 }
0x1baf   :  { %v3457_v54 = vpop.xlane.xlu1 %3456 }
0x1bb0   :  { %v3467_v61 = vmul.f32 %v3457_v54, %v4514_v32  ;;  %v4153_v54 = vld [vmem:[%s5176_s19 + $0x58] sm:$0xff] }
0x1bb1   :  { %3646 = vmatpush.msrb.mxu3 %v4153_v54 }
0x1bb2   :  { %v3471_v48 = vadd.f32 1e-05, %v3467_v61  ;;  %v4152_v61 = vld [vmem:[%s5176_s19 + $0x50] sm:$0xff] }
0x1bb3   :  { %3647 = vmatpush.msrb.mxu3 %v4152_v61 }
0x1bb4   :  { %4420 = vrsqrt.f32 %v3471_v48  ;;  %vm3481_vm2 = vweird.f32 %v3471_v48 }
0x1bb7   :  { %v3460_v62 = vpop.xlane.xlu2 %3459 }
0x1bb8   :  { %v3468_v1 = vmul.f32 %v3460_v62, %v4514_v32  ;;  %v4247_v62 = vld [vmem:[%s4906_s29 + $0xe] ss:$0 sm:$0xff] }
0x1bba   :  { %v4421_v2 = vpop.eup %4420  ;;  %v3472_v3 = vadd.f32 1e-05, %v3468_v1 }
0x1bbb   :  { %v3476_v14 = vmul.f32 %v4421_v2, %v3471_v48  ;;  %vm3482_vm15 = vweird.f32 %v4421_v2  ;;  %v4150_v48 = vld [vmem:[%s5176_s19 + $0x40] sm:$0xff] }
0x1bbc   :  { %4422 = vrsqrt.f32 %v3472_v3  ;;  %vm3483_vm3 = vmor %vm3481_vm2, %vm3482_vm15  ;;  %vm3491_vm5 = vweird.f32 %v3472_v3 }
0x1bbd   :  { %v3477_v57 = vmul.f32 %v4421_v2, %v3476_v14 }
0x1bbf   :  { %v3478_v8 = vmul.f32 0.5, %v3477_v57  ;;  %v3463_v18 = vpop.xlane.xlu0 %3462 }
0x1bc0   :  { %v3469_v45 = vmul.f32 %v3463_v18, %v4514_v32 }
0x1bc1   :  { %v3479_v55 = vsub.f32 1.5, %v3478_v8 }
0x1bc2   :  { %v4423_v9 = vpop.eup %4422  ;;  %v3473_v11 = vadd.f32 1e-05, %v3469_v45 }
0x1bc3   :  { %v3480_v37 = vmul.f32 %v4421_v2, %v3479_v55  ;;  %v3486_v4 = vmul.f32 %v4423_v9, %v3472_v3  ;;  %vm3492_vm4 = vweird.f32 %v4423_v9 }
0x1bc4   :  { %4424 = vrsqrt.f32 %v3473_v11  ;;  %vm3493_vm6 = vmor %vm3491_vm5, %vm3492_vm4  ;;  %vm3501_vm8 = vweird.f32 %v3473_v11 }
0x1bc5   :  { %v3484_v15 = vsel %vm3483_vm3, %v4421_v2, %v3480_v37  ;;  %v3487_v46 = vmul.f32 %v4423_v9, %v3486_v4 }
0x1bc6   :  { %v3515_v58 = vmul.f32 %v3484_v15, %v3447_v33 }
0x1bc7   :  { %v3488_v17 = vmul.f32 0.5, %v3487_v46  ;;  %v3466_v19 = vpop.xlane.xlu1 %3465 }
0x1bc8   :  { %v3520_v35 = vmul.f32 %v4245_v13, %v3515_v58  ;;  %v3470_v50 = vmul.f32 %v3466_v19, %v4514_v32 }
0x1bc9   :  { %v3489_v20 = vsub.f32 1.5, %v3488_v17 }
0x1bca   :  { %v4425_v42 = vpop.eup %4424  ;;  %v3525_v21 = vadd.f32 %v4246_v49, %v3520_v35  ;;  %v3474_v23 = vadd.f32 1e-05, %v3470_v50 }
0x1bcb   :  { %v3490_v25 = vmul.f32 %v4423_v9, %v3489_v20  ;;  %v3496_v27 = vmul.f32 %v4425_v42, %v3473_v11  ;;  %vm3502_vm7 = vweird.f32 %v4425_v42 }
0x1bcc   :  { %4426 = vrsqrt.f32 %v3474_v23  ;;  %4146 = vmatmul.msk.f32.vlgmr.msra.gmra.mxu2 %vm189_vm1, %v3525_v21  ;;  %vm3503_vm9 = vmor %vm3501_vm8, %vm3502_vm7  ;;  %vm3511_vm11 = vweird.f32 %v3474_v23 }
0x1bcd   :  { %v3494_v31 = vsel %vm3493_vm6, %v4423_v9, %v3490_v25  ;;  %v3497_v7 = vmul.f32 %v4425_v42, %v3496_v27 }
0x1bce   :  { %v3516_v24 = vmul.f32 %v3494_v31, %v5420_v10 }
0x1bcf   :  { %v3498_v29 = vmul.f32 0.5, %v3497_v7 }
0x1bd0   :  { %v3521_v51 = vmul.f32 %v4245_v13, %v3516_v24 }
0x1bd1   :  { %v3499_v33 = vsub.f32 1.5, %v3498_v29 }
0x1bd2   :  { %v4427_v26 = vpop.eup %4426  ;;  %v3526_v41 = vadd.f32 %v4246_v49, %v3521_v51 }
0x1bd3   :  { %v3500_v38 = vmul.f32 %v4425_v42, %v3499_v33  ;;  %v3506_v39 = vmul.f32 %v4427_v26, %v3474_v23  ;;  %vm3512_vm10 = vweird.f32 %v4427_v26 }
0x1bd4   :  { %4147 = vmatmul.msk.f32.gmra.mxu2 %vm189_vm1, %v3526_v41  ;;  %vm3513_vm12 = vmor %vm3511_vm11, %vm3512_vm10 }
0x1bd5   :  { %v3504_v43 = vsel %vm3503_vm9, %v4425_v42, %v3500_v38  ;;  %v3507_v44 = vmul.f32 %v4427_v26, %v3506_v39 }
0x1bd6   :  { %v3517_v30 = vmul.f32 %v3504_v43, %v5427_v0 }
0x1bd7   :  { %v3508_v59 = vmul.f32 0.5, %v3507_v44 }
0x1bd8   :  { %v3522_v10 = vmul.f32 %v4245_v13, %v3517_v30 }
0x1bd9   :  { %v3509_v5 = vsub.f32 1.5, %v3508_v59 }
0x1bda   :  { %v3527_v6 = vadd.f32 %v4246_v49, %v3522_v10 }
0x1bdb   :  { %v3510_v40 = vmul.f32 %v4427_v26, %v3509_v5 }
0x1bdc   :  { %4148 = vmatmul.msk.f32.gmra.mxu2 %vm189_vm1, %v3527_v6  ;;  %v4248_v6 = vld [vmem:[%s4906_s29 + $0xd] ss:$0 sm:$0xff] }
0x1bdd   :  { %v3514_v52 = vsel %vm3513_vm12, %v4427_v26, %v3510_v40 }
0x1bde   :  { %v3518_v53 = vmul.f32 %v3514_v52, %v5434_v63  ;;  %v4151_v63 = vld [vmem:[%s5176_s19 + $0x48] sm:$0xff] }
0x1bdf   :  { %3648 = vmatpush.msrb.mxu3 %v4151_v63 }
0x1be0   :  { %v3523_v0 = vmul.f32 %v4245_v13, %v3518_v53 }
0x1be1   :  { %3649 = vmatpush.msrb.mxu3 %v4150_v48 }
0x1be2   :  { %v3528_v34 = vadd.f32 %v4246_v49, %v3523_v0 }
0x1be4   :  { %4149 = vmatmul.msk.f32.gmra.mxu2 %vm189_vm1, %v3528_v34 }
0x1c4f   :  { %v3564_v1 = vpop.f32.mrf.mxu2 }
0x1c50   :  { %v3565_v2 = vadd.f32 %v4247_v62, %v3564_v1 }
0x1c52   :  { %v3580_v3 = vmul.f32 0.044715, %v3565_v2  ;;  %v3576_v17 = vmul.f32 0.5, %v3565_v2 }
0x1c54   :  { %v3584_v14 = vmul.f32 %v3580_v3, %v3565_v2 }
0x1c56   :  { %v3588_v57 = vmul.f32 %v3584_v14, %v3565_v2 }
0x1c57   :  { %v3567_v8 = vpop.f32.mrf.mxu2 }
0x1c58   :  { %v3592_v18 = vadd.f32 %v3588_v57, %v3565_v2  ;;  %v3568_v45 = vadd.f32 %v4247_v62, %v3567_v8 }
0x1c5a   :  { %v3596_v55 = vmul.f32 0.7978846, %v3592_v18  ;;  %v3581_v9 = vmul.f32 0.044715, %v3568_v45  ;;  %v3577_v7 = vmul.f32 0.5, %v3568_v45 }
0x1c5c   :  { %4428 = vtanh.f32 %v3596_v55  ;;  %v3585_v11 = vmul.f32 %v3581_v9, %v3568_v45 }
0x1c5e   :  { %v3589_v37 = vmul.f32 %v3585_v11, %v3568_v45 }
0x1c5f   :  { %v3570_v4 = vpop.f32.mrf.mxu2 }
0x1c60   :  { %v3571_v13 = vadd.f32 %v4247_v62, %v3570_v4  ;;  %v3593_v15 = vadd.f32 %v3589_v37, %v3568_v45 }
0x1c62   :  { %v4429_v46 = vpop.eup %4428  ;;  %v3582_v49 = vmul.f32 0.044715, %v3571_v13  ;;  %v3597_v58 = vmul.f32 0.7978846, %v3593_v15  ;;  %v3578_v39 = vmul.f32 0.5, %v3571_v13 }
0x1c63   :  { %v3604_v19 = vadd.f32 1.0, %v4429_v46 }
0x1c64   :  { %v3586_v35 = vmul.f32 %v3582_v49, %v3571_v13  ;;  %4430 = vtanh.f32 %v3597_v58 }
0x1c65   :  { %v3608_v50 = vmul.f32 %v3604_v19, %v3576_v17  ;;  %v3770_v17 = vld [vmem:[%s3832_s27 + $0x18] sm:$0xff]  ;;  %v3769_v19 = vld [vmem:[%s3832_s27 + $0x10] sm:$0xff] }
0x1c66   :  { %v3590_v20 = vmul.f32 %v3586_v35, %v3571_v13  ;;  %3797 = vmatpush.msra.mxu0 %v3770_v17  ;;  %v3768_v35 = vld [vmem:[%s3832_s27 + $0x8] sm:$0xff] }
0x1c67   :  { %v3573_v42 = vpop.f32.mrf.mxu2  ;;  %4158 = vmatmul.msk.f32.vlgmr.msrb.gmra.mxu3 %vm134_vm0, %v3608_v50  ;;  %v3767_v50 = vld [vmem:[%s3832_s27] sm:$0xff] }
0x1c68   :  { %v3574_v21 = vadd.f32 %v4247_v62, %v3573_v42  ;;  %v3594_v23 = vadd.f32 %v3590_v20, %v3571_v13  ;;  %3798 = vmatpush.msra.mxu0 %v3769_v19 }
0x1c6a   :  { %v4431_v25 = vpop.eup %4430  ;;  %v3583_v27 = vmul.f32 0.044715, %v3574_v21  ;;  %v3598_v31 = vmul.f32 0.7978846, %v3594_v23  ;;  %v3579_v59 = vmul.f32 0.5, %v3574_v21  ;;  %3799 = vmatpush.msra.mxu0 %v3768_v35 }
0x1c6b   :  { %v3605_v24 = vadd.f32 1.0, %v4431_v25 }
0x1c6c   :  { %v3587_v29 = vmul.f32 %v3583_v27, %v3574_v21  ;;  %4432 = vtanh.f32 %v3598_v31  ;;  %3800 = vmatpush.msra.mxu0 %v3767_v50 }
0x1c6d   :  { %v3609_v51 = vmul.f32 %v3605_v24, %v3577_v7 }
0x1c6e   :  { %v3591_v33 = vmul.f32 %v3587_v29, %v3574_v21 }
0x1c6f   :  { %4159 = vmatmul.msk.f32.gmra.mxu3 %vm134_vm0, %v3609_v51 }
0x1c70   :  { %v3595_v26 = vadd.f32 %v3591_v33, %v3574_v21 }
0x1c72   :  { %v4433_v41 = vpop.eup %4432  ;;  %v3599_v38 = vmul.f32 0.7978846, %v3595_v26 }
0x1c73   :  { %v3606_v43 = vadd.f32 1.0, %v4433_v41 }
0x1c74   :  { %4434 = vtanh.f32 %v3599_v38 }
0x1c75   :  { %v3610_v44 = vmul.f32 %v3606_v43, %v3578_v39 }
0x1c77   :  { %4160 = vmatmul.msk.f32.gmra.mxu3 %vm134_vm0, %v3610_v44  ;;  %v4249_v44 = vld [vmem:[%s5479_s23] ss:$0 sm:$0xff] }
0x1c7a   :  { %v4435_v30 = vpop.eup %4434 }
0x1c7b   :  { %v3607_v10 = vadd.f32 1.0, %v4435_v30 }
0x1c7d   :  { %v3611_v5 = vmul.f32 %v3607_v10, %v3579_v59  ;;  %v4250_v10 = vld [vmem:[%s5479_s23 + $0x1] ss:$0 sm:$0xff] }
0x1c7f   :  { %4161 = vmatmul.msk.f32.gmra.mxu3 %vm134_vm0, %v3611_v5 }
0x1cea   :  { %v3651_v40 = vpop.f32.mrf.mxu3 }
0x1ceb   :  { %v3652_v52 = vadd.f32 %v4248_v6, %v3651_v40 }
0x1ced   :  { %v3663_v53 = vadd.f32 %v3652_v52, %v5396_v36 }
0x1cef   :  { %v3669_v0 = vsel %vm189_vm1, %v3663_v53, 0.0 }
0x1cf0   :  { %3670 = vadd.xlane.f32.xlu2 %v3669_v0 }
0x1cf2   :  { %v3654_v34 = vpop.f32.mrf.mxu3 }
0x1cf3   :  { %v3655_v12 = vadd.f32 %v4248_v6, %v3654_v34 }
0x1cf5   :  { %v3664_v47 = vadd.f32 %v3655_v12, %v5401_v56 }
0x1cf7   :  { %v3672_v16 = vsel %vm189_vm1, %v3664_v47, 0.0 }
0x1cf8   :  { %3673 = vadd.xlane.f32.xlu0 %v3672_v16 }
0x1cfa   :  { %v3657_v60 = vpop.f32.mrf.mxu3 }
0x1cfb   :  { %v3658_v54 = vadd.f32 %v4248_v6, %v3657_v60 }
0x1cfd   :  { %v3665_v61 = vadd.f32 %v3658_v54, %v5406_v22 }
0x1cff   :  { %v3675_v63 = vsel %vm189_vm1, %v3665_v61, 0.0 }
0x1d00   :  { %3676 = vadd.xlane.f32.xlu1 %v3675_v63 }
0x1d02   :  { %v3660_v48 = vpop.f32.mrf.mxu3 }
0x1d03   :  { %v3661_v62 = vadd.f32 %v4248_v6, %v3660_v48 }
0x1d05   :  { %v3666_v36 = vadd.f32 %v3661_v62, %v5411_v28 }
0x1d07   :  { %v3678_v56 = vsel %vm189_vm1, %v3666_v36, 0.0 }
0x1d08   :  { %3679 = vadd.xlane.f32.xlu2 %v3678_v56 }
0x1d63   :  { %v3671_v1 = vpop.xlane.xlu2 %3670 }
0x1d64   :  { %v3681_v2 = vmul.f32 %v3671_v1, %v4514_v32 }
0x1d66   :  { %v3685_v22 = vsub.f32 %v3663_v53, %v3681_v2 }
0x1d68   :  { %v3689_v3 = vmul.f32 %v3685_v22, %v3685_v22 }
0x1d6a   :  { %v3693_v14 = vsel %vm189_vm1, %v3689_v3, 0.0 }
0x1d6b   :  { %3694 = vadd.xlane.f32.xlu0 %v3693_v14  ;;  %v3674_v57 = vpop.xlane.xlu0 %3673 }
0x1d6c   :  { %v3682_v8 = vmul.f32 %v3674_v57, %v4514_v32 }
0x1d6e   :  { %v5486_v18 = vsub.f32 %v3664_v47, %v3682_v8 }
0x1d70   :  { %v3690_v45 = vmul.f32 %v5486_v18, %v5486_v18 }
0x1d72   :  { %v3696_v28 = vsel %vm189_vm1, %v3690_v45, 0.0 }
0x1d73   :  { %v3677_v55 = vpop.xlane.xlu1 %3676  ;;  %3697 = vadd.xlane.f32.xlu1 %v3696_v28 }
0x1d74   :  { %v3683_v9 = vmul.f32 %v3677_v55, %v4514_v32 }
0x1d76   :  { %v5492_v11 = vsub.f32 %v3665_v61, %v3683_v9 }
0x1d78   :  { %v3691_v37 = vmul.f32 %v5492_v11, %v5492_v11 }
0x1d7a   :  { %v3699_v4 = vsel %vm189_vm1, %v3691_v37, 0.0 }
0x1d7b   :  { %v3680_v13 = vpop.xlane.xlu2 %3679  ;;  %3700 = vadd.xlane.f32.xlu2 %v3699_v4 }
0x1d7c   :  { %v3684_v15 = vmul.f32 %v3680_v13, %v4514_v32 }
0x1d7e   :  { %v5498_v46 = vsub.f32 %v3666_v36, %v3684_v15 }
0x1d80   :  { %v3692_v49 = vmul.f32 %v5498_v46, %v5498_v46 }
0x1d82   :  { %v3702_v58 = vsel %vm189_vm1, %v3692_v49, 0.0 }
0x1d83   :  { %3703 = vadd.xlane.f32.xlu0 %v3702_v58 }
0x1dde   :  { %v3695_v20 = vpop.xlane.xlu0 %3694 }
0x1ddf   :  { %v3705_v42 = vmul.f32 %v3695_v20, %v4514_v32 }
0x1de1   :  { %v3709_v21 = vadd.f32 1e-05, %v3705_v42 }
0x1de3   :  { %4436 = vrsqrt.f32 %v3709_v21  ;;  %vm3719_vm14 = vweird.f32 %v3709_v21 }
0x1de6   :  { %v3698_v23 = vpop.xlane.xlu1 %3697 }
0x1de7   :  { %v3706_v25 = vmul.f32 %v3698_v23, %v4514_v32 }
0x1de9   :  { %v4437_v27 = vpop.eup %4436  ;;  %v3710_v31 = vadd.f32 1e-05, %v3706_v25 }
0x1dea   :  { %v3714_v7 = vmul.f32 %v4437_v27, %v3709_v21  ;;  %vm3720_vm13 = vweird.f32 %v4437_v27 }
0x1deb   :  { %4438 = vrsqrt.f32 %v3710_v31  ;;  %vm3721_vm15 = vmor %vm3719_vm14, %vm3720_vm13  ;;  %vm3729_vm3 = vweird.f32 %v3710_v31 }
0x1dec   :  { %v3715_v24 = vmul.f32 %v4437_v27, %v3714_v7 }
0x1dee   :  { %v3716_v29 = vmul.f32 0.5, %v3715_v24  ;;  %v3701_v51 = vpop.xlane.xlu2 %3700 }
0x1def   :  { %v3707_v33 = vmul.f32 %v3701_v51, %v4514_v32 }
0x1df0   :  { %v3717_v26 = vsub.f32 1.5, %v3716_v29 }
0x1df1   :  { %v4439_v41 = vpop.eup %4438  ;;  %v3711_v38 = vadd.f32 1e-05, %v3707_v33 }
0x1df2   :  { %v3718_v39 = vmul.f32 %v4437_v27, %v3717_v26  ;;  %v3724_v43 = vmul.f32 %v4439_v41, %v3710_v31  ;;  %vm3730_vm2 = vweird.f32 %v4439_v41 }
0x1df3   :  { %4440 = vrsqrt.f32 %v3711_v38  ;;  %vm3731_vm4 = vmor %vm3729_vm3, %vm3730_vm2  ;;  %vm3739_vm6 = vweird.f32 %v3711_v38 }
0x1df4   :  { %v3722_v30 = vsel %vm3721_vm15, %v4437_v27, %v3718_v39  ;;  %v3725_v59 = vmul.f32 %v4439_v41, %v3724_v43 }
0x1df5   :  { %v3753_v5 = vmul.f32 %v3722_v30, %v3685_v22 }
0x1df6   :  { %v3726_v6 = vmul.f32 0.5, %v3725_v59  ;;  %v3704_v40 = vpop.xlane.xlu0 %3703 }
0x1df7   :  { %v3758_v52 = vmul.f32 %v4249_v44, %v3753_v5  ;;  %v3708_v53 = vmul.f32 %v3704_v40, %v4514_v32 }
0x1df8   :  { %v3727_v0 = vsub.f32 1.5, %v3726_v6 }
0x1df9   :  { %v4441_v34 = vpop.eup %4440  ;;  %v3763_v12 = vadd.f32 %v4250_v10, %v3758_v52  ;;  %v3712_v47 = vadd.f32 1e-05, %v3708_v53 }
0x1dfa   :  { %v3728_v16 = vmul.f32 %v4439_v41, %v3727_v0  ;;  %v3734_v60 = vmul.f32 %v4441_v34, %v3711_v38  ;;  %vm3740_vm5 = vweird.f32 %v4441_v34 }
0x1dfb   :  { %4442 = vrsqrt.f32 %v3712_v47  ;;  %4162 = vmatmul.msk.f32.vlgmr.msra.gmra.mxu0 %vm189_vm1, %v3763_v12  ;;  %vm3741_vm7 = vmor %vm3739_vm6, %vm3740_vm5  ;;  %vm3749_vm9 = vweird.f32 %v3712_v47 }
0x1dfc   :  { %v3732_v54 = vsel %vm3731_vm4, %v4439_v41, %v3728_v16  ;;  %v3735_v61 = vmul.f32 %v4441_v34, %v3734_v60 }
0x1dfd   :  { %v3754_v63 = vmul.f32 %v3732_v54, %v5486_v18 }
0x1dfe   :  { %v3736_v48 = vmul.f32 0.5, %v3735_v61 }
0x1dff   :  { %v3759_v62 = vmul.f32 %v4249_v44, %v3754_v63 }
0x1e00   :  { %v3737_v36 = vsub.f32 1.5, %v3736_v48 }
0x1e01   :  { %v4443_v32 = vpop.eup %4442  ;;  %v3764_v56 = vadd.f32 %v4250_v10, %v3759_v62 }
0x1e02   :  { %v3738_v1 = vmul.f32 %v4441_v34, %v3737_v36  ;;  %v3744_v2 = vmul.f32 %v4443_v32, %v3712_v47  ;;  %vm3750_vm8 = vweird.f32 %v4443_v32 }
0x1e03   :  { %4163 = vmatmul.msk.f32.gmra.mxu0 %vm189_vm1, %v3764_v56  ;;  %vm3751_vm10 = vmor %vm3749_vm9, %vm3750_vm8 }
0x1e04   :  { %v3742_v22 = vsel %vm3741_vm7, %v4441_v34, %v3738_v1  ;;  %v3745_v3 = vmul.f32 %v4443_v32, %v3744_v2 }
0x1e05   :  { %v3755_v14 = vmul.f32 %v3742_v22, %v5492_v11  ;;  %v4251_v11 = vld [vmem:[%s5479_s23 + $0x2] ss:$0 sm:$0xff] }
0x1e06   :  { %v3746_v57 = vmul.f32 0.5, %v3745_v3 }
0x1e07   :  { %v3760_v8 = vmul.f32 %v4249_v44, %v3755_v14 }
0x1e08   :  { %v3747_v18 = vsub.f32 1.5, %v3746_v57 }
0x1e09   :  { %v3765_v45 = vadd.f32 %v4250_v10, %v3760_v8 }
0x1e0a   :  { %v3748_v28 = vmul.f32 %v4443_v32, %v3747_v18 }
0x1e0b   :  { %4164 = vmatmul.msk.f32.gmra.mxu0 %vm189_vm1, %v3765_v45 }
0x1e0c   :  { %v3752_v55 = vsel %vm3751_vm10, %v4443_v32, %v3748_v28 }
0x1e0d   :  { %v3756_v9 = vmul.f32 %v3752_v55, %v5498_v46 }
0x1e0f   :  { %v3761_v37 = vmul.f32 %v4249_v44, %v3756_v9 }
0x1e11   :  { %v3766_v4 = vadd.f32 %v4250_v10, %v3761_v37 }
0x1e13   :  { %4165 = vmatmul.msk.f32.gmra.mxu0 %vm189_vm1, %v3766_v4 }
0x1e78   :  { %v3802_v13 = vpop.f32.mrf.mxu0 }
0x1e79   :  { %v3803_v15 = vadd.f32 %v4251_v11, %v3802_v13 }
0x1e7b   :  { %3814 = vst.msk [vmem:[%s3850_s1] sm:$0xff] %vm134_vm0, %v3803_v15 }
0x1e80   :  { %v3805_v49 = vpop.f32.mrf.mxu0 }
0x1e81   :  { %v3806_v58 = vadd.f32 %v4251_v11, %v3805_v49 }
0x1e83   :  { %3815 = vst.msk [vmem:[%s3850_s1 + $0x8] sm:$0xff] %vm134_vm0, %v3806_v58 }
0x1e88   :  { %v3808_v17 = vpop.f32.mrf.mxu0 }
0x1e89   :  { %v3809_v46 = vadd.f32 %v4251_v11, %v3808_v17 }
0x1e8b   :  { %3816 = vst.msk [vmem:[%s3850_s1 + $0x10] sm:$0xff] %vm134_vm0, %v3809_v46 }
0x1e90   :  { %v3811_v19 = vpop.f32.mrf.mxu0 }
0x1e91   :  { %v3812_v35 = vadd.f32 %v4251_v11, %v3811_v19 }
0x1e93   :  { %3817 = vst.msk [vmem:[%s3850_s1 + $0x18] sm:$0xff] %vm134_vm0, %v3812_v35 }

</bundles_post_ra>
